<compile_context>
chip_gen: v7x
topology: tpu7x:2x2x1
jax: 0.10.0
libtpu: 0.0.40
codegen_flags: <defaults>
</compile_context>

<pallas_src>
import functools

import jax
import jax.numpy as jnp
from jax.experimental import pallas as pl
from jax.experimental.pallas import tpu as pltpu

NEG_SLOPE = 0.01  # nn.LeakyReLU default negative_slope


# ---------------------------------------------------------------------------
# Fused per-level kernel
# ---------------------------------------------------------------------------
def _fused_level_kernel(mask_ref, wsum_ref, bsum_ref, wlstm_ref, blstm_ref,
                        f1_ref, f2_ref, hpre_ref, cpre_ref,
                        corr_ref, h_ref, c_ref,
                        lstm_ext,
                        *, patch, wp, ext):
    """One batch element of one FPN level, fully fused in VMEM.

    mask_ref : (1, Np)            1.0 on valid interior, 0.0 on the border
    wsum_ref : (9, S, C)          summary conv weights, tap-major
    bsum_ref : (S, 1)
    wlstm_ref: (9, 4*HID, 2*HID)  lstm conv weights, tap-major, gates fused
    blstm_ref: (4*HID, 1)
    f1_ref   : (1, C, Next)       feat1, padded-flat + zero lane extension
    f2_ref   : (1, C, Next)       feat2, padded-flat + zero lane extension
    hpre_ref : (1, HID, Np)       h_pre, padded-flat (zero border)
    cpre_ref : (1, HID, Np)       c_pre, padded-flat
    corr_ref : (1, PP, Np)        correlation volume output (PF layout)
    h_ref    : (1, HID, Np)       h_next output (PF layout)
    c_ref    : (1, HID, Np)       c_next output (PF layout)
    lstm_ext : (2*HID, Next)      VMEM scratch holding lstm_in + extension
    """
    r = patch // 2
    n_pf = mask_ref.shape[1]
    s = bsum_ref.shape[0]
    hid = hpre_ref.shape[1]
    mask = mask_ref[...]                                      # (1, Np)

    # --- 1) correlation volume + LeakyReLU (VPU) ---------------------------
    f1_mid = f1_ref[0, :, ext:ext + n_pf]                     # (C, Np)
    corr_rows = []
    for dy in range(patch):
        for dx in range(patch):
            off = (dy - r) * wp + (dx - r)
            f2_shift = f2_ref[0, :, ext + off:ext + off + n_pf]
            corr_rows.append(
                jnp.sum(f1_mid * f2_shift, axis=0, keepdims=True))
    corr = jnp.concatenate(corr_rows, axis=0)                 # (PP, Np)
    corr = jnp.where(corr >= 0.0, corr, NEG_SLOPE * corr)
    corr_ref[0] = corr

    # --- 2) summary 3x3 conv + ReLU (9 shifted MXU matmuls) ----------------
    acc = jnp.zeros((s, n_pf), jnp.float32)
    for ky in range(3):
        for kx in range(3):
            off = (ky - 1) * wp + (kx - 1)
            x = f1_ref[0, :, ext + off:ext + off + n_pf]      # (C, Np)
            acc = acc + jnp.dot(wsum_ref[ky * 3 + kx], x,
                                preferred_element_type=jnp.float32)
    summary = jnp.maximum(acc + bsum_ref[...], 0.0)           # (S, Np)

    # --- 3) assemble lstm_in in VMEM scratch (zero padding via mask/ext) ---
    lstm_ext[...] = jnp.zeros_like(lstm_ext)
    lstm_ext[:, ext:ext + n_pf] = jnp.concatenate(
        [summary * mask, corr * mask, hpre_ref[0]], axis=0)   # (2*HID, Np)

    # --- 4) ConvLSTM conv (all 4 gates in one matmul per tap) + gates ------
    acc2 = jnp.zeros((4 * hid, n_pf), jnp.float32)
    for ky in range(3):
        for kx in range(3):
            off = (ky - 1) * wp + (kx - 1)
            x = lstm_ext[:, ext + off:ext + off + n_pf]       # (2*HID, Np)
            acc2 = acc2 + jnp.dot(wlstm_ref[ky * 3 + kx], x,
                                  preferred_element_type=jnp.float32)
    acc2 = acc2 + blstm_ref[...]

    i_g = jax.nn.sigmoid(acc2[0:hid])
    f_g = jax.nn.sigmoid(acc2[hid:2 * hid])
    o_g = jax.nn.sigmoid(acc2[2 * hid:3 * hid])
    g_g = jnp.tanh(acc2[3 * hid:4 * hid])
    c_next = f_g * cpre_ref[0] + i_g * g_g
    c_ref[0] = c_next
    h_ref[0] = o_g * jnp.tanh(c_next)


# ---------------------------------------------------------------------------
# Per-level wrapper (padding / layout glue fused under one jit)
# ---------------------------------------------------------------------------
@functools.partial(jax.jit, static_argnames=("patch",))
def _level_forward(params, feat1, feat2, h_pre, c_pre, *, patch):
    b, c, h, w = feat1.shape
    s = c // 8
    pp = patch * patch
    hid = pp + s
    r = patch // 2
    m = max(r, 1)               # shared pad: covers corr (r) and 3x3 conv (1)
    hp, wp = h + 2 * m, w + 2 * m
    n_pf = hp * wp              # padded-flat spatial length (lane axis)
    ext = m * wp + m            # zero lane extension covering the max shift
    n_ext = n_pf + 2 * ext

    def to_pf(x):               # (b, ch, h, w) -> (b, ch, n_pf), zero borders
        ch = x.shape[1]
        return jnp.pad(x, ((0, 0), (0, 0), (m, m), (m, m))).reshape(b, ch, n_pf)

    def to_ext(x):              # (b, ch, h, w) -> (b, ch, n_ext)
        return jnp.pad(to_pf(x), ((0, 0), (0, 0), (ext, ext)))

    f1_ext = to_ext(feat1)
    f2_ext = to_ext(feat2)
    hpre_pf = to_pf(h_pre)
    cpre_pf = to_pf(c_pre)
    mask = jnp.pad(jnp.ones((1, h, w), jnp.float32),
                   ((0, 0), (m, m), (m, m))).reshape(1, n_pf)

    kernel = functools.partial(_fused_level_kernel,
                               patch=patch, wp=wp, ext=ext)

    grid_spec = pltpu.PrefetchScalarGridSpec(
        num_scalar_prefetch=0,
        grid=(b,),
        in_specs=[
            pl.BlockSpec((1, n_pf), lambda i: (0, 0)),                 # mask
            pl.BlockSpec((9, s, c), lambda i: (0, 0, 0)),              # w_sum
            pl.BlockSpec((s, 1), lambda i: (0, 0)),                    # b_sum
            pl.BlockSpec((9, 4 * hid, 2 * hid), lambda i: (0, 0, 0)),  # w_lstm
            pl.BlockSpec((4 * hid, 1), lambda i: (0, 0)),              # b_lstm
            pl.BlockSpec((1, c, n_ext), lambda i: (i, 0, 0)),          # feat1
            pl.BlockSpec((1, c, n_ext), lambda i: (i, 0, 0)),          # feat2
            pl.BlockSpec((1, hid, n_pf), lambda i: (i, 0, 0)),         # h_pre
            pl.BlockSpec((1, hid, n_pf), lambda i: (i, 0, 0)),         # c_pre
        ],
        out_specs=[
            pl.BlockSpec((1, pp, n_pf), lambda i: (i, 0, 0)),          # corr
            pl.BlockSpec((1, hid, n_pf), lambda i: (i, 0, 0)),         # h_next
            pl.BlockSpec((1, hid, n_pf), lambda i: (i, 0, 0)),         # c_next
        ],
        scratch_shapes=[pltpu.VMEM((2 * hid, n_ext), jnp.float32)],
    )

    corr_pf, h_pf, c_pf = pl.pallas_call(
        kernel,
        out_shape=(jax.ShapeDtypeStruct((b, pp, n_pf), jnp.float32),
                   jax.ShapeDtypeStruct((b, hid, n_pf), jnp.float32),
                   jax.ShapeDtypeStruct((b, hid, n_pf), jnp.float32)),
        grid_spec=grid_spec,
        compiler_params=pltpu.CompilerParams(
            dimension_semantics=("parallel",)),
    )(mask, params["w_sum"], params["b_sum"], params["w_lstm"],
      params["b_lstm"], f1_ext, f2_ext, hpre_pf, cpre_pf)

    def from_pf(x_pf, ch):      # (b, ch, n_pf) -> (b, ch, h, w) interior
        return x_pf.reshape(b, ch, hp, wp)[:, :, m:m + h, m:m + w]

    return ((from_pf(h_pf, hid), from_pf(c_pf, hid)), from_pf(corr_pf, pp))


# ---------------------------------------------------------------------------
# Module wrapper (params already in the tap-major layouts the kernel consumes)
# ---------------------------------------------------------------------------
def _init_level_params(key, c, patch):
    """w_sum  (9, S, C)            <- summary_conv.weight (S, C, 3, 3) tap-major
       b_sum  (S, 1)               <- summary_conv.bias
       w_lstm (9, 4*HID, 2*HID)    <- lstm_convolution.weight, tap-major
       b_lstm (4*HID, 1)           <- lstm_convolution.bias (forget chunk = 1,
                                      as in init_weights)
    """
    s = c // 8
    hid = patch * patch + s
    k1, k2 = jax.random.split(key)
    w_sum = jax.random.normal(k1, (9, s, c), jnp.float32) * (c * 9) ** -0.5
    b_sum = jnp.zeros((s, 1), jnp.float32)
    w_lstm = (jax.random.normal(k2, (9, 4 * hid, 2 * hid), jnp.float32)
              * (2 * hid * 9) ** -0.5)
    b_lstm = jnp.zeros((4 * hid, 1), jnp.float32).at[hid:2 * hid].set(1.0)
    return {"w_sum": w_sum, "b_sum": b_sum, "w_lstm": w_lstm, "b_lstm": b_lstm}


class CorrLSTMFlow:
    """JAX/Pallas port of mmdet CorrLSTM_flow (forward pass only).

    Only odd corr_size is supported (same as the spatial correlation sampler
    usage in the original module).  TODO(synk): even corr_size not handled.
    """

    def __init__(self, in_channels=(16, 32), corr_size=3, key=None):
        self.in_channels = in_channels
        self.corr_size = corr_size
        key = jax.random.PRNGKey(0) if key is None else key
        keys = jax.random.split(key, len(in_channels))
        self.params = [_init_level_params(k, c, corr_size)
                       for k, c in zip(keys, in_channels)]

    def hidden_channels(self, idx):
        return self.corr_size ** 2 + self.in_channels[idx] // 8

    def __call__(self, x_pre, x, motion_state):
        state_next, corr_feats = [], []
        for idx, (feat1, feat2, state) in enumerate(zip(x, x_pre, motion_state)):
            h_pre, c_pre = state
            (h_next, c_next), corr_feat = _level_forward(
                self.params[idx], feat1, feat2, h_pre, c_pre,
                patch=self.corr_size)
            state_next.append((h_next, c_next))
            corr_feats.append(corr_feat)
        return state_next, corr_feats


# ---------------------------------------------------------------------------
# Plain-JAX reference (self-contained correctness check, full f32 precision)
# ---------------------------------------------------------------------------
def _taps_to_oihw(w_taps):
    _, co, ci = w_taps.shape
    return w_taps.reshape(3, 3, co, ci).transpose(2, 3, 0, 1)


def _conv3x3_ref(x, w_oihw, bias):
    y = jax.lax.conv_general_dilated(
        x, w_oihw, window_strides=(1, 1), padding=((1, 1), (1, 1)),
        dimension_numbers=("NCHW", "OIHW", "NCHW"),
        precision=jax.lax.Precision.HIGHEST)
    return y + bias[None, :, None, None]


def _ref_level(params, feat1, feat2, h_pre, c_pre, patch):
    b, c, h, w = feat1.shape
    s = c // 8
    hid = patch * patch + s
    r = patch // 2
    w_sum = _taps_to_oihw(params["w_sum"])
    b_sum = params["b_sum"].reshape(s)
    w_lstm = _taps_to_oihw(params["w_lstm"])
    b_lstm = params["b_lstm"].reshape(4 * hid)

    summary = jax.nn.relu(_conv3x3_ref(feat1, w_sum, b_sum))
    f2p = jnp.pad(feat2, ((0, 0), (0, 0), (r, r), (r, r)))
    planes = [jnp.sum(feat1 * f2p[:, :, dy:dy + h, dx:dx + w], axis=1)
              for dy in range(patch) for dx in range(patch)]
    corr = jnp.stack(planes, axis=1)
    corr = jnp.where(corr >= 0, corr, NEG_SLOPE * corr)

    lstm_in = jnp.concatenate([summary, corr, h_pre], axis=1)
    conv_x = _conv3x3_ref(lstm_in, w_lstm, b_lstm)
    cc_i, cc_f, cc_o, cc_g = jnp.split(conv_x, 4, axis=1)
    i = jax.nn.sigmoid(cc_i)
    f = jax.nn.sigmoid(cc_f)
    o = jax.nn.sigmoid(cc_o)
    g = jnp.tanh(cc_g)
    c_next = f * c_pre + i * g
    h_next = o * jnp.tanh(c_next)
    return (h_next, c_next), corr


if __name__ == "__main__":
    key = jax.random.PRNGKey(0)
    batch = 2
    corr_size = 3
    in_channels = (16, 32)           # multiples of 8 (summary: C -> C//8)
    spatials = ((16, 16), (8, 16))

    model = CorrLSTMFlow(in_channels=in_channels, corr_size=corr_size,
                         key=jax.random.fold_in(key, 1))

    data_keys = jax.random.split(key, 4 * len(in_channels))
    x, x_pre, motion_state = [], [], []
    for lvl, (c, (h, w)) in enumerate(zip(in_channels, spatials)):
        hid = corr_size ** 2 + c // 8
        k0, k1, k2, k3 = data_keys[4 * lvl: 4 * lvl + 4]
        x.append(jax.random.normal(k0, (batch, c, h, w), jnp.float32))
        x_pre.append(jax.random.normal(k1, (batch, c, h, w), jnp.float32))
        motion_state.append(
            (0.1 * jax.random.normal(k2, (batch, hid, h, w), jnp.float32),
             0.1 * jax.random.normal(k3, (batch, hid, h, w), jnp.float32)))

    state_next, corr_feats = model(x_pre, x, motion_state)
    jax.block_until_ready((state_next, corr_feats))

    # Shape checks + numerical check against the plain-JAX reference.
    for lvl, (c, (h, w)) in enumerate(zip(in_channels, spatials)):
        hid = corr_size ** 2 + c // 8
        assert corr_feats[lvl].shape == (batch, corr_size ** 2, h, w)
        assert state_next[lvl][0].shape == (batch, hid, h, w)
        assert state_next[lvl][1].shape == (batch, hid, h, w)

        h_pre, c_pre = motion_state[lvl]
        (h_ref, c_ref), corr_ref = _ref_level(
            model.params[lvl], x[lvl], x_pre[lvl], h_pre, c_pre, corr_size)
        # Correlation is pure f32 VPU math -> tight tolerance.
        assert bool(jnp.allclose(corr_feats[lvl], corr_ref,
                                 atol=1e-3, rtol=1e-3)), "corr mismatch"
        # In-kernel f32 jnp.dot uses the MXU's reduced-precision (bf16) passes
        # while the reference conv runs at Precision.HIGHEST -> looser bound.
        assert bool(jnp.allclose(state_next[lvl][0], h_ref,
                                 atol=1e-1, rtol=1e-2)), "h_next mismatch"
        assert bool(jnp.allclose(state_next[lvl][1], c_ref,
                                 atol=1e-1, rtol=1e-2)), "c_next mismatch"

    print("KERNEL_OK")
</pallas_src>

<mosaic_0001>
module attributes {stable_mosaic.version = 11 : i64} {
  func.func @_fused_level_kernel(%arg0: i32, %arg1: memref<1x324xf32, #tpu.memory_space<vmem>>, %arg2: memref<9x2x16xf32, #tpu.memory_space<vmem>>, %arg3: memref<2x1xf32, #tpu.memory_space<vmem>>, %arg4: memref<9x44x22xf32, #tpu.memory_space<vmem>>, %arg5: memref<44x1xf32, #tpu.memory_space<vmem>>, %arg6: memref<1x16x362xf32, #tpu.memory_space<vmem>>, %arg7: memref<1x16x362xf32, #tpu.memory_space<vmem>>, %arg8: memref<1x11x324xf32, #tpu.memory_space<vmem>>, %arg9: memref<1x11x324xf32, #tpu.memory_space<vmem>>, %arg10: memref<1x9x324xf32, #tpu.memory_space<vmem>>, %arg11: memref<1x11x324xf32, #tpu.memory_space<vmem>>, %arg12: memref<1x11x324xf32, #tpu.memory_space<vmem>>, %arg13: memref<22x362xf32, #tpu.memory_space<vmem>>) attributes {dimension_semantics = [#tpu.dimension_semantics<parallel>], iteration_bounds = array<i64: 2>, scalar_prefetch = 0 : i64, scratch_operands = 1 : i64, tpu.core_type = #tpu.core_type<tc>, window_params = [{pipeline_mode = #tpu.pipeline_mode<synchronous>, transform_indices = @transform_0, window_bounds = array<i64: 1, 324>}, {pipeline_mode = #tpu.pipeline_mode<synchronous>, transform_indices = @transform_1, window_bounds = array<i64: 9, 2, 16>}, {pipeline_mode = #tpu.pipeline_mode<synchronous>, transform_indices = @transform_2, window_bounds = array<i64: 2, 1>}, {pipeline_mode = #tpu.pipeline_mode<synchronous>, transform_indices = @transform_3, window_bounds = array<i64: 9, 44, 22>}, {pipeline_mode = #tpu.pipeline_mode<synchronous>, transform_indices = @transform_4, window_bounds = array<i64: 44, 1>}, {transform_indices = @transform_5, window_bounds = array<i64: 1, 16, 362>}, {transform_indices = @transform_6, window_bounds = array<i64: 1, 16, 362>}, {transform_indices = @transform_7, window_bounds = array<i64: 1, 11, 324>}, {transform_indices = @transform_8, window_bounds = array<i64: 1, 11, 324>}, {transform_indices = @transform_9, window_bounds = array<i64: 1, 9, 324>}, {transform_indices = @transform_10, window_bounds = array<i64: 1, 11, 324>}, {transform_indices = @transform_11, window_bounds = array<i64: 1, 11, 324>}]} {
    %c0 = arith.constant 0 : index
    %c0_0 = arith.constant 0 : index
    %0 = vector.load %arg1[%c0, %c0_0] : memref<1x324xf32, #tpu.memory_space<vmem>>, vector<1x324xf32>
    %c0_1 = arith.constant 0 : index
    %c0_2 = arith.constant 0 : index
    %c19 = arith.constant 19 : index
    %1 = vector.load %arg6[%c0_1, %c0_2, %c19] : memref<1x16x362xf32, #tpu.memory_space<vmem>>, vector<1x16x324xf32>
    %2 = vector.shape_cast %1 : vector<1x16x324xf32> to vector<16x324xf32>
    %c0_3 = arith.constant 0 : index
    %c0_4 = arith.constant 0 : index
    %c0_5 = arith.constant 0 : index
    %3 = vector.load %arg7[%c0_3, %c0_4, %c0_5] : memref<1x16x362xf32, #tpu.memory_space<vmem>>, vector<1x16x324xf32>
    %4 = vector.shape_cast %3 : vector<1x16x324xf32> to vector<16x324xf32>
    %5 = arith.mulf %2, %4 : vector<16x324xf32>
    %cst = arith.constant dense<0.000000e+00> : vector<324xf32>
    %6 = vector.multi_reduction <add>, %5, %cst [0] : vector<16x324xf32> to vector<324xf32>
    %7 = vector.shape_cast %6 : vector<324xf32> to vector<1x324xf32>
    %c0_6 = arith.constant 0 : index
    %c0_7 = arith.constant 0 : index
    %c1 = arith.constant 1 : index
    %8 = vector.load %arg7[%c0_6, %c0_7, %c1] : memref<1x16x362xf32, #tpu.memory_space<vmem>>, vector<1x16x324xf32>
    %9 = vector.shape_cast %8 : vector<1x16x324xf32> to vector<16x324xf32>
    %10 = arith.mulf %2, %9 : vector<16x324xf32>
    %cst_8 = arith.constant dense<0.000000e+00> : vector<324xf32>
    %11 = vector.multi_reduction <add>, %10, %cst_8 [0] : vector<16x324xf32> to vector<324xf32>
    %12 = vector.shape_cast %11 : vector<324xf32> to vector<1x324xf32>
    %c0_9 = arith.constant 0 : index
    %c0_10 = arith.constant 0 : index
    %c2 = arith.constant 2 : index
    %13 = vector.load %arg7[%c0_9, %c0_10, %c2] : memref<1x16x362xf32, #tpu.memory_space<vmem>>, vector<1x16x324xf32>
    %14 = vector.shape_cast %13 : vector<1x16x324xf32> to vector<16x324xf32>
    %15 = arith.mulf %2, %14 : vector<16x324xf32>
    %cst_11 = arith.constant dense<0.000000e+00> : vector<324xf32>
    %16 = vector.multi_reduction <add>, %15, %cst_11 [0] : vector<16x324xf32> to vector<324xf32>
    %17 = vector.shape_cast %16 : vector<324xf32> to vector<1x324xf32>
    %c0_12 = arith.constant 0 : index
    %c0_13 = arith.constant 0 : index
    %c18 = arith.constant 18 : index
    %18 = vector.load %arg7[%c0_12, %c0_13, %c18] : memref<1x16x362xf32, #tpu.memory_space<vmem>>, vector<1x16x324xf32>
    %19 = vector.shape_cast %18 : vector<1x16x324xf32> to vector<16x324xf32>
    %20 = arith.mulf %2, %19 : vector<16x324xf32>
    %cst_14 = arith.constant dense<0.000000e+00> : vector<324xf32>
    %21 = vector.multi_reduction <add>, %20, %cst_14 [0] : vector<16x324xf32> to vector<324xf32>
    %22 = vector.shape_cast %21 : vector<324xf32> to vector<1x324xf32>
    %c0_15 = arith.constant 0 : index
    %c0_16 = arith.constant 0 : index
    %c19_17 = arith.constant 19 : index
    %23 = vector.load %arg7[%c0_15, %c0_16, %c19_17] : memref<1x16x362xf32, #tpu.memory_space<vmem>>, vector<1x16x324xf32>
    %24 = vector.shape_cast %23 : vector<1x16x324xf32> to vector<16x324xf32>
    %25 = arith.mulf %2, %24 : vector<16x324xf32>
    %cst_18 = arith.constant dense<0.000000e+00> : vector<324xf32>
    %26 = vector.multi_reduction <add>, %25, %cst_18 [0] : vector<16x324xf32> to vector<324xf32>
    %27 = vector.shape_cast %26 : vector<324xf32> to vector<1x324xf32>
    %c0_19 = arith.constant 0 : index
    %c0_20 = arith.constant 0 : index
    %c20 = arith.constant 20 : index
    %28 = vector.load %arg7[%c0_19, %c0_20, %c20] : memref<1x16x362xf32, #tpu.memory_space<vmem>>, vector<1x16x324xf32>
    %29 = vector.shape_cast %28 : vector<1x16x324xf32> to vector<16x324xf32>
    %30 = arith.mulf %2, %29 : vector<16x324xf32>
    %cst_21 = arith.constant dense<0.000000e+00> : vector<324xf32>
    %31 = vector.multi_reduction <add>, %30, %cst_21 [0] : vector<16x324xf32> to vector<324xf32>
    %32 = vector.shape_cast %31 : vector<324xf32> to vector<1x324xf32>
    %c0_22 = arith.constant 0 : index
    %c0_23 = arith.constant 0 : index
    %c36 = arith.constant 36 : index
    %33 = vector.load %arg7[%c0_22, %c0_23, %c36] : memref<1x16x362xf32, #tpu.memory_space<vmem>>, vector<1x16x324xf32>
    %34 = vector.shape_cast %33 : vector<1x16x324xf32> to vector<16x324xf32>
    %35 = arith.mulf %2, %34 : vector<16x324xf32>
    %cst_24 = arith.constant dense<0.000000e+00> : vector<324xf32>
    %36 = vector.multi_reduction <add>, %35, %cst_24 [0] : vector<16x324xf32> to vector<324xf32>
    %37 = vector.shape_cast %36 : vector<324xf32> to vector<1x324xf32>
    %c0_25 = arith.constant 0 : index
    %c0_26 = arith.constant 0 : index
    %c37 = arith.constant 37 : index
    %38 = vector.load %arg7[%c0_25, %c0_26, %c37] : memref<1x16x362xf32, #tpu.memory_space<vmem>>, vector<1x16x324xf32>
    %39 = vector.shape_cast %38 : vector<1x16x324xf32> to vector<16x324xf32>
    %40 = arith.mulf %2, %39 : vector<16x324xf32>
    %cst_27 = arith.constant dense<0.000000e+00> : vector<324xf32>
    %41 = vector.multi_reduction <add>, %40, %cst_27 [0] : vector<16x324xf32> to vector<324xf32>
    %42 = vector.shape_cast %41 : vector<324xf32> to vector<1x324xf32>
    %c0_28 = arith.constant 0 : index
    %c0_29 = arith.constant 0 : index
    %c38 = arith.constant 38 : index
    %43 = vector.load %arg7[%c0_28, %c0_29, %c38] : memref<1x16x362xf32, #tpu.memory_space<vmem>>, vector<1x16x324xf32>
    %44 = vector.shape_cast %43 : vector<1x16x324xf32> to vector<16x324xf32>
    %45 = arith.mulf %2, %44 : vector<16x324xf32>
    %cst_30 = arith.constant dense<0.000000e+00> : vector<324xf32>
    %46 = vector.multi_reduction <add>, %45, %cst_30 [0] : vector<16x324xf32> to vector<324xf32>
    %47 = vector.shape_cast %46 : vector<324xf32> to vector<1x324xf32>
    %48 = tpu.concatenate %7, %12, %17, %22, %27, %32, %37, %42, %47 in 0 : vector<1x324xf32>, vector<1x324xf32>, vector<1x324xf32>, vector<1x324xf32>, vector<1x324xf32>, vector<1x324xf32>, vector<1x324xf32>, vector<1x324xf32>, vector<1x324xf32> -> vector<9x324xf32>
    %cst_31 = arith.constant 0.000000e+00 : f32
    %49 = vector.broadcast %cst_31 : f32 to vector<9x324xf32>
    %50 = arith.cmpf oge, %48, %49 : vector<9x324xf32>
    %cst_32 = arith.constant 0.00999999977 : f32
    %51 = vector.broadcast %cst_32 : f32 to vector<9x324xf32>
    %52 = arith.mulf %51, %48 : vector<9x324xf32>
    %53 = arith.select %50, %48, %52 : vector<9x324xi1>, vector<9x324xf32>
    %c0_33 = arith.constant 0 : index
    %c0_34 = arith.constant 0 : index
    %c0_35 = arith.constant 0 : index
    %54 = vector.load %arg10[%c0_33, %c0_34, %c0_35] : memref<1x9x324xf32, #tpu.memory_space<vmem>>, vector<1x9x324xf32>
    %55 = vector.shape_cast %54 : vector<1x9x324xf32> to vector<9x324xf32>
    %56 = vector.shape_cast %53 : vector<9x324xf32> to vector<1x9x324xf32>
    tpu.vector_store %arg10[%c0_33, %c0_34, %c0_35], %56 {strides = array<i32>} : memref<1x9x324xf32, #tpu.memory_space<vmem>>, vector<1x9x324xf32>,
    %cst_36 = arith.constant 0.000000e+00 : f32
    %57 = vector.broadcast %cst_36 : f32 to vector<2x324xf32>
    %c0_37 = arith.constant 0 : index
    %c0_38 = arith.constant 0 : index
    %c0_39 = arith.constant 0 : index
    %58 = vector.load %arg6[%c0_37, %c0_38, %c0_39] : memref<1x16x362xf32, #tpu.memory_space<vmem>>, vector<1x16x324xf32>
    %59 = vector.shape_cast %58 : vector<1x16x324xf32> to vector<16x324xf32>
    %c0_40 = arith.constant 0 : index
    %c0_41 = arith.constant 0 : index
    %c0_42 = arith.constant 0 : index
    %60 = vector.load %arg2[%c0_40, %c0_41, %c0_42] : memref<9x2x16xf32, #tpu.memory_space<vmem>>, vector<1x2x16xf32>
    %61 = vector.shape_cast %60 : vector<1x2x16xf32> to vector<2x16xf32>
    %cst_43 = arith.constant dense<0.000000e+00> : vector<2x324xf32>
    %62 = tpu.matmul %61, %59, %cst_43 {dimension_numbers = #tpu.dot_dimension_numbers<[1], [0], [0], [1], [0, 0, 1, 1], [], []>} : vector<2x16xf32>, vector<16x324xf32>, vector<2x324xf32> -> vector<2x324xf32>
    %63 = arith.addf %57, %62 : vector<2x324xf32>
    %c0_44 = arith.constant 0 : index
    %c0_45 = arith.constant 0 : index
    %c1_46 = arith.constant 1 : index
    %64 = vector.load %arg6[%c0_44, %c0_45, %c1_46] : memref<1x16x362xf32, #tpu.memory_space<vmem>>, vector<1x16x324xf32>
    %65 = vector.shape_cast %64 : vector<1x16x324xf32> to vector<16x324xf32>
    %c1_47 = arith.constant 1 : index
    %c0_48 = arith.constant 0 : index
    %c0_49 = arith.constant 0 : index
    %66 = vector.load %arg2[%c1_47, %c0_48, %c0_49] : memref<9x2x16xf32, #tpu.memory_space<vmem>>, vector<1x2x16xf32>
    %67 = vector.shape_cast %66 : vector<1x2x16xf32> to vector<2x16xf32>
    %cst_50 = arith.constant dense<0.000000e+00> : vector<2x324xf32>
    %68 = tpu.matmul %67, %65, %cst_50 {dimension_numbers = #tpu.dot_dimension_numbers<[1], [0], [0], [1], [0, 0, 1, 1], [], []>} : vector<2x16xf32>, vector<16x324xf32>, vector<2x324xf32> -> vector<2x324xf32>
    %69 = arith.addf %63, %68 : vector<2x324xf32>
    %c0_51 = arith.constant 0 : index
    %c0_52 = arith.constant 0 : index
    %c2_53 = arith.constant 2 : index
    %70 = vector.load %arg6[%c0_51, %c0_52, %c2_53] : memref<1x16x362xf32, #tpu.memory_space<vmem>>, vector<1x16x324xf32>
    %71 = vector.shape_cast %70 : vector<1x16x324xf32> to vector<16x324xf32>
    %c2_54 = arith.constant 2 : index
    %c0_55 = arith.constant 0 : index
    %c0_56 = arith.constant 0 : index
    %72 = vector.load %arg2[%c2_54, %c0_55, %c0_56] : memref<9x2x16xf32, #tpu.memory_space<vmem>>, vector<1x2x16xf32>
    %73 = vector.shape_cast %72 : vector<1x2x16xf32> to vector<2x16xf32>
    %cst_57 = arith.constant dense<0.000000e+00> : vector<2x324xf32>
    %74 = tpu.matmul %73, %71, %cst_57 {dimension_numbers = #tpu.dot_dimension_numbers<[1], [0], [0], [1], [0, 0, 1, 1], [], []>} : vector<2x16xf32>, vector<16x324xf32>, vector<2x324xf32> -> vector<2x324xf32>
    %75 = arith.addf %69, %74 : vector<2x324xf32>
    %c0_58 = arith.constant 0 : index
    %c0_59 = arith.constant 0 : index
    %c18_60 = arith.constant 18 : index
    %76 = vector.load %arg6[%c0_58, %c0_59, %c18_60] : memref<1x16x362xf32, #tpu.memory_space<vmem>>, vector<1x16x324xf32>
    %77 = vector.shape_cast %76 : vector<1x16x324xf32> to vector<16x324xf32>
    %c3 = arith.constant 3 : index
    %c0_61 = arith.constant 0 : index
    %c0_62 = arith.constant 0 : index
    %78 = vector.load %arg2[%c3, %c0_61, %c0_62] : memref<9x2x16xf32, #tpu.memory_space<vmem>>, vector<1x2x16xf32>
    %79 = vector.shape_cast %78 : vector<1x2x16xf32> to vector<2x16xf32>
    %cst_63 = arith.constant dense<0.000000e+00> : vector<2x324xf32>
    %80 = tpu.matmul %79, %77, %cst_63 {dimension_numbers = #tpu.dot_dimension_numbers<[1], [0], [0], [1], [0, 0, 1, 1], [], []>} : vector<2x16xf32>, vector<16x324xf32>, vector<2x324xf32> -> vector<2x324xf32>
    %81 = arith.addf %75, %80 : vector<2x324xf32>
    %c0_64 = arith.constant 0 : index
    %c0_65 = arith.constant 0 : index
    %c19_66 = arith.constant 19 : index
    %82 = vector.load %arg6[%c0_64, %c0_65, %c19_66] : memref<1x16x362xf32, #tpu.memory_space<vmem>>, vector<1x16x324xf32>
    %83 = vector.shape_cast %82 : vector<1x16x324xf32> to vector<16x324xf32>
    %c4 = arith.constant 4 : index
    %c0_67 = arith.constant 0 : index
    %c0_68 = arith.constant 0 : index
    %84 = vector.load %arg2[%c4, %c0_67, %c0_68] : memref<9x2x16xf32, #tpu.memory_space<vmem>>, vector<1x2x16xf32>
    %85 = vector.shape_cast %84 : vector<1x2x16xf32> to vector<2x16xf32>
    %cst_69 = arith.constant dense<0.000000e+00> : vector<2x324xf32>
    %86 = tpu.matmul %85, %83, %cst_69 {dimension_numbers = #tpu.dot_dimension_numbers<[1], [0], [0], [1], [0, 0, 1, 1], [], []>} : vector<2x16xf32>, vector<16x324xf32>, vector<2x324xf32> -> vector<2x324xf32>
    %87 = arith.addf %81, %86 : vector<2x324xf32>
    %c0_70 = arith.constant 0 : index
    %c0_71 = arith.constant 0 : index
    %c20_72 = arith.constant 20 : index
    %88 = vector.load %arg6[%c0_70, %c0_71, %c20_72] : memref<1x16x362xf32, #tpu.memory_space<vmem>>, vector<1x16x324xf32>
    %89 = vector.shape_cast %88 : vector<1x16x324xf32> to vector<16x324xf32>
    %c5 = arith.constant 5 : index
    %c0_73 = arith.constant 0 : index
    %c0_74 = arith.constant 0 : index
    %90 = vector.load %arg2[%c5, %c0_73, %c0_74] : memref<9x2x16xf32, #tpu.memory_space<vmem>>, vector<1x2x16xf32>
    %91 = vector.shape_cast %90 : vector<1x2x16xf32> to vector<2x16xf32>
    %cst_75 = arith.constant dense<0.000000e+00> : vector<2x324xf32>
    %92 = tpu.matmul %91, %89, %cst_75 {dimension_numbers = #tpu.dot_dimension_numbers<[1], [0], [0], [1], [0, 0, 1, 1], [], []>} : vector<2x16xf32>, vector<16x324xf32>, vector<2x324xf32> -> vector<2x324xf32>
    %93 = arith.addf %87, %92 : vector<2x324xf32>
    %c0_76 = arith.constant 0 : index
    %c0_77 = arith.constant 0 : index
    %c36_78 = arith.constant 36 : index
    %94 = vector.load %arg6[%c0_76, %c0_77, %c36_78] : memref<1x16x362xf32, #tpu.memory_space<vmem>>, vector<1x16x324xf32>
    %95 = vector.shape_cast %94 : vector<1x16x324xf32> to vector<16x324xf32>
    %c6 = arith.constant 6 : index
    %c0_79 = arith.constant 0 : index
    %c0_80 = arith.constant 0 : index
    %96 = vector.load %arg2[%c6, %c0_79, %c0_80] : memref<9x2x16xf32, #tpu.memory_space<vmem>>, vector<1x2x16xf32>
    %97 = vector.shape_cast %96 : vector<1x2x16xf32> to vector<2x16xf32>
    %cst_81 = arith.constant dense<0.000000e+00> : vector<2x324xf32>
    %98 = tpu.matmul %97, %95, %cst_81 {dimension_numbers = #tpu.dot_dimension_numbers<[1], [0], [0], [1], [0, 0, 1, 1], [], []>} : vector<2x16xf32>, vector<16x324xf32>, vector<2x324xf32> -> vector<2x324xf32>
    %99 = arith.addf %93, %98 : vector<2x324xf32>
    %c0_82 = arith.constant 0 : index
    %c0_83 = arith.constant 0 : index
    %c37_84 = arith.constant 37 : index
    %100 = vector.load %arg6[%c0_82, %c0_83, %c37_84] : memref<1x16x362xf32, #tpu.memory_space<vmem>>, vector<1x16x324xf32>
    %101 = vector.shape_cast %100 : vector<1x16x324xf32> to vector<16x324xf32>
    %c7 = arith.constant 7 : index
    %c0_85 = arith.constant 0 : index
    %c0_86 = arith.constant 0 : index
    %102 = vector.load %arg2[%c7, %c0_85, %c0_86] : memref<9x2x16xf32, #tpu.memory_space<vmem>>, vector<1x2x16xf32>
    %103 = vector.shape_cast %102 : vector<1x2x16xf32> to vector<2x16xf32>
    %cst_87 = arith.constant dense<0.000000e+00> : vector<2x324xf32>
    %104 = tpu.matmul %103, %101, %cst_87 {dimension_numbers = #tpu.dot_dimension_numbers<[1], [0], [0], [1], [0, 0, 1, 1], [], []>} : vector<2x16xf32>, vector<16x324xf32>, vector<2x324xf32> -> vector<2x324xf32>
    %105 = arith.addf %99, %104 : vector<2x324xf32>
    %c0_88 = arith.constant 0 : index
    %c0_89 = arith.constant 0 : index
    %c38_90 = arith.constant 38 : index
    %106 = vector.load %arg6[%c0_88, %c0_89, %c38_90] : memref<1x16x362xf32, #tpu.memory_space<vmem>>, vector<1x16x324xf32>
    %107 = vector.shape_cast %106 : vector<1x16x324xf32> to vector<16x324xf32>
    %c8 = arith.constant 8 : index
    %c0_91 = arith.constant 0 : index
    %c0_92 = arith.constant 0 : index
    %108 = vector.load %arg2[%c8, %c0_91, %c0_92] : memref<9x2x16xf32, #tpu.memory_space<vmem>>, vector<1x2x16xf32>
    %109 = vector.shape_cast %108 : vector<1x2x16xf32> to vector<2x16xf32>
    %cst_93 = arith.constant dense<0.000000e+00> : vector<2x324xf32>
    %110 = tpu.matmul %109, %107, %cst_93 {dimension_numbers = #tpu.dot_dimension_numbers<[1], [0], [0], [1], [0, 0, 1, 1], [], []>} : vector<2x16xf32>, vector<16x324xf32>, vector<2x324xf32> -> vector<2x324xf32>
    %111 = arith.addf %105, %110 : vector<2x324xf32>
    %c0_94 = arith.constant 0 : index
    %c0_95 = arith.constant 0 : index
    %112 = vector.load %arg3[%c0_94, %c0_95] : memref<2x1xf32, #tpu.memory_space<vmem>>, vector<2x1xf32>
    %113 = vector.broadcast %112 : vector<2x1xf32> to vector<2x324xf32>
    %114 = arith.addf %111, %113 : vector<2x324xf32>
    %cst_96 = arith.constant 0.000000e+00 : f32
    %115 = vector.broadcast %cst_96 : f32 to vector<2x324xf32>
    %116 = arith.maximumf %114, %115 : vector<2x324xf32>
    %cst_97 = arith.constant 0.000000e+00 : f32
    %117 = vector.broadcast %cst_97 : f32 to vector<22x362xf32>
    %c0_98 = arith.constant 0 : index
    %c0_99 = arith.constant 0 : index
    %118 = vector.load %arg13[%c0_98, %c0_99] : memref<22x362xf32, #tpu.memory_space<vmem>>, vector<22x362xf32>
    tpu.vector_store %arg13[%c0_98, %c0_99], %117 {strides = array<i32>} : memref<22x362xf32, #tpu.memory_space<vmem>>, vector<22x362xf32>,
    %119 = vector.broadcast %0 : vector<1x324xf32> to vector<2x324xf32>
    %120 = arith.mulf %116, %119 : vector<2x324xf32>
    %121 = vector.broadcast %0 : vector<1x324xf32> to vector<9x324xf32>
    %122 = arith.mulf %53, %121 : vector<9x324xf32>
    %c0_100 = arith.constant 0 : index
    %c0_101 = arith.constant 0 : index
    %c0_102 = arith.constant 0 : index
    %123 = vector.load %arg8[%c0_100, %c0_101, %c0_102] : memref<1x11x324xf32, #tpu.memory_space<vmem>>, vector<1x11x324xf32>
    %124 = vector.shape_cast %123 : vector<1x11x324xf32> to vector<11x324xf32>
    %125 = tpu.concatenate %120, %122, %124 in 0 : vector<2x324xf32>, vector<9x324xf32>, vector<11x324xf32> -> vector<22x324xf32>
    %c0_103 = arith.constant 0 : index
    %c19_104 = arith.constant 19 : index
    %126 = vector.load %arg13[%c0_103, %c19_104] : memref<22x362xf32, #tpu.memory_space<vmem>>, vector<22x324xf32>
    tpu.vector_store %arg13[%c0_103, %c19_104], %125 {strides = array<i32>} : memref<22x362xf32, #tpu.memory_space<vmem>>, vector<22x324xf32>,
    %cst_105 = arith.constant 0.000000e+00 : f32
    %127 = vector.broadcast %cst_105 : f32 to vector<44x324xf32>
    %c0_106 = arith.constant 0 : index
    %c0_107 = arith.constant 0 : index
    %128 = vector.load %arg13[%c0_106, %c0_107] : memref<22x362xf32, #tpu.memory_space<vmem>>, vector<22x324xf32>
    %c0_108 = arith.constant 0 : index
    %c0_109 = arith.constant 0 : index
    %c0_110 = arith.constant 0 : index
    %129 = vector.load %arg4[%c0_108, %c0_109, %c0_110] : memref<9x44x22xf32, #tpu.memory_space<vmem>>, vector<1x44x22xf32>
    %130 = vector.shape_cast %129 : vector<1x44x22xf32> to vector<44x22xf32>
    %cst_111 = arith.constant dense<0.000000e+00> : vector<44x324xf32>
    %131 = tpu.matmul %130, %128, %cst_111 {dimension_numbers = #tpu.dot_dimension_numbers<[1], [0], [0], [1], [0, 0, 1, 1], [], []>} : vector<44x22xf32>, vector<22x324xf32>, vector<44x324xf32> -> vector<44x324xf32>
    %132 = arith.addf %127, %131 : vector<44x324xf32>
    %c0_112 = arith.constant 0 : index
    %c1_113 = arith.constant 1 : index
    %133 = vector.load %arg13[%c0_112, %c1_113] : memref<22x362xf32, #tpu.memory_space<vmem>>, vector<22x324xf32>
    %c1_114 = arith.constant 1 : index
    %c0_115 = arith.constant 0 : index
    %c0_116 = arith.constant 0 : index
    %134 = vector.load %arg4[%c1_114, %c0_115, %c0_116] : memref<9x44x22xf32, #tpu.memory_space<vmem>>, vector<1x44x22xf32>
    %135 = vector.shape_cast %134 : vector<1x44x22xf32> to vector<44x22xf32>
    %cst_117 = arith.constant dense<0.000000e+00> : vector<44x324xf32>
    %136 = tpu.matmul %135, %133, %cst_117 {dimension_numbers = #tpu.dot_dimension_numbers<[1], [0], [0], [1], [0, 0, 1, 1], [], []>} : vector<44x22xf32>, vector<22x324xf32>, vector<44x324xf32> -> vector<44x324xf32>
    %137 = arith.addf %132, %136 : vector<44x324xf32>
    %c0_118 = arith.constant 0 : index
    %c2_119 = arith.constant 2 : index
    %138 = vector.load %arg13[%c0_118, %c2_119] : memref<22x362xf32, #tpu.memory_space<vmem>>, vector<22x324xf32>
    %c2_120 = arith.constant 2 : index
    %c0_121 = arith.constant 0 : index
    %c0_122 = arith.constant 0 : index
    %139 = vector.load %arg4[%c2_120, %c0_121, %c0_122] : memref<9x44x22xf32, #tpu.memory_space<vmem>>, vector<1x44x22xf32>
    %140 = vector.shape_cast %139 : vector<1x44x22xf32> to vector<44x22xf32>
    %cst_123 = arith.constant dense<0.000000e+00> : vector<44x324xf32>
    %141 = tpu.matmul %140, %138, %cst_123 {dimension_numbers = #tpu.dot_dimension_numbers<[1], [0], [0], [1], [0, 0, 1, 1], [], []>} : vector<44x22xf32>, vector<22x324xf32>, vector<44x324xf32> -> vector<44x324xf32>
    %142 = arith.addf %137, %141 : vector<44x324xf32>
    %c0_124 = arith.constant 0 : index
    %c18_125 = arith.constant 18 : index
    %143 = vector.load %arg13[%c0_124, %c18_125] : memref<22x362xf32, #tpu.memory_space<vmem>>, vector<22x324xf32>
    %c3_126 = arith.constant 3 : index
    %c0_127 = arith.constant 0 : index
    %c0_128 = arith.constant 0 : index
    %144 = vector.load %arg4[%c3_126, %c0_127, %c0_128] : memref<9x44x22xf32, #tpu.memory_space<vmem>>, vector<1x44x22xf32>
    %145 = vector.shape_cast %144 : vector<1x44x22xf32> to vector<44x22xf32>
    %cst_129 = arith.constant dense<0.000000e+00> : vector<44x324xf32>
    %146 = tpu.matmul %145, %143, %cst_129 {dimension_numbers = #tpu.dot_dimension_numbers<[1], [0], [0], [1], [0, 0, 1, 1], [], []>} : vector<44x22xf32>, vector<22x324xf32>, vector<44x324xf32> -> vector<44x324xf32>
    %147 = arith.addf %142, %146 : vector<44x324xf32>
    %c0_130 = arith.constant 0 : index
    %c19_131 = arith.constant 19 : index
    %148 = vector.load %arg13[%c0_130, %c19_131] : memref<22x362xf32, #tpu.memory_space<vmem>>, vector<22x324xf32>
    %c4_132 = arith.constant 4 : index
    %c0_133 = arith.constant 0 : index
    %c0_134 = arith.constant 0 : index
    %149 = vector.load %arg4[%c4_132, %c0_133, %c0_134] : memref<9x44x22xf32, #tpu.memory_space<vmem>>, vector<1x44x22xf32>
    %150 = vector.shape_cast %149 : vector<1x44x22xf32> to vector<44x22xf32>
    %cst_135 = arith.constant dense<0.000000e+00> : vector<44x324xf32>
    %151 = tpu.matmul %150, %148, %cst_135 {dimension_numbers = #tpu.dot_dimension_numbers<[1], [0], [0], [1], [0, 0, 1, 1], [], []>} : vector<44x22xf32>, vector<22x324xf32>, vector<44x324xf32> -> vector<44x324xf32>
    %152 = arith.addf %147, %151 : vector<44x324xf32>
    %c0_136 = arith.constant 0 : index
    %c20_137 = arith.constant 20 : index
    %153 = vector.load %arg13[%c0_136, %c20_137] : memref<22x362xf32, #tpu.memory_space<vmem>>, vector<22x324xf32>
    %c5_138 = arith.constant 5 : index
    %c0_139 = arith.constant 0 : index
    %c0_140 = arith.constant 0 : index
    %154 = vector.load %arg4[%c5_138, %c0_139, %c0_140] : memref<9x44x22xf32, #tpu.memory_space<vmem>>, vector<1x44x22xf32>
    %155 = vector.shape_cast %154 : vector<1x44x22xf32> to vector<44x22xf32>
    %cst_141 = arith.constant dense<0.000000e+00> : vector<44x324xf32>
    %156 = tpu.matmul %155, %153, %cst_141 {dimension_numbers = #tpu.dot_dimension_numbers<[1], [0], [0], [1], [0, 0, 1, 1], [], []>} : vector<44x22xf32>, vector<22x324xf32>, vector<44x324xf32> -> vector<44x324xf32>
    %157 = arith.addf %152, %156 : vector<44x324xf32>
    %c0_142 = arith.constant 0 : index
    %c36_143 = arith.constant 36 : index
    %158 = vector.load %arg13[%c0_142, %c36_143] : memref<22x362xf32, #tpu.memory_space<vmem>>, vector<22x324xf32>
    %c6_144 = arith.constant 6 : index
    %c0_145 = arith.constant 0 : index
    %c0_146 = arith.constant 0 : index
    %159 = vector.load %arg4[%c6_144, %c0_145, %c0_146] : memref<9x44x22xf32, #tpu.memory_space<vmem>>, vector<1x44x22xf32>
    %160 = vector.shape_cast %159 : vector<1x44x22xf32> to vector<44x22xf32>
    %cst_147 = arith.constant dense<0.000000e+00> : vector<44x324xf32>
    %161 = tpu.matmul %160, %158, %cst_147 {dimension_numbers = #tpu.dot_dimension_numbers<[1], [0], [0], [1], [0, 0, 1, 1], [], []>} : vector<44x22xf32>, vector<22x324xf32>, vector<44x324xf32> -> vector<44x324xf32>
    %162 = arith.addf %157, %161 : vector<44x324xf32>
    %c0_148 = arith.constant 0 : index
    %c37_149 = arith.constant 37 : index
    %163 = vector.load %arg13[%c0_148, %c37_149] : memref<22x362xf32, #tpu.memory_space<vmem>>, vector<22x324xf32>
    %c7_150 = arith.constant 7 : index
    %c0_151 = arith.constant 0 : index
    %c0_152 = arith.constant 0 : index
    %164 = vector.load %arg4[%c7_150, %c0_151, %c0_152] : memref<9x44x22xf32, #tpu.memory_space<vmem>>, vector<1x44x22xf32>
    %165 = vector.shape_cast %164 : vector<1x44x22xf32> to vector<44x22xf32>
    %cst_153 = arith.constant dense<0.000000e+00> : vector<44x324xf32>
    %166 = tpu.matmul %165, %163, %cst_153 {dimension_numbers = #tpu.dot_dimension_numbers<[1], [0], [0], [1], [0, 0, 1, 1], [], []>} : vector<44x22xf32>, vector<22x324xf32>, vector<44x324xf32> -> vector<44x324xf32>
    %167 = arith.addf %162, %166 : vector<44x324xf32>
    %c0_154 = arith.constant 0 : index
    %c38_155 = arith.constant 38 : index
    %168 = vector.load %arg13[%c0_154, %c38_155] : memref<22x362xf32, #tpu.memory_space<vmem>>, vector<22x324xf32>
    %c8_156 = arith.constant 8 : index
    %c0_157 = arith.constant 0 : index
    %c0_158 = arith.constant 0 : index
    %169 = vector.load %arg4[%c8_156, %c0_157, %c0_158] : memref<9x44x22xf32, #tpu.memory_space<vmem>>, vector<1x44x22xf32>
    %170 = vector.shape_cast %169 : vector<1x44x22xf32> to vector<44x22xf32>
    %cst_159 = arith.constant dense<0.000000e+00> : vector<44x324xf32>
    %171 = tpu.matmul %170, %168, %cst_159 {dimension_numbers = #tpu.dot_dimension_numbers<[1], [0], [0], [1], [0, 0, 1, 1], [], []>} : vector<44x22xf32>, vector<22x324xf32>, vector<44x324xf32> -> vector<44x324xf32>
    %172 = arith.addf %167, %171 : vector<44x324xf32>
    %c0_160 = arith.constant 0 : index
    %c0_161 = arith.constant 0 : index
    %173 = vector.load %arg5[%c0_160, %c0_161] : memref<44x1xf32, #tpu.memory_space<vmem>>, vector<44x1xf32>
    %174 = vector.broadcast %173 : vector<44x1xf32> to vector<44x324xf32>
    %175 = arith.addf %172, %174 : vector<44x324xf32>
    %176 = vector.extract_strided_slice %175 {offsets = [0, 0], sizes = [11, 324], strides = [1, 1]} : vector<44x324xf32> to vector<11x324xf32>
    %177 = arith.negf %176 : vector<11x324xf32>
    %178 = math.exp %177 : vector<11x324xf32>
    %cst_162 = arith.constant 1.000000e+00 : f32
    %179 = vector.broadcast %cst_162 : f32 to vector<11x324xf32>
    %180 = arith.addf %179, %178 : vector<11x324xf32>
    %181 = arith.divf %179, %180 : vector<11x324xf32>
    %182 = vector.extract_strided_slice %175 {offsets = [11, 0], sizes = [11, 324], strides = [1, 1]} : vector<44x324xf32> to vector<11x324xf32>
    %183 = arith.negf %182 : vector<11x324xf32>
    %184 = math.exp %183 : vector<11x324xf32>
    %cst_163 = arith.constant 1.000000e+00 : f32
    %185 = vector.broadcast %cst_163 : f32 to vector<11x324xf32>
    %186 = arith.addf %185, %184 : vector<11x324xf32>
    %187 = arith.divf %185, %186 : vector<11x324xf32>
    %188 = vector.extract_strided_slice %175 {offsets = [22, 0], sizes = [11, 324], strides = [1, 1]} : vector<44x324xf32> to vector<11x324xf32>
    %189 = arith.negf %188 : vector<11x324xf32>
    %190 = math.exp %189 : vector<11x324xf32>
    %cst_164 = arith.constant 1.000000e+00 : f32
    %191 = vector.broadcast %cst_164 : f32 to vector<11x324xf32>
    %192 = arith.addf %191, %190 : vector<11x324xf32>
    %193 = arith.divf %191, %192 : vector<11x324xf32>
    %194 = vector.extract_strided_slice %175 {offsets = [33, 0], sizes = [11, 324], strides = [1, 1]} : vector<44x324xf32> to vector<11x324xf32>
    %195 = math.tanh %194 : vector<11x324xf32>
    %c0_165 = arith.constant 0 : index
    %c0_166 = arith.constant 0 : index
    %c0_167 = arith.constant 0 : index
    %196 = vector.load %arg9[%c0_165, %c0_166, %c0_167] : memref<1x11x324xf32, #tpu.memory_space<vmem>>, vector<1x11x324xf32>
    %197 = vector.shape_cast %196 : vector<1x11x324xf32> to vector<11x324xf32>
    %198 = arith.mulf %187, %197 : vector<11x324xf32>
    %199 = arith.mulf %181, %195 : vector<11x324xf32>
    %200 = arith.addf %198, %199 : vector<11x324xf32>
    %c0_168 = arith.constant 0 : index
    %c0_169 = arith.constant 0 : index
    %c0_170 = arith.constant 0 : index
    %201 = vector.load %arg12[%c0_168, %c0_169, %c0_170] : memref<1x11x324xf32, #tpu.memory_space<vmem>>, vector<1x11x324xf32>
    %202 = vector.shape_cast %201 : vector<1x11x324xf32> to vector<11x324xf32>
    %203 = vector.shape_cast %200 : vector<11x324xf32> to vector<1x11x324xf32>
    tpu.vector_store %arg12[%c0_168, %c0_169, %c0_170], %203 {strides = array<i32>} : memref<1x11x324xf32, #tpu.memory_space<vmem>>, vector<1x11x324xf32>,
    %204 = math.tanh %200 : vector<11x324xf32>
    %205 = arith.mulf %193, %204 : vector<11x324xf32>
    %c0_171 = arith.constant 0 : index
    %c0_172 = arith.constant 0 : index
    %c0_173 = arith.constant 0 : index
    %206 = vector.load %arg11[%c0_171, %c0_172, %c0_173] : memref<1x11x324xf32, #tpu.memory_space<vmem>>, vector<1x11x324xf32>
    %207 = vector.shape_cast %206 : vector<1x11x324xf32> to vector<11x324xf32>
    %208 = vector.shape_cast %205 : vector<11x324xf32> to vector<1x11x324xf32>
    tpu.vector_store %arg11[%c0_171, %c0_172, %c0_173], %208 {strides = array<i32>} : memref<1x11x324xf32, #tpu.memory_space<vmem>>, vector<1x11x324xf32>,
    return
  }
  func.func @transform_0(%arg0: i32) -> (i32, i32) {
    %c0_i32 = arith.constant 0 : i32
    %c0_i32_0 = arith.constant 0 : i32
    %c0_i32_1 = arith.constant 0 : i32
    return %c0_i32, %c0_i32_0 : i32, i32
  }
  func.func @transform_1(%arg0: i32) -> (i32, i32, i32) {
    %c0_i32 = arith.constant 0 : i32
    %c0_i32_0 = arith.constant 0 : i32
    %c0_i32_1 = arith.constant 0 : i32
    %c0_i32_2 = arith.constant 0 : i32
    return %c0_i32, %c0_i32_0, %c0_i32_1 : i32, i32, i32
  }
  func.func @transform_2(%arg0: i32) -> (i32, i32) {
    %c0_i32 = arith.constant 0 : i32
    %c0_i32_0 = arith.constant 0 : i32
    %c0_i32_1 = arith.constant 0 : i32
    return %c0_i32, %c0_i32_0 : i32, i32
  }
  func.func @transform_3(%arg0: i32) -> (i32, i32, i32) {
    %c0_i32 = arith.constant 0 : i32
    %c0_i32_0 = arith.constant 0 : i32
    %c0_i32_1 = arith.constant 0 : i32
    %c0_i32_2 = arith.constant 0 : i32
    return %c0_i32, %c0_i32_0, %c0_i32_1 : i32, i32, i32
  }
  func.func @transform_4(%arg0: i32) -> (i32, i32) {
    %c0_i32 = arith.constant 0 : i32
    %c0_i32_0 = arith.constant 0 : i32
    %c0_i32_1 = arith.constant 0 : i32
    return %c0_i32, %c0_i32_0 : i32, i32
  }
  func.func @transform_5(%arg0: i32) -> (i32, i32, i32) {
    %c0_i32 = arith.constant 0 : i32
    %c0_i32_0 = arith.constant 0 : i32
    %c0_i32_1 = arith.constant 0 : i32
    return %arg0, %c0_i32, %c0_i32_0 : i32, i32, i32
  }
  func.func @transform_6(%arg0: i32) -> (i32, i32, i32) {
    %c0_i32 = arith.constant 0 : i32
    %c0_i32_0 = arith.constant 0 : i32
    %c0_i32_1 = arith.constant 0 : i32
    return %arg0, %c0_i32, %c0_i32_0 : i32, i32, i32
  }
  func.func @transform_7(%arg0: i32) -> (i32, i32, i32) {
    %c0_i32 = arith.constant 0 : i32
    %c0_i32_0 = arith.constant 0 : i32
    %c0_i32_1 = arith.constant 0 : i32
    return %arg0, %c0_i32, %c0_i32_0 : i32, i32, i32
  }
  func.func @transform_8(%arg0: i32) -> (i32, i32, i32) {
    %c0_i32 = arith.constant 0 : i32
    %c0_i32_0 = arith.constant 0 : i32
    %c0_i32_1 = arith.constant 0 : i32
    return %arg0, %c0_i32, %c0_i32_0 : i32, i32, i32
  }
  func.func @transform_9(%arg0: i32) -> (i32, i32, i32) {
    %c0_i32 = arith.constant 0 : i32
    %c0_i32_0 = arith.constant 0 : i32
    %c0_i32_1 = arith.constant 0 : i32
    return %arg0, %c0_i32, %c0_i32_0 : i32, i32, i32
  }
  func.func @transform_10(%arg0: i32) -> (i32, i32, i32) {
    %c0_i32 = arith.constant 0 : i32
    %c0_i32_0 = arith.constant 0 : i32
    %c0_i32_1 = arith.constant 0 : i32
    return %arg0, %c0_i32, %c0_i32_0 : i32, i32, i32
  }
  func.func @transform_11(%arg0: i32) -> (i32, i32, i32) {
    %c0_i32 = arith.constant 0 : i32
    %c0_i32_0 = arith.constant 0 : i32
    %c0_i32_1 = arith.constant 0 : i32
    return %arg0, %c0_i32, %c0_i32_0 : i32, i32, i32
  }
}

</mosaic_0001>

<bundles_post_ra>
// kernel: _level_forward.1
= control target key start
LH: loop header
LB: loop body
LE: loop exit
PB: predicated region body
PF: predicated region fallthrough
CT: control target
= control target key end

     0   :  { %s6949_s17 = smov 0   ;;  %s8578_s0 = inlined_call_operand.vmem [shape: f32[1,324], index: 0, kind: input, shape index: {}]   ;;  %s8579_s1 = inlined_call_operand.vmem [shape: f32[9,2,16], index: 1, kind: input, shape index: {}]   ;;  %s8580_s2 = inlined_call_operand.vmem [shape: f32[2,1], index: 2, kind: input, shape index: {}]   ;;  %s8581_s3 = inlined_call_operand.vmem [shape: f32[9,44,22], index: 3, kind: input, shape index: {}]   ;;  %s8582_s4 = inlined_call_operand.vmem [shape: f32[44,1], index: 4, kind: input, shape index: {}]   ;;  %s8583_s5 = inlined_call_operand.vmem [shape: f32[2,16,362], index: 5, kind: input, shape index: {}]   ;;  %s8584_s6 = inlined_call_operand.vmem [shape: f32[2,16,362], index: 6, kind: input, shape index: {}]   ;;  %s8585_s7 = inlined_call_operand.vmem [shape: f32[2,11,324], index: 7, kind: input, shape index: {}]   ;;  %s8586_s8 = inlined_call_operand.vmem [shape: f32[2,11,324], index: 8, kind: input, shape index: {}]   ;;  %s8587_s9 = inlined_call_operand.vmem [shape: f32[2,9,324], index: 9, kind: output, shape index: {0}]   ;;  %s8588_s10 = inlined_call_operand.vmem [shape: f32[2,11,324], index: 10, kind: output, shape index: {1}]   ;;  %s8589_s11 = inlined_call_operand.vmem [shape: f32[2,11,324], index: 11, kind: output, shape index: {2}]  }
   0x1 LB: > { %s5666_s18 = sadd.s32 4294967295, %s6870_s17   ;;  %p5670_p0 = scmp.ge.s32.totalorder %s6870_s17, 1  ;;  %s6870_s17 = sphi %s6949_s17, %s22_s17  }
   0x2   : > { %p372_p1 = scmp.lt.s32.totalorder %s6870_s17, 3 }
   0x4   : > { %p373_p2 = pnand %p5670_p0, %p372_p1 }
   0x5   : > { %p437_p3 = scmp.lt.s32.totalorder (!%p373_p2), %s5666_s18, 1  ;;  %v6872_v0 = vmov (!%p373_p2), 0.0   ;;  %s6873_s23 = smov (!%p373_p2), 126   ;;  %v7004_v12 = vld [vmem:[%s8579_s1] sm:$0x3] (!%p373_p2)  ;;  %vm1075_vm0 = vcmask (!%p373_p2), 130048   ;;  %v2590_v43 = vlaneseq (!%p373_p2) }
   0x6   : > { %376 = sbr.rel (%p373_p2) target bundleno = 1117 (0x45d), region = 56  ;;  %1287 = vmatprep.mubr.f32.mxu0 (!%p373_p2), %v6872_v0  ;;  %2578 = vst [vmem:[#allocation2] sm:$0xff] (!%p373_p2), %v6872_v0  ;;  %2582 = vst [vmem:[#allocation2 + $0x18] sm:$0xff] (!%p373_p2), %v6872_v0  ;;  %1143 = vmatprep.mubr.f32.mxu1 (!%p373_p2), %v6872_v0  ;;  %s6874_s26 = smov (!%p373_p2), 110   ;;  %vm1378_vm1 = vcmask (!%p373_p2), 1031168   ;;  %vm860_vm2 = vcmask (!%p373_p2), 900096  }
   0x7   : > { %2585 = vst [vmem:[#allocation2 + $0x30] sm:$0x3f] (!%p373_p2), %v6872_v0  ;;  %2586 = vst [vmem:[#allocation2 + $0x38] sm:$0x3f] (!%p373_p2), %v6872_v0  ;;  %s6875_s27 = smov (!%p373_p2), 127   ;;  %s6876_s28 = smov (!%p373_p2), 109  }
   0x8   : > { %s6877_s29 = smov (!%p373_p2), 108   ;;  %s6878_s30 = smov (!%p373_p2), 92   ;;  %v7130_v44 = vld [vmem:[%s8579_s1 + $0x4] sm:$0x3] (!%p373_p2)  ;;  %vm752_vm3 = vcmask (!%p373_p2), 1039360   ;;  %v6886_v51 = vmov (!%p373_p2), 0  }
   0x9   : > { %s6879_s12 = smov (!%p373_p2), 91   ;;  %s6880_s13 = smov (!%p373_p2), 90   ;;  %6651 = vset.pattern.permute.xlu1 (!%p373_p2), %v6886_v51  ;;  %6772 = vset.pattern.permute.xlu0 (!%p373_p2), %v6886_v51  ;;  %v7144_v58 = vshrl.u32 (!%p373_p2), %v2590_v43, 7  ;;  %vm914_vm4 = vcmask (!%p373_p2), 891904   ;;  %vm1892_vm5 = vcmask (!%p373_p2), 883712   ;;  %vm6888_vm6 = vmmov (!%p373_p2), 0  }
   0xa   : > { %s6882_s20 = smov (!%p373_p2), 18   ;;  %s6883_s21 = smov (!%p373_p2), 17   ;;  %vm2064_vm7 = vcmask (!%p373_p2), 752640   ;;  %vm8592_vm8 = vcmask (!%p373_p2), 744448   ;;  %vm8590_vm9 = vcmask (!%p373_p2), 736256   ;;  %vm537_vm10 = vcmask (!%p373_p2), 711680  }
   0xb   : > { %s6884_s24 = smov (!%p373_p2), 1   ;;  %s6885_s25 = smov (!%p373_p2), 111   ;;  %vm520_vm11 = vcmask (!%p373_p2), 1047704   ;;  %vm503_vm12 = vcmask (!%p373_p2), 154624   ;;  %vm559_vm13 = vcmask (!%p373_p2), 146432   ;;  %vm613_vm14 = vcmask (!%p373_p2), 138240  }
   0xc   : > { %vm667_vm15 = vcmask (!%p373_p2), 7168  }
   0xd   : > { %s8609_s18 = smov (!%p437_p3, %s5666_s18), 1 }
   0xe   : > { %s6963_s19 = smul.u32 48, %s8609_s18  ;;  %s6881_s18 = smov 19  }
  0x10   : > { %s6969_s22 = scalar_lea.vmem %s8583_s5, %s6963_s19  ;;  %s446_s16 = scalar_lea.vmem %s8584_s6, %s6963_s19 }
  0x11   : > { %v6972_v1 = vld [vmem:[%s6969_s22 + $0x8] sm:$0xff]  ;;  %v6975_v2 = vld [vmem:[%s6969_s22 + $0x10] sm:$0xff]  ;;  %v6978_v3 = vld [vmem:[%s6969_s22] sm:$0xff]  ;;  %s7578_s14 = scalar_lea.vmem %s8585_s7, %s6963_s19  ;;  %s8294_s15 = scalar_lea.vmem %s8587_s9, %s6963_s19 }
  0x12   : > { %v6531_v4 = vpack.i.bf16 %v6975_v2, %v6972_v1  ;;  %v6983_v5 = vld [vmem:[%s6969_s22 + $0x18] sm:$0xff]  ;;  %v6986_v6 = vld [vmem:[%s6969_s22 + $0x20] sm:$0xff]  ;;  %v6989_v7 = vld [vmem:[%s6969_s22 + $0x28] sm:$0xff] }
  0x13   : > { %v6541_v8 = vpack.i.bf16 %v6983_v5, %v6978_v3  ;;  %v6217_v9 = vpack.c.bf16 %v6986_v6, %v6972_v1  ;;  %v6219_v10 = vpack.c.bf16 %v6983_v5, %v6978_v3  ;;  %v6536_v11 = vpack.i.bf16 %v6989_v7, %v6986_v6  ;;  %v7035_v13 = vld [vmem:[%s446_s16 + $0x8] sm:$0xff]  ;;  %v7037_v14 = vld [vmem:[%s446_s16 + $0x10] sm:$0xff]  ;;  %v7043_v15 = vld [vmem:[%s446_s16 + $0x20] sm:$0xff] }
  0x14   : > { %6532 = vrot.lane.b32.xlu0 %v6531_v4, %s6873_s23  ;;  %v7045_v16 = vld [vmem:[%s446_s16 + $0x28] sm:$0xff]  ;;  %v7055_v17 = vld [vmem:[%s446_s16] sm:$0xff]  ;;  %v7057_v18 = vld [vmem:[%s446_s16 + $0x18] sm:$0xff]  ;;  %s8541_s16 = scalar_lea.vmem %s8589_s11, %s6963_s19 }
  0x15   : > { %6542 = vrot.lane.b32.xlu1 %v6541_v8, %s6873_s23  ;;  %6218 = vmatprep.subr.bf16.mxu0 %v6217_v9  ;;  %v2592_v9 = vsub.s32 0, %v7144_v58 }
  0x16   : > { %6220 = vmatpush1.bf16.msra.mxu0 %v6219_v10 }
  0x18   : > { %6537 = vrot.lane.b32.xlu0 %v6536_v11, %s6873_s23 }
  0x19   : > { %6547 = vrot.lane.b32.xlu1 %v6531_v4, %s6874_s26  ;;  %5681 = vmatmul.mubr.msk.f32.vlgmr.msra.gmra.mrb[0].mxu0 %vm1075_vm0, %v7004_v12 }
  0x1a   : > { %1456 = vmatprep.mubr.f32.mxu0 %v6872_v0 }
  0x1c   : > { %6552 = vrot.lane.b32.xlu0 %v6536_v11, %s6874_s26 }
  0x1d   : > { %6557 = vrot.lane.b32.xlu1 %v6541_v8, %s6874_s26 }
  0x20   : > { %6562 = vrot.lane.b32.xlu0 %v6531_v4, %s6875_s27 }
  0x21   : > { %6567 = vrot.lane.b32.xlu1 %v6536_v11, %s6875_s27 }
  0x24   : > { %6572 = vrot.lane.b32.xlu0 %v6541_v8, %s6875_s27 }
  0x25   : > { %6577 = vrot.lane.b32.xlu1 %v6531_v4, %s6876_s28 }
  0x28   : > { %6582 = vrot.lane.b32.xlu0 %v6536_v11, %s6876_s28 }
  0x29   : > { %6587 = vrot.lane.b32.xlu1 %v6541_v8, %s6876_s28 }
  0x2c   : > { %6592 = vrot.lane.b32.xlu0 %v6531_v4, %s6877_s29 }
  0x2d   : > { %6597 = vrot.lane.b32.xlu1 %v6536_v11, %s6877_s29 }
  0x30   : > { %6602 = vrot.lane.b32.xlu0 %v6541_v8, %s6877_s29 }
  0x31   : > { %6607 = vrot.lane.b32.xlu1 %v6531_v4, %s6878_s30 }
  0x34   : > { %6612 = vrot.lane.b32.xlu0 %v6536_v11, %s6878_s30 }
  0x35   : > { %6617 = vrot.lane.b32.xlu1 %v6541_v8, %s6878_s30 }
  0x38   : > { %6622 = vrot.lane.b32.xlu0 %v6531_v4, %s6879_s12 }
  0x39   : > { %6627 = vrot.lane.b32.xlu1 %v6536_v11, %s6879_s12 }
  0x3c   : > { %6632 = vrot.lane.b32.xlu0 %v6541_v8, %s6879_s12 }
  0x3d   : > { %6637 = vrot.lane.b32.xlu1 %v6531_v4, %s6880_s13 }
  0x40   : > { %6642 = vrot.lane.b32.xlu0 %v6536_v11, %s6880_s13 }
  0x41   : > { %6647 = vrot.lane.b32.xlu1 %v6541_v8, %s6880_s13 }
  0x44   : > { %493 = vrot.lane.b32.xlu0 %v7035_v13, %s6881_s18 }
  0x45   : > { %495 = vrot.lane.b32.xlu1 %v7037_v14, %s6881_s18 }
  0x48   : > { %499 = vrot.lane.b32.xlu0 %v7043_v15, %s6881_s18 }
  0x49   : > { %501 = vrot.lane.b32.xlu1 %v7045_v16, %s6881_s18 }
  0x4c   : > { %549 = vrot.lane.b32.xlu0 %v7035_v13, %s6882_s20 }
  0x4d   : > { %551 = vrot.lane.b32.xlu1 %v7037_v14, %s6882_s20 }
  0x50   : > { %555 = vrot.lane.b32.xlu0 %v7043_v15, %s6882_s20 }
  0x51   : > { %557 = vrot.lane.b32.xlu1 %v7045_v16, %s6882_s20 }
  0x54   : > { %491 = vrot.lane.b32.xlu0 %v7055_v17, %s6881_s18 }
  0x55   : > { %497 = vrot.lane.b32.xlu1 %v7057_v18, %s6881_s18 }
  0x58   : > { %547 = vrot.lane.b32.xlu0 %v7055_v17, %s6882_s20 }
  0x59   : > { %553 = vrot.lane.b32.xlu1 %v7057_v18, %s6882_s20 }
  0x5c   : > { %603 = vrot.lane.b32.xlu0 %v7035_v13, %s6883_s21 }
  0x5d   : > { %605 = vrot.lane.b32.xlu1 %v7037_v14, %s6883_s21 }
  0x60   : > { %609 = vrot.lane.b32.xlu0 %v7043_v15, %s6883_s21 }
  0x61   : > { %611 = vrot.lane.b32.xlu1 %v7045_v16, %s6883_s21 }
  0x64   : > { %601 = vrot.lane.b32.xlu0 %v7055_v17, %s6883_s21 }
  0x65   : > { %607 = vrot.lane.b32.xlu1 %v7057_v18, %s6883_s21 }
  0x68   : > { %657 = vrot.lane.b32.xlu0 %v7035_v13, %s6884_s24 }
  0x69   : > { %659 = vrot.lane.b32.xlu1 %v7037_v14, %s6884_s24 }
  0x6c   : > { %663 = vrot.lane.b32.xlu0 %v7043_v15, %s6884_s24 }
  0x6d   : > { %665 = vrot.lane.b32.xlu1 %v7045_v16, %s6884_s24 }
  0x70   : > { %655 = vrot.lane.b32.xlu0 %v7055_v17, %s6884_s24 }
  0x71   : > { %661 = vrot.lane.b32.xlu1 %v7057_v18, %s6884_s24 }
  0x74   : > { %740 = vrot.lane.b32.xlu0 %v7055_v17, %s6875_s27 }
  0x75   : > { %742 = vrot.lane.b32.xlu1 %v7035_v13, %s6875_s27 }
  0x78   : > { %746 = vrot.lane.b32.xlu0 %v7057_v18, %s6875_s27 }
  0x79   : > { %748 = vrot.lane.b32.xlu1 %v7043_v15, %s6875_s27 }
  0x7c   : > { %744 = vrot.lane.b32.xlu0 %v7037_v14, %s6875_s27 }
  0x7d   : > { %750 = vrot.lane.b32.xlu1 %v7045_v16, %s6875_s27 }
  0x80   : > { %794 = vrot.lane.b32.xlu0 %v7055_v17, %s6885_s25 }
  0x81   : > { %796 = vrot.lane.b32.xlu1 %v7035_v13, %s6885_s25 }
  0x84   : > { %800 = vrot.lane.b32.xlu0 %v7057_v18, %s6885_s25 }
  0x85   : > { %802 = vrot.lane.b32.xlu1 %v7043_v15, %s6885_s25 }
  0x86   : > { %v7093_v19 = vpop.permute.xlu0 %6532 }
  0x87   : > { %v6543_v20 = vpop.permute.xlu1 %6542  ;;  %v6535_v21 = vunpack.i.h.bf16 %v7093_v19  ;;  %v6534_v22 = vunpack.i.l.bf16 %v7093_v19 }
  0x88   : > { %v6544_v23 = vunpack.i.l.bf16 %v6543_v20  ;;  %798 = vrot.lane.b32.xlu0 %v7037_v14, %s6885_s25  ;;  %v6545_v25 = vunpack.i.h.bf16 %v6543_v20 }
  0x89   : > { %804 = vrot.lane.b32.xlu1 %v7045_v16, %s6885_s25  ;;  %v1380_v30 = vsel %vm1378_vm1, %v6534_v22, %v6535_v21 }
  0x8a   : > { %v7099_v24 = vpop.permute.xlu0 %6537  ;;  %v1379_v29 = vsel %vm1378_vm1, %v6544_v23, %v6534_v22  ;;  %v472_v23 = vld [vmem:[%s8578_s0] sm:$0x7] }
  0x8b   : > { %v6540_v26 = vunpack.i.h.bf16 %v7099_v24  ;;  %v6539_v27 = vunpack.i.l.bf16 %v7099_v24  ;;  %v7103_v28 = vpop.permute.xlu1 %6547  ;;  %v2566_v24 = vld [vmem:[%s8580_s2] sm:$0x3] }
  0x8c   : > { %848 = vrot.lane.b32.xlu0 %v7055_v17, %s6874_s26  ;;  %v6550_v32 = vunpack.i.h.bf16 %v7103_v28  ;;  %v6549_v33 = vunpack.i.l.bf16 %v7103_v28 }
  0x8d   : > { %v1381_v31 = vsel %vm1378_vm1, %v6545_v25, %v6539_v27  ;;  %850 = vrot.lane.b32.xlu1 %v7035_v13, %s6874_s26  ;;  %v1382_v34 = vsel %vm1378_vm1, %v6539_v27, %v6540_v26 }
  0x8e   : > { %v7119_v35 = vpop.permute.xlu0 %6552  ;;  %v6224_v36 = vpack.c.bf16 %v1382_v34, %v1380_v30  ;;  %v6226_v37 = vpack.c.bf16 %v1381_v31, %v1379_v29  ;;  %v1551_v45 = vsel %vm860_vm2, %v6549_v33, %v6550_v32  ;;  %v7170_v29 = vld [vmem:[%s8579_s1 + $0x6] sm:$0x3] }
  0x8f   : > { %v6555_v38 = vunpack.i.h.bf16 %v7119_v35  ;;  %v6554_v39 = vunpack.i.l.bf16 %v7119_v35  ;;  %v6558_v40 = vpop.permute.xlu1 %6557 }
  0x90   : > { %v6560_v41 = vunpack.i.h.bf16 %v6558_v40  ;;  %v6559_v42 = vunpack.i.l.bf16 %v6558_v40  ;;  %854 = vrot.lane.b32.xlu0 %v7057_v18, %s6874_s26  ;;  %6225 = vmatprep.subr.bf16.mxu0 %v6224_v36 }
  0x91   : > { %856 = vrot.lane.b32.xlu1 %v7043_v15, %s6874_s26  ;;  %6227 = vmatpush1.bf16.msra.mxu0 %v6226_v37  ;;  %v1553_v46 = vsel %vm860_vm2, %v6554_v39, %v6555_v38  ;;  %v5678_v37 = vld [vmem:[%s8579_s1 + $0x2] sm:$0x3] }
  0x92   : > { %v1552_v47 = vsel %vm860_vm2, %v6560_v41, %v6554_v39  ;;  %v1550_v48 = vsel %vm860_vm2, %v6559_v42, %v6549_v33  ;;  %v6563_v49 = vpop.permute.xlu0 %6562  ;;  %v6231_v50 = vpack.c.bf16 %v1553_v46, %v1551_v45  ;;  %v7179_v39 = vrot.slane %v472_v23, %v2592_v9 }
  0x93   : > { %v6565_v52 = vunpack.i.h.bf16 %v6563_v49  ;;  %v6564_v53 = vunpack.i.l.bf16 %v6563_v49  ;;  %v6568_v54 = vpop.permute.xlu1 %6567  ;;  %v6233_v55 = vpack.c.bf16 %v1552_v47, %v1550_v48  ;;  %v6887_v47 = vmov 0.0|0.0  }
  0x94   : > { %v6570_v56 = vunpack.i.h.bf16 %v6568_v54  ;;  %v6569_v57 = vunpack.i.l.bf16 %v6568_v54  ;;  %852 = vrot.lane.b32.xlu0 %v7037_v14, %s6874_s26  ;;  %5684 = vmatmul.mubr.msk.f32.vlgmr.msra.gmra.mrb[0].mxu0 %vm1075_vm0, %v7130_v44 }
  0x95   : > { %858 = vrot.lane.b32.xlu1 %v7045_v16, %s6874_s26  ;;  %6232 = vmatprep.subr.bf16.mxu0 %v6231_v50  ;;  %v1066_v59 = vsel %vm752_vm3, %v6564_v53, %v6565_v52 }
  0x96   : > { %6234 = vmatpush1.bf16.msra.mxu0 %v6233_v55  ;;  %v6573_v60 = vpop.permute.xlu0 %6572  ;;  %v1068_v61 = vsel %vm752_vm3, %v6569_v57, %v6570_v56  ;;  %1627 = vmatprep.mubr.f32.mxu0 %v6872_v0  ;;  %v6215_v40 = vpack.c.bf16 %v6570_v56, %v6565_v52  ;;  %v6222_v56 = vpack.c.bf16 %v6989_v7, %v6975_v2 }
  0x97   : > { %v6575_v62 = vunpack.i.h.bf16 %v6573_v60  ;;  %v6574_v63 = vunpack.i.l.bf16 %v6573_v60  ;;  %v7151_v4 = vpop.permute.xlu1 %6577  ;;  %v6210_v8 = vpack.c.bf16 %v1068_v61, %v1066_v59  ;;  %v7220_v61 = vld [vmem:[%s8579_s1 + $0x8] sm:$0x3] }
  0x98   : > { %902 = vrot.lane.b32.xlu0 %v7055_v17, %s6876_s28  ;;  %v6580_v10 = vunpack.i.h.bf16 %v7151_v4  ;;  %v6579_v11 = vunpack.i.l.bf16 %v7151_v4 }
  0x99   : > { %904 = vrot.lane.b32.xlu1 %v7035_v13, %s6876_s28  ;;  %6211 = vmatprep.subr.bf16.mxu1 %v6210_v8  ;;  %v1065_v20 = vsel %vm752_vm3, %v6574_v63, %v6564_v53  ;;  %v1067_v22 = vsel %vm752_vm3, %v6575_v62, %v6569_v57  ;;  %v2596_v53 = vsub.s32 1, %v7144_v58  ;;  %v2600_v57 = vsub.s32 2, %v7144_v58 }
  0x9a   : > { %v7165_v25 = vpop.permute.xlu0 %6582  ;;  %v6212_v27 = vpack.c.bf16 %v1067_v22, %v1065_v20  ;;  %v1722_v41 = vsel %vm914_vm4, %v6579_v11, %v6580_v10 }
  0x9b   : > { %v6585_v30 = vunpack.i.h.bf16 %v7165_v25  ;;  %v6584_v31 = vunpack.i.l.bf16 %v7165_v25  ;;  %v6588_v33 = vpop.permute.xlu1 %6587  ;;  %v7233_v20 = vrot.slane %v472_v23, %v2600_v57 }
  0x9c   : > { %v6590_v34 = vunpack.i.h.bf16 %v6588_v33  ;;  %v6589_v36 = vunpack.i.l.bf16 %v6588_v33  ;;  %908 = vrot.lane.b32.xlu0 %v7057_v18, %s6876_s28  ;;  %6213 = vmatpush1.bf16.msra.mxu1 %v6212_v27 }
  0x9d   : > { %910 = vrot.lane.b32.xlu1 %v7043_v15, %s6876_s28  ;;  %5687 = vmatmul.mubr.msk.f32.vlgmr.msra.gmra.mrb[0].mxu0 %vm1075_vm0, %v7170_v29  ;;  %v1724_v42 = vsel %vm914_vm4, %v6584_v31, %v6585_v30  ;;  %v6243_v57 = vpack.c.bf16 %v6585_v30, %v6580_v10 }
  0x9e   : > { %v1723_v43 = vsel %vm914_vm4, %v6590_v34, %v6584_v31  ;;  %v1721_v45 = vsel %vm914_vm4, %v6589_v36, %v6579_v11  ;;  %v7193_v46 = vpop.permute.xlu0 %6592  ;;  %6214 = vmatprep.subr.bf16.mxu1 %v6887_v47  ;;  %v6238_v48 = vpack.c.bf16 %v1724_v42, %v1722_v41  ;;  %1798 = vmatprep.mubr.f32.mxu0 %v6872_v0 }
  0x9f   : > { %v6595_v49 = vunpack.i.h.bf16 %v7193_v46  ;;  %v6594_v50 = vunpack.i.l.bf16 %v7193_v46  ;;  %v7199_v51 = vpop.permute.xlu1 %6597  ;;  %5679 = vmatmul.mubr.msk.f32.vlgmr.msra.gmra.mrb[0].mxu1 %vm1075_vm0, %v5678_v37  ;;  %v6240_v52 = vpack.c.bf16 %v1723_v43, %v1721_v45  ;;  %v7229_v11 = vrot.slane %v472_v23, %v2596_v53 }
  0xa0   : > { %v6600_v54 = vunpack.i.h.bf16 %v7199_v51  ;;  %v6599_v55 = vunpack.i.l.bf16 %v7199_v51  ;;  %906 = vrot.lane.b32.xlu0 %v7037_v14, %s6876_s28  ;;  %6216 = vmatpush3.bf16.msra.mxu1 %v6215_v40  ;;  %v6229_v34 = vpack.c.bf16 %v6540_v26, %v6535_v21  ;;  %v6236_v26 = vpack.c.bf16 %v6555_v38, %v6550_v32  ;;  %v5692_v32 = vld [vmem:[%s8579_s1 + $0xa] sm:$0x3] }
  0xa1   : > { %912 = vrot.lane.b32.xlu1 %v7045_v16, %s6876_s28  ;;  %6239 = vmatprep.subr.bf16.mxu0 %v6238_v48  ;;  %v1894_v59 = vsel %vm1892_vm5, %v6594_v50, %v6595_v49 }
  0xa2   : > { %6241 = vmatpush1.bf16.msra.mxu0 %v6240_v52  ;;  %v6603_v60 = vpop.permute.xlu0 %6602  ;;  %6016 = vmatprep.mubr.msk.f32.mxu1 %vm6888_vm6, %v6872_v0  ;;  %v1896_v58 = vsel %vm1892_vm5, %v6599_v55, %v6600_v54 }
  0xa3   : > { %v6605_v62 = vunpack.i.h.bf16 %v6603_v60  ;;  %v6604_v63 = vunpack.i.l.bf16 %v6603_v60  ;;  %v7225_v8 = vpop.permute.xlu1 %6607  ;;  %6017 = vmatmul.mubr.msk.f32.vlgmr.msra.gmra.mrb[2].mxu1 %vm1075_vm0, %v5678_v37  ;;  %6221 = vmatprep.subr.bf16.mxu1 %v6887_v47  ;;  %v6245_v9 = vpack.c.bf16 %v1896_v58, %v1894_v59 }
  0xa4   : > { %2608 = vrot.lane.b32.xlu0 %v7179_v39, %s6881_s18  ;;  %6223 = vmatpush3.bf16.msra.mxu1 %v6222_v56  ;;  %v6610_v31 = vunpack.i.h.bf16 %v7225_v8  ;;  %v6609_v33 = vunpack.i.l.bf16 %v7225_v8 }
  0xa5   : > { %v1893_v22 = vsel %vm1892_vm5, %v6604_v63, %v6594_v50  ;;  %v1895_v27 = vsel %vm1892_vm5, %v6605_v62, %v6599_v55  ;;  %5690 = vmatmul.mubr.msk.f32.vlgmr.msra.gmra.mrb[0].mxu0 %vm1075_vm0, %v7220_v61  ;;  %6246 = vmatprep.subr.bf16.mxu0 %v6245_v9 }
  0xa6   : > { %v7245_v36 = vpop.permute.xlu0 %6612  ;;  %6023 = vmatprep.mubr.msk.f32.mxu1 %vm6888_vm6, %v6872_v0  ;;  %6228 = vmatprep.subr.bf16.mxu1 %v6887_v47  ;;  %v6247_v23 = vpack.c.bf16 %v1895_v27, %v1893_v22  ;;  %v5695_v22 = vld [vmem:[%s8579_s1 + $0xc] sm:$0x3] }
  0xa7   : > { %v6615_v37 = vunpack.i.h.bf16 %v7245_v36  ;;  %v6614_v40 = vunpack.i.l.bf16 %v7245_v36  ;;  %v6618_v41 = vpop.permute.xlu1 %6617  ;;  %6024 = vmatmul.mubr.msk.f32.vlgmr.msra.gmra.mrb[4].mxu1 %vm1075_vm0, %v7004_v12  ;;  %2610 = vrot.lane.b32.xlu1 %v7229_v11, %s6881_s18  ;;  %v2066_v12 = vsel %vm2064_vm7, %v6609_v33, %v6610_v31  ;;  %v5698_v36 = vld [vmem:[%s8579_s1 + $0xe] sm:$0x3] }
  0xa8   : > { %v6620_v19 = vunpack.i.h.bf16 %v6618_v41  ;;  %v6619_v21 = vunpack.i.l.bf16 %v6618_v41  ;;  %2612 = vrot.lane.b32.xlu0 %v7233_v20, %s6881_s18  ;;  %6230 = vmatpush3.bf16.msra.mxu1 %v6229_v34 }
  0xa9   : > { %6248 = vmatpush1.bf16.msra.mxu0 %v6247_v23  ;;  %6030 = vmatprep.mubr.msk.f32.mxu1 %vm6888_vm6, %v6872_v0  ;;  %v2068_v42 = vsel %vm2064_vm7, %v6614_v40, %v6615_v37 }
  0xaa   : > { %v2067_v43 = vsel %vm2064_vm7, %v6620_v19, %v6614_v40  ;;  %v2065_v45 = vsel %vm2064_vm7, %v6619_v21, %v6609_v33  ;;  %v7275_v28 = vpop.permute.xlu0 %6622  ;;  %6235 = vmatprep.subr.bf16.mxu1 %v6887_v47  ;;  %1970 = vmatprep.mubr.f32.mxu0 %v6872_v0  ;;  %v6252_v35 = vpack.c.bf16 %v2068_v42, %v2066_v12 }
  0xab   : > { %v6625_v38 = vunpack.i.h.bf16 %v7275_v28  ;;  %v6624_v48 = vunpack.i.l.bf16 %v7275_v28  ;;  %v6628_v50 = vpop.permute.xlu1 %6627  ;;  %6031 = vmatmul.mubr.msk.f32.vlgmr.msra.gmra.mrb[6].mxu1 %vm1075_vm0, %v7130_v44  ;;  %v6254_v52 = vpack.c.bf16 %v2067_v43, %v2065_v45  ;;  %2569 = vperm.xlu1 %6651, %v2566_v24   ;;  %v6257_v40 = vpack.c.bf16 %v6615_v37, %v6610_v31 }
  0xac   : > { %v6630_v53 = vunpack.i.h.bf16 %v6628_v50  ;;  %v6629_v55 = vunpack.i.l.bf16 %v6628_v50  ;;  %6237 = vmatpush3.bf16.msra.mxu1 %v6236_v26  ;;  %6253 = vmatprep.subr.bf16.mxu0 %v6252_v35  ;;  %v711_v43 = vmul.f32 %v6975_v2, %v7037_v14  ;;  %v714_v45 = vmul.f32 %v6989_v7, %v7045_v16 }
  0xad   : > { %5693 = vmatmul.mubr.msk.f32.vlgmr.msra.gmra.mrb[0].mxu0 %vm1075_vm0, %v5692_v32  ;;  %6037 = vmatprep.mubr.msk.f32.mxu1 %vm6888_vm6, %v6872_v0  ;;  %v2238_v56 = vsel %vm8592_vm8, %v6624_v48, %v6625_v38  ;;  %v712_v14 = vmul.f32 %v6983_v5, %v7057_v18 }
  0xae   : > { %6255 = vmatpush1.bf16.msra.mxu0 %v6254_v52  ;;  %v6633_v44 = vpop.permute.xlu0 %6632  ;;  %6242 = vmatprep.subr.bf16.mxu1 %v6887_v47  ;;  %v2240_v59 = vsel %vm8592_vm8, %v6629_v55, %v6630_v53  ;;  %v6264_v8 = vpack.c.bf16 %v6630_v53, %v6625_v38  ;;  %v731_v16 = vsel %vm537_vm10, %v711_v43, 0.0  ;;  %v732_v38 = vsel %vm537_vm10, %v714_v45, 0.0 }
  0xaf   : > { %v6635_v60 = vunpack.i.h.bf16 %v6633_v44  ;;  %v6634_v58 = vunpack.i.l.bf16 %v6633_v44  ;;  %v6638_v62 = vpop.permute.xlu1 %6637  ;;  %6038 = vmatmul.mubr.msk.f32.vlgmr.msra.gmra.mrb[8].mxu1 %vm1075_vm0, %v7170_v29  ;;  %v6259_v63 = vpack.c.bf16 %v2240_v59, %v2238_v56  ;;  %2142 = vmatprep.mubr.f32.mxu0 %v6872_v0  ;;  %v6250_v29 = vpack.c.bf16 %v6600_v54, %v6595_v49 }
  0xb0   : > { %6244 = vmatpush3.bf16.msra.mxu1 %v6243_v57  ;;  %6044 = vmatprep.mubr.msk.f32.mxu1 %vm6888_vm6, %v6872_v0  ;;  %v6640_v25 = vunpack.i.h.bf16 %v6638_v62  ;;  %v6639_v30 = vunpack.i.l.bf16 %v6638_v62  ;;  %v733_v52 = vadd.f32 %v732_v38, %v731_v16  ;;  %v710_v56 = vmul.f32 %v6972_v1, %v7035_v13 }
  0xb1   : > { %v2237_v4 = vsel %vm8592_vm8, %v6634_v58, %v6624_v48  ;;  %v2239_v10 = vsel %vm8592_vm8, %v6635_v60, %v6629_v55  ;;  %6260 = vmatprep.subr.bf16.mxu0 %v6259_v63  ;;  %6249 = vmatprep.subr.bf16.mxu1 %v6887_v47  ;;  %v713_v57 = vmul.f32 %v6986_v6, %v7043_v15 }
  0xb2   : > { %v6643_v9 = vpop.permute.xlu0 %6642  ;;  %v6261_v27 = vpack.c.bf16 %v2239_v10, %v2237_v4  ;;  %v2410_v49 = vsel %vm8590_vm9, %v6639_v30, %v6640_v25  ;;  %v734_v58 = vrot.slane %v733_v52, 4 }
  0xb3   : > { %v6645_v33 = vunpack.i.h.bf16 %v6643_v9  ;;  %v6644_v34 = vunpack.i.l.bf16 %v6643_v9  ;;  %v6648_v23 = vpop.permute.xlu1 %6647  ;;  %6045 = vmatmul.mubr.msk.f32.vlgmr.msra.gmra.mrb[10].mxu1 %vm1075_vm0, %v7220_v61  ;;  %v724_v10 = vadd.f32 %v713_v57, %v710_v56 }
  0xb4   : > { %6251 = vmatpush3.bf16.msra.mxu1 %v6250_v29  ;;  %6051 = vmatprep.mubr.msk.f32.mxu1 %vm6888_vm6, %v6872_v0  ;;  %v6650_v46 = vunpack.i.h.bf16 %v6648_v23  ;;  %v6649_v51 = vunpack.i.l.bf16 %v6648_v23  ;;  %v735_v29 = vadd.f32 %v734_v58, %v733_v52 }
  0xb5   : > { %5696 = vmatmul.mubr.msk.f32.vlgmr.msra.gmra.mrb[0].mxu0 %vm1075_vm0, %v5695_v22  ;;  %6256 = vmatprep.subr.bf16.mxu1 %v6887_v47  ;;  %v2412_v54 = vsel %vm8590_vm9, %v6644_v34, %v6645_v33  ;;  %v6271_v12 = vpack.c.bf16 %v6645_v33, %v6640_v25 }
  0xb6   : > { %6262 = vmatpush1.bf16.msra.mxu0 %v6261_v27  ;;  %v7323_v61 = vpop.permute.xlu0 %493  ;;  %v6266_v41 = vpack.c.bf16 %v2412_v54, %v2410_v49  ;;  %2314 = vmatprep.mubr.f32.mxu0 %v6872_v0  ;;  %v2411_v21 = vsel %vm8590_vm9, %v6650_v46, %v6644_v34  ;;  %v2409_v24 = vsel %vm8590_vm9, %v6649_v51, %v6639_v30  ;;  %v725_v34 = vrot.slane %v724_v10, 4 }
  0xb7   : > { %v496_v19 = vpop.permute.xlu1 %495  ;;  %6052 = vmatmul.mubr.msk.f32.vlgmr.msra.gmra.mrb[12].mxu1 %vm1075_vm0, %v5692_v32  ;;  %v6268_v26 = vpack.c.bf16 %v2411_v21, %v2409_v24  ;;  %v709_v32 = vmul.f32 %v6978_v3, %v7055_v17  ;;  %v716_v17 = vsel %vm520_vm11, %v712_v14, 0.0  ;;  %v736_v49 = vrot.slane %v735_v29, 2 }
  0xb8   : > { %6258 = vmatpush3.bf16.msra.mxu1 %v6257_v40  ;;  %6267 = vmatprep.subr.bf16.mxu0 %v6266_v41  ;;  %v505_v44 = vsel %vm503_vm12, %v7323_v61, %v496_v19  ;;  %vm980_vm9 = vcmask 1046528  }
  0xb9   : > { %6058 = vmatprep.mubr.msk.f32.mxu1 %vm6888_vm6, %v6872_v0  ;;  %6263 = vmatprep.subr.bf16.mxu1 %v6887_v47  ;;  %v715_v50 = vsel %vm520_vm11, %v709_v32, 0.0  ;;  %v737_v52 = vadd.f32 %v736_v49, %v735_v29 }
  0xba   : > { %v7332_v31 = vpop.permute.xlu0 %499  ;;  %v717_v59 = vadd.f32 %v716_v17, %v715_v50 }
  0xbb   : > { %v502_v37 = vpop.permute.xlu1 %501  ;;  %6059 = vmatmul.mubr.msk.f32.vlgmr.msra.gmra.mrb[14].mxu1 %vm1075_vm0, %v5695_v22 }
  0xbc   : > { %6265 = vmatpush3.bf16.msra.mxu1 %v6264_v8  ;;  %6065 = vmatprep.mubr.msk.f32.mxu1 %vm6888_vm6, %v6872_v0  ;;  %v507_v18 = vsel %vm503_vm12, %v7332_v31, %v502_v37  ;;  %v718_v25 = vrot.slane %v717_v59, 4 }
  0xbd   : > { %5699 = vmatmul.mubr.msk.f32.vlgmr.msra.gmra.mrb[0].mxu0 %vm1075_vm0, %v5698_v36  ;;  %6270 = vmatprep.subr.bf16.mxu1 %v6887_v47  ;;  %v5701_v47 = vld [vmem:[%s8579_s1 + $0x10] sm:$0x3]  ;;  %v519_v60 = vmul.f32 %v6989_v7, %v507_v18 }
  0xbe   : > { %6269 = vmatpush1.bf16.msra.mxu0 %v6268_v26  ;;  %v550_v42 = vpop.permute.xlu0 %549  ;;  %2486 = vmatprep.mubr.f32.mxu0 %v6872_v0  ;;  %v719_v46 = vadd.f32 %v718_v25, %v717_v59  ;;  %v726_v26 = vadd.f32 %v725_v34, %v724_v10  ;;  %v738_v25 = vrot.slane %v737_v52, 1 }
  0xbf   : > { %v552_v28 = vpop.permute.xlu1 %551  ;;  %6066 = vmatmul.mubr.msk.f32.vlgmr.msra.gmra.mrb[16].mxu1 %vm1075_vm0, %v5698_v36  ;;  %v539_v15 = vsel %vm537_vm10, %v519_v60, 0.0 }
  0xc0   : > { %6272 = vmatpush3.bf16.msra.mxu1 %v6271_v12  ;;  %6072 = vmatprep.mubr.msk.f32.mxu1 %vm6888_vm6, %v6872_v0  ;;  %v561_v13 = vsel %vm559_vm13, %v550_v42, %v552_v28  ;;  %v720_v45 = vrot.slane %v719_v46, 2  ;;  %v727_v17 = vrot.slane %v726_v26, 2  ;;  %vm956_vm6 = vcmask 1040384  }
  0xc1   : > { %v572_v27 = vmul.f32 %v6975_v2, %v561_v13 }
  0xc2   : > { %v556_v35 = vpop.permute.xlu0 %555  ;;  %v7405_v56 = vadd.f32 %v720_v45, %v719_v46  ;;  %v7412_v13 = vadd.f32 %v727_v17, %v726_v26 }
  0xc3   : > { %v558_v48 = vpop.permute.xlu1 %557  ;;  %6073 = vmatmul.mubr.msk.f32.vlgmr.msra.gmra.mrb[18].mxu1 %vm1075_vm0, %v5701_v47  ;;  %v592_v24 = vsel %vm537_vm10, %v572_v27, 0.0 }
  0xc4   : > { %2892 = vmatprep.mubr.f32.mxu1 %v6872_v0  ;;  %v563_v62 = vsel %vm559_vm13, %v556_v35, %v558_v48 }
  0xc5   : > { %5702 = vmatmul.mubr.msk.f32.vlgmr.msra.gmra.mrb[0].mxu0 %vm1075_vm0, %v5701_v47  ;;  %v575_v30 = vmul.f32 %v6989_v7, %v563_v62  ;;  %vm806_vm0 = vcmask 908288  }
  0xc6   : > { %v492_v53 = vpop.permute.xlu0 %491  ;;  %3369 = vmatprep.mubr.f32.mxu0 %v6872_v0  ;;  %v516_v0 = vmul.f32 %v6975_v2, %v505_v44 }
  0xc7   : > { %v498_v55 = vpop.permute.xlu1 %497  ;;  %v593_v51 = vsel %vm537_vm10, %v575_v30, 0.0  ;;  %v504_v54 = vsel %vm503_vm12, %v492_v53, %v7323_v61  ;;  %v514_v61 = vmul.f32 %v6978_v3, %v492_v53 }
  0xc8   : > { %v538_v22 = vsel %vm537_vm10, %v516_v0, 0.0  ;;  %v506_v40 = vsel %vm503_vm12, %v498_v55, %v7332_v31  ;;  %v594_v43 = vadd.f32 %v593_v51, %v592_v24  ;;  %v515_v31 = vmul.f32 %v6972_v1, %v504_v54 }
  0xc9   : > { %v540_v23 = vadd.f32 %v539_v15, %v538_v22  ;;  %v517_v28 = vmul.f32 %v6983_v5, %v498_v55  ;;  %v518_v47 = vmul.f32 %v6986_v6, %v506_v40  ;;  %v521_v57 = vsel %vm520_vm11, %v514_v61, 0.0 }
  0xca   : > { %v548_v63 = vpop.permute.xlu0 %547  ;;  %v595_v53 = vrot.slane %v594_v43, 4  ;;  %v722_v22 = vrot.slane %v7405_v56, 1 }
  0xcb   : > { %v554_v4 = vpop.permute.xlu1 %553  ;;  %v570_v41 = vmul.f32 %v6978_v3, %v548_v63  ;;  %v560_v8 = vsel %vm559_vm13, %v548_v63, %v550_v42  ;;  %v541_v12 = vrot.slane %v540_v23, 4  ;;  %v522_v44 = vsel %vm520_vm11, %v517_v28, 0.0 }
  0xcc   : > { %v573_v19 = vmul.f32 %v6983_v5, %v554_v4  ;;  %v562_v36 = vsel %vm559_vm13, %v554_v4, %v556_v35  ;;  %v571_v14 = vmul.f32 %v6972_v1, %v560_v8  ;;  %v530_v59 = vadd.f32 %v518_v47, %v515_v31 }
  0xcd   : > { %v576_v42 = vsel %vm520_vm11, %v570_v41, 0.0  ;;  %v574_v35 = vmul.f32 %v6986_v6, %v562_v36  ;;  %v542_v18 = vadd.f32 %v541_v12, %v540_v23  ;;  %v596_v15 = vadd.f32 %v595_v53, %v594_v43 }
  0xce   : > { %v7379_v9 = vpop.permute.xlu0 %603  ;;  %v577_v16 = vsel %vm520_vm11, %v573_v19, 0.0  ;;  %v523_v30 = vadd.f32 %v522_v44, %v521_v57  ;;  %v7425_v43 = vadd.f32 %v738_v25, %v737_v52  ;;  %v729_v31 = vrot.slane %v7412_v13, 1 }
  0xcf   : > { %v606_v33 = vpop.permute.xlu1 %605  ;;  %v578_v60 = vadd.f32 %v577_v16, %v576_v42  ;;  %v585_v58 = vadd.f32 %v574_v35, %v571_v14  ;;  %v543_v27 = vrot.slane %v542_v18, 2  ;;  %v7438_v25 = vadd.f32 %v722_v22, %v7405_v56 }
  0xd0   : > { %v615_v48 = vsel %vm613_vm14, %v7379_v9, %v606_v33  ;;  %v531_v33 = vrot.slane %v530_v59, 4  ;;  %v524_v26 = vrot.slane %v523_v30, 4  ;;  %vm960_vm13 = vcmask 1041408  }
  0xd1   : > { %v626_v62 = vmul.f32 %v6975_v2, %v615_v48  ;;  %v579_v34 = vrot.slane %v578_v60, 4  ;;  %v586_v46 = vrot.slane %v585_v58, 4  ;;  %v544_v61 = vadd.f32 %v543_v27, %v542_v18 }
  0xd2   : > { %v610_v21 = vpop.permute.xlu0 %609  ;;  %v532_v14 = vadd.f32 %v531_v33, %v530_v59 }
  0xd3   : > { %v612_v37 = vpop.permute.xlu1 %611  ;;  %v646_v51 = vsel %vm537_vm10, %v626_v62, 0.0  ;;  %v580_v45 = vadd.f32 %v579_v34, %v578_v60  ;;  %v587_v28 = vadd.f32 %v586_v46, %v585_v58  ;;  %v545_v62 = vrot.slane %v544_v61, 1 }
  0xd4   : > { %v617_v32 = vsel %vm613_vm14, %v610_v21, %v612_v37  ;;  %v597_v37 = vrot.slane %v596_v15, 2 }
  0xd5   : > { %v629_v55 = vmul.f32 %v6989_v7, %v617_v32  ;;  %v581_v52 = vrot.slane %v580_v45, 2  ;;  %v588_v57 = vrot.slane %v587_v28, 2  ;;  %v546_v56 = vadd.f32 %v545_v62, %v544_v61 }
  0xd6   : > { %v602_v38 = vpop.permute.xlu0 %601  ;;  %v598_v48 = vadd.f32 %v597_v37, %v596_v15 }
  0xd7   : > { %v608_v50 = vpop.permute.xlu1 %607  ;;  %v624_v63 = vmul.f32 %v6978_v3, %v602_v38  ;;  %v647_v29 = vsel %vm537_vm10, %v629_v55, 0.0  ;;  %v614_v49 = vsel %vm613_vm14, %v602_v38, %v7379_v9  ;;  %v582_v34 = vadd.f32 %v581_v52, %v580_v45 }
  0xd8   : > { %v627_v4 = vmul.f32 %v6983_v5, %v608_v50  ;;  %v648_v41 = vadd.f32 %v647_v29, %v646_v51  ;;  %v616_v19 = vsel %vm613_vm14, %v608_v50, %v610_v21  ;;  %v625_v21 = vmul.f32 %v6972_v1, %v614_v49 }
  0xd9   : > { %v630_v54 = vsel %vm520_vm11, %v624_v63, 0.0  ;;  %v628_v47 = vmul.f32 %v6986_v6, %v616_v19  ;;  %v525_v50 = vadd.f32 %v524_v26, %v523_v30  ;;  %v533_v63 = vrot.slane %v532_v14, 2 }
  0xda   : > { %v658_v0 = vpop.permute.xlu0 %657  ;;  %v631_v24 = vsel %vm520_vm11, %v627_v4, 0.0  ;;  %v649_v42 = vrot.slane %v648_v41, 4  ;;  %v599_v27 = vrot.slane %v598_v48, 1  ;;  %v589_v46 = vadd.f32 %v588_v57, %v587_v28  ;;  %v7469_v57 = vld [vmem:[%s6969_s22 + $0x20] sm:$0xff] }
  0xdb   : > { %v660_v10 = vpop.permute.xlu1 %659  ;;  %v632_v32 = vadd.f32 %v631_v24, %v630_v54  ;;  %v639_v59 = vadd.f32 %v628_v47, %v625_v21  ;;  %v526_v33 = vrot.slane %v525_v50, 2  ;;  %v534_v22 = vadd.f32 %v533_v63, %v532_v14 }
  0xdc   : > { %v669_v23 = vsel %vm667_vm15, %v658_v0, %v660_v10  ;;  %v650_v4 = vadd.f32 %v649_v42, %v648_v41  ;;  %v7446_v19 = vadd.f32 %v729_v31, %v7412_v13  ;;  %v600_v37 = vadd.f32 %v599_v27, %v598_v48 }
  0xdd   : > { %v680_v8 = vmul.f32 %v6975_v2, %v669_v23  ;;  %v633_v44 = vrot.slane %v632_v32, 4  ;;  %v640_v49 = vrot.slane %v639_v59, 4  ;;  %v527_v26 = vadd.f32 %v526_v33, %v525_v50 }
  0xde   : > { %v664_v40 = vpop.permute.xlu0 %663  ;;  %v590_v45 = vrot.slane %v589_v46, 1  ;;  %vm964_vm14 = vcmask 1042432  }
  0xdf   : > { %v666_v36 = vpop.permute.xlu1 %665  ;;  %v700_v35 = vsel %vm537_vm10, %v680_v8, 0.0  ;;  %v634_v51 = vadd.f32 %v633_v44, %v632_v32  ;;  %v641_v28 = vadd.f32 %v640_v49, %v639_v59 }
  0xe0   : > { %v671_v12 = vsel %vm667_vm15, %v664_v40, %v666_v36 }
  0xe1   : > { %v683_v9 = vmul.f32 %v6989_v7, %v671_v12  ;;  %v583_v12 = vrot.slane %v582_v34, 1 }
  0xe2   : > { %v656_v2 = vpop.permute.xlu0 %655 }
  0xe3   : > { %v701_v16 = vsel %vm537_vm10, %v683_v9, 0.0  ;;  %v662_v38 = vpop.permute.xlu1 %661  ;;  %v678_v7 = vmul.f32 %v6978_v3, %v656_v2  ;;  %v668_v18 = vsel %vm667_vm15, %v656_v2, %v658_v0  ;;  %v635_v9 = vrot.slane %v634_v51, 2 }
  0xe4   : > { %v702_v17 = vadd.f32 %v701_v16, %v700_v35  ;;  %v670_v53 = vsel %vm667_vm15, %v662_v38, %v664_v40  ;;  %v681_v55 = vmul.f32 %v6983_v5, %v662_v38  ;;  %v679_v15 = vmul.f32 %v6972_v1, %v668_v18  ;;  %v7459_v16 = vld [vmem:[%s6969_s22 + $0x8] sm:$0xff] }
  0xe5   : > { %v684_v0 = vsel %vm520_vm11, %v678_v7, 0.0  ;;  %v682_v30 = vmul.f32 %v6986_v6, %v670_v53  ;;  %v651_v6 = vrot.slane %v650_v4, 2  ;;  %v7465_v7 = vld [vmem:[%s6969_s22 + $0x28] sm:$0xff]  ;;  %v528_v18 = vrot.slane %v527_v26, 1 }
  0xe6   : > { %v703_v60 = vrot.slane %v702_v17, 4  ;;  %v741_v58 = vpop.permute.xlu0 %740  ;;  %v685_v29 = vsel %vm520_vm11, %v681_v55, 0.0  ;;  %v636_v53 = vadd.f32 %v635_v9, %v634_v51  ;;  %v642_v55 = vrot.slane %v641_v28, 2 }
  0xe7   : > { %v743_v10 = vpop.permute.xlu1 %742  ;;  %v686_v1 = vadd.f32 %v685_v29, %v684_v0  ;;  %v693_v24 = vadd.f32 %v682_v30, %v679_v15  ;;  %v652_v42 = vadd.f32 %v651_v6, %v650_v4  ;;  %v591_v29 = vadd.f32 %v590_v45, %v589_v46 }
  0xe8   : > { %v753_v23 = vsel %vm752_vm3, %v741_v58, %v743_v10  ;;  %v704_v54 = vadd.f32 %v703_v60, %v702_v17  ;;  %v535_v60 = vrot.slane %v534_v22, 1  ;;  %v529_v51 = vadd.f32 %v528_v18, %v527_v26 }
  0xe9   : > { %v763_v8 = vmul.f32 %v6978_v3, %v753_v23  ;;  %v687_v31 = vrot.slane %v686_v1, 4  ;;  %v7454_v3 = vld [vmem:[%s6969_s22 + $0x10] sm:$0xff]  ;;  %v694_v35 = vrot.slane %v693_v24, 4  ;;  %v653_v27 = vrot.slane %v652_v42, 1 }
  0xea   : > { %v747_v40 = vpop.permute.xlu0 %746  ;;  %v705_v21 = vrot.slane %v704_v54, 2  ;;  %v637_v49 = vrot.slane %v636_v53, 1  ;;  %v536_v6 = vadd.f32 %v535_v60, %v534_v22  ;;  %vm968_vm15 = vcmask 1043456  }
  0xeb   : > { %v749_v41 = vpop.permute.xlu1 %748  ;;  %v688_v62 = vadd.f32 %v687_v31, %v686_v1  ;;  %v695_v15 = vadd.f32 %v694_v35, %v693_v24  ;;  %v959_v1 = vsel %vm956_vm6, %v546_v56, %v600_v37  ;;  %v654_v9 = vadd.f32 %v653_v27, %v652_v42 }
  0xec   : > { %v755_v36 = vsel %vm752_vm3, %v747_v40, %v749_v41  ;;  %v706_v58 = vadd.f32 %v705_v21, %v704_v54  ;;  %v643_v40 = vadd.f32 %v642_v55, %v641_v28  ;;  %v958_v45 = vsel %vm956_vm6, %v536_v6, %v591_v29 }
  0xed   : > { %v766_v61 = vmul.f32 %v6983_v5, %v755_v36  ;;  %v769_v5 = vsel %vm520_vm11, %v763_v8, 0.0  ;;  %v689_v24 = vrot.slane %v688_v62, 2  ;;  %v696_v36 = vrot.slane %v695_v15, 2 }
  0xee   : > { %v745_v13 = vpop.permute.xlu0 %744  ;;  %v638_v56 = vadd.f32 %v637_v49, %v636_v53  ;;  %v644_v22 = vrot.slane %v643_v40, 1 }
  0xef   : > { %v770_v47 = vsel %vm520_vm11, %v766_v61, 0.0  ;;  %v754_v32 = vsel %vm752_vm3, %v743_v10, %v745_v13  ;;  %v765_v2 = vmul.f32 %v7454_v3, %v745_v13  ;;  %v751_v14 = vpop.permute.xlu1 %750  ;;  %v584_v10 = vadd.f32 %v583_v12, %v582_v34  ;;  %v7477_v61 = vld [vmem:[%s6969_s22] sm:$0xff]  ;;  %v7483_v13 = vld [vmem:[%s6969_s22 + $0x18] sm:$0xff] }
  0xf0   : > { %v764_v38 = vmul.f32 %v7459_v16, %v754_v32  ;;  %v771_v48 = vadd.f32 %v770_v47, %v769_v5  ;;  %v756_v17 = vsel %vm752_vm3, %v749_v41, %v751_v14  ;;  %v768_v52 = vmul.f32 %v7465_v7, %v751_v14 }
  0xf1   : > { %v785_v50 = vsel %vm537_vm10, %v765_v2, 0.0  ;;  %v767_v44 = vmul.f32 %v7469_v57, %v756_v17  ;;  %v707_v34 = vrot.slane %v706_v58, 1  ;;  %v957_v46 = vsel %vm956_vm6, %v529_v51, %v584_v10 }
  0xf2   : > { %v795_v59 = vpop.permute.xlu0 %794  ;;  %v786_v63 = vsel %vm537_vm10, %v768_v52, 0.0  ;;  %v772_v33 = vrot.slane %v771_v48, 4  ;;  %v690_v2 = vadd.f32 %v689_v24, %v688_v62  ;;  %v697_v42 = vadd.f32 %v696_v36, %v695_v15 }
  0xf3   : > { %v797_v4 = vpop.permute.xlu1 %796  ;;  %v778_v0 = vadd.f32 %v767_v44, %v764_v38  ;;  %v787_v30 = vadd.f32 %v786_v63, %v785_v50  ;;  %v708_v32 = vadd.f32 %v707_v34, %v706_v58  ;;  %v963_v62 = vsel %vm960_vm13, %v959_v1, %v654_v9 }
  0xf4   : > { %v807_v23 = vsel %vm806_vm0, %v795_v59, %v797_v4  ;;  %v773_v28 = vadd.f32 %v772_v33, %v771_v48  ;;  %v645_v63 = vadd.f32 %v644_v22, %v643_v40  ;;  %vm976_vm6 = vcmask 1045504  }
  0xf5   : > { %v779_v41 = vrot.slane %v778_v0, 4  ;;  %v788_v12 = vrot.slane %v787_v30, 4  ;;  %v817_v26 = vmul.f32 %v7477_v61, %v807_v23  ;;  %v967_v49 = vsel %vm964_vm14, %v963_v62, %v708_v32 }
  0xf6   : > { %v801_v54 = vpop.permute.xlu0 %800  ;;  %v774_v17 = vrot.slane %v773_v28, 2  ;;  %v962_v34 = vsel %vm960_vm13, %v958_v45, %v645_v63 }
  0xf7   : > { %v803_v8 = vpop.permute.xlu1 %802  ;;  %v780_v37 = vadd.f32 %v779_v41, %v778_v0  ;;  %v789_v38 = vadd.f32 %v788_v12, %v787_v30  ;;  %v823_v48 = vsel %vm520_vm11, %v817_v26, 0.0  ;;  %v691_v0 = vrot.slane %v690_v2, 1 }
  0xf8   : > { %v809_v21 = vsel %vm806_vm0, %v801_v54, %v803_v8  ;;  %v698_v41 = vrot.slane %v697_v42, 1  ;;  %v775_v54 = vadd.f32 %v774_v17, %v773_v28 }
  0xf9   : > { %v820_v31 = vmul.f32 %v7483_v13, %v809_v21  ;;  %v781_v55 = vrot.slane %v780_v37, 2  ;;  %v790_v30 = vrot.slane %v789_v38, 2  ;;  %v971_v21 = vsel %vm968_vm15, %v967_v49, %v7425_v43 }
  0xfa   : > { %v799_v47 = vpop.permute.xlu0 %798  ;;  %v776_v45 = vrot.slane %v775_v54, 1 }
  0xfb   : > { %v808_v14 = vsel %vm806_vm0, %v797_v4, %v799_v47  ;;  %v819_v35 = vmul.f32 %v7454_v3, %v799_v47  ;;  %v805_v5 = vpop.permute.xlu1 %804  ;;  %v824_v50 = vsel %vm520_vm11, %v820_v31, 0.0  ;;  %v961_v4 = vsel %vm960_vm13, %v957_v46, %v638_v56 }
  0xfc   : > { %v825_v52 = vadd.f32 %v824_v50, %v823_v48  ;;  %v818_v18 = vmul.f32 %v7459_v16, %v808_v14  ;;  %v810_v53 = vsel %vm806_vm0, %v803_v8, %v805_v5  ;;  %v822_v60 = vmul.f32 %v7465_v7, %v805_v5 }
  0xfd   : > { %v839_v44 = vsel %vm537_vm10, %v819_v35, 0.0  ;;  %v821_v59 = vmul.f32 %v7469_v57, %v810_v53  ;;  %v782_v6 = vadd.f32 %v781_v55, %v780_v37  ;;  %v791_v12 = vadd.f32 %v790_v30, %v789_v38 }
  0xfe   : > { %v849_v58 = vpop.permute.xlu0 %848  ;;  %v826_v10 = vrot.slane %v825_v52, 4  ;;  %v840_v27 = vsel %vm537_vm10, %v822_v60, 0.0  ;;  %vm8591_vm0 = vcmask 1044480   ;;  %v692_v56 = vadd.f32 %v691_v0, %v690_v2 }
  0xff   : > { %v851_v15 = vpop.permute.xlu1 %850  ;;  %v832_v29 = vadd.f32 %v821_v59, %v818_v18  ;;  %v841_v23 = vadd.f32 %v840_v27, %v839_v44  ;;  %v699_v31 = vadd.f32 %v698_v41, %v697_v42  ;;  %v783_v47 = vrot.slane %v782_v6, 1 }
 0x100   : > { %v827_v33 = vadd.f32 %v826_v10, %v825_v52  ;;  %v861_v51 = vsel %vm860_vm2, %v849_v58, %v851_v15  ;;  %v792_v43 = vrot.slane %v791_v12, 1  ;;  %v965_v62 = vsel %vm964_vm14, %v961_v4, %v692_v56 }
 0x101   : > { %v833_v1 = vrot.slane %v832_v29, 4  ;;  %v842_v8 = vrot.slane %v841_v23, 4  ;;  %v871_v46 = vmul.f32 %v7477_v61, %v861_v51  ;;  %v777_v63 = vadd.f32 %v776_v45, %v775_v54 }
 0x102   : > { %v855_v40 = vpop.permute.xlu0 %854  ;;  %v828_v24 = vrot.slane %v827_v33, 2  ;;  %v966_v30 = vsel %vm964_vm14, %v962_v34, %v699_v31  ;;  %v793_v51 = vadd.f32 %v792_v43, %v791_v12 }
 0x103   : > { %v857_v36 = vpop.permute.xlu1 %856  ;;  %v834_v26 = vadd.f32 %v833_v1, %v832_v29  ;;  %v843_v22 = vadd.f32 %v842_v8, %v841_v23  ;;  %v877_v5 = vsel %vm520_vm11, %v871_v46, 0.0  ;;  %v784_v29 = vadd.f32 %v783_v47, %v782_v6 }
 0x104   : > { %v863_v9 = vsel %vm860_vm2, %v855_v40, %v857_v36  ;;  %v829_v28 = vadd.f32 %v828_v24, %v827_v33  ;;  %v969_v8 = vsel %vm968_vm15, %v965_v62, %v7438_v25  ;;  %v970_v12 = vsel %vm968_vm15, %v966_v30, %v7446_v19 }
 0x105   : > { %v874_v37 = vmul.f32 %v7483_v13, %v863_v9  ;;  %v835_v32 = vrot.slane %v834_v26, 2  ;;  %v844_v35 = vrot.slane %v843_v22, 2  ;;  %v975_v25 = vsel %vm8591_vm0, %v971_v21, %v793_v51 }
 0x106   : > { %v853_v14 = vpop.permute.xlu0 %852  ;;  %v830_v42 = vrot.slane %v829_v28, 1 }
 0x107   : > { %v878_v38 = vsel %vm520_vm11, %v874_v37, 0.0  ;;  %v862_v48 = vsel %vm860_vm2, %v851_v15, %v853_v14  ;;  %v859_v50 = vpop.permute.xlu1 %858  ;;  %v873_v52 = vmul.f32 %v7454_v3, %v853_v14  ;;  %v836_v18 = vadd.f32 %v835_v32, %v834_v26 }
 0x108   : > { %v879_v2 = vadd.f32 %v878_v38, %v877_v5  ;;  %v872_v17 = vmul.f32 %v7459_v16, %v862_v48  ;;  %v864_v53 = vsel %vm860_vm2, %v857_v36, %v859_v50  ;;  %v876_v55 = vmul.f32 %v7465_v7, %v859_v50 }
 0x109   : > { %v893_v59 = vsel %vm537_vm10, %v873_v52, 0.0  ;;  %v875_v60 = vmul.f32 %v7469_v57, %v864_v53  ;;  %v845_v10 = vadd.f32 %v844_v35, %v843_v22  ;;  %v831_v49 = vadd.f32 %v830_v42, %v829_v28 }
 0x10a   : > { %v880_v44 = vrot.slane %v879_v2, 4  ;;  %v903_v58 = vpop.permute.xlu0 %902  ;;  %v894_v15 = vsel %vm537_vm10, %v876_v55, 0.0  ;;  %v837_v41 = vrot.slane %v836_v18, 1  ;;  %v973_v36 = vsel %vm8591_vm0, %v969_v8, %v777_v63 }
 0x10b   : > { %v905_v0 = vpop.permute.xlu1 %904  ;;  %v886_v33 = vadd.f32 %v875_v60, %v872_v17  ;;  %v895_v23 = vadd.f32 %v894_v15, %v893_v59  ;;  %v846_v46 = vrot.slane %v845_v10, 1  ;;  %v974_v28 = vsel %vm8591_vm0, %v970_v12, %v784_v29 }
 0x10c   : > { %v881_v27 = vadd.f32 %v880_v44, %v879_v2  ;;  %v915_v1 = vsel %vm914_vm4, %v903_v58, %v905_v0  ;;  %v838_v22 = vadd.f32 %v837_v41, %v836_v18  ;;  %v977_v31 = vsel %vm976_vm6, %v973_v36, %v831_v49 }
 0x10d   : > { %v887_v24 = vrot.slane %v886_v33, 4  ;;  %v896_v4 = vrot.slane %v895_v23, 4  ;;  %v925_v34 = vmul.f32 %v7477_v61, %v915_v1  ;;  %v847_v35 = vadd.f32 %v846_v46, %v845_v10 }
 0x10e   : > { %v882_v40 = vrot.slane %v881_v27, 2  ;;  %v909_v54 = vpop.permute.xlu0 %908  ;;  %v978_v58 = vsel %vm976_vm6, %v974_v28, %v838_v22 }
 0x10f   : > { %v911_v6 = vpop.permute.xlu1 %910  ;;  %v888_v9 = vadd.f32 %v887_v24, %v886_v33  ;;  %v897_v56 = vadd.f32 %v896_v4, %v895_v23  ;;  %v931_v19 = vsel %vm520_vm11, %v925_v34, 0.0 }
 0x110   : > { %v883_v26 = vadd.f32 %v882_v40, %v881_v27  ;;  %v917_v37 = vsel %vm914_vm4, %v909_v54, %v911_v6 }
 0x111   : > { %v889_v61 = vrot.slane %v888_v9, 2  ;;  %v898_v47 = vrot.slane %v897_v56, 2  ;;  %v928_v32 = vmul.f32 %v7483_v13, %v917_v37 }
 0x112   : > { %v884_v45 = vrot.slane %v883_v26, 1  ;;  %v907_v14 = vpop.permute.xlu0 %906 }
 0x113   : > { %v916_v5 = vsel %vm914_vm4, %v905_v0, %v907_v14  ;;  %v927_v38 = vmul.f32 %v7454_v3, %v907_v14  ;;  %v913_v48 = vpop.permute.xlu1 %912  ;;  %v890_v50 = vadd.f32 %v889_v61, %v888_v9  ;;  %v899_v43 = vadd.f32 %v898_v47, %v897_v56 }
 0x114   : > { %v932_v2 = vsel %vm520_vm11, %v928_v32, 0.0  ;;  %v926_v21 = vmul.f32 %v7459_v16, %v916_v5  ;;  %v918_v13 = vsel %vm914_vm4, %v911_v6, %v913_v48  ;;  %v930_v42 = vmul.f32 %v7465_v7, %v913_v48 }
 0x115   : > { %v933_v17 = vadd.f32 %v932_v2, %v931_v19  ;;  %v947_v52 = vsel %vm537_vm10, %v927_v38, 0.0  ;;  %v891_v18 = vrot.slane %v890_v50, 1  ;;  %v900_v53 = vrot.slane %v899_v43, 1 }
 0x116   : > { %v929_v55 = vmul.f32 %v7469_v57, %v918_v13  ;;  %v2609_v44 = vpop.permute.xlu0 %2608  ;;  %v885_v3 = vadd.f32 %v884_v45, %v883_v26  ;;  %v948_v60 = vsel %vm537_vm10, %v930_v42, 0.0  ;;  %v979_v16 = vsel %vm976_vm6, %v975_v25, %v847_v35 }
 0x117   : > { %v934_v59 = vrot.slane %v933_v17, 4  ;;  %v949_v63 = vadd.f32 %v948_v60, %v947_v52  ;;  %v892_v15 = vadd.f32 %v891_v18, %v890_v50  ;;  %v901_v29 = vadd.f32 %v900_v53, %v899_v43 }
 0x118   : > { %v940_v62 = vadd.f32 %v929_v55, %v926_v21  ;;  %v981_v10 = vsel %vm980_vm9, %v977_v31, %v885_v3 }
 0x119   : > { %v935_v0 = vadd.f32 %v934_v59, %v933_v17  ;;  %vm984_vm15 = vcmp.ge.f32.partialorder %v981_v10, 0.0  ;;  %v990_v7 = vmul.f32 0.01, %v981_v10  ;;  %v2611_v30 = vpop.permute.xlu1 %2610  ;;  %v950_v27 = vrot.slane %v949_v63, 4 }
 0x11a   : > { %v941_v57 = vrot.slane %v940_v62, 4  ;;  %v2613_v33 = vpop.permute.xlu0 %2612  ;;  %v982_v23 = vsel %vm980_vm9, %v978_v58, %v892_v15  ;;  %v2614_v51 = vsel %vm503_vm12, %v2609_v44, %v2611_v30  ;;  %v983_v1 = vsel %vm980_vm9, %v979_v16, %v901_v29 }
 0x11b   : > { %v936_v49 = vrot.slane %v935_v0, 2  ;;  %v7545_v41 = vsel %vm984_vm15, %v981_v10, %v990_v7  ;;  %vm985_vm0 = vcmp.ge.f32.partialorder %v982_v23, 0.0  ;;  %v951_v24 = vadd.f32 %v950_v27, %v949_v63 }
 0x11c   : > { %v942_v40 = vadd.f32 %v941_v57, %v940_v62  ;;  %v2619_v4 = vmul.f32 %v2609_v44, %v7545_v41  ;;  %vm986_vm8 = vcmp.ge.f32.partialorder %v983_v1, 0.0  ;;  %v991_v8 = vmul.f32 0.01, %v982_v23 }
 0x11d   : > { %v937_v54 = vadd.f32 %v936_v49, %v935_v0  ;;  %v992_v46 = vmul.f32 0.01, %v983_v1  ;;  %v2615_v34 = vsel %vm503_vm12, %v2611_v30, %v2613_v33  ;;  %v952_v36 = vrot.slane %v951_v24, 2 }
 0x11e   : > { %v943_v6 = vrot.slane %v942_v40, 2  ;;  %v2637_v12 = vrot.slane %v2619_v4, 6  ;;  %v7550_v9 = vsel %vm985_vm0, %v982_v23, %v991_v8 }
 0x11f   : > { %v938_v26 = vrot.slane %v937_v54, 1  ;;  %v7552_v56 = vsel %vm986_vm8, %v983_v1, %v992_v46  ;;  %v953_v22 = vadd.f32 %v952_v36, %v951_v24  ;;  %v2620_v37 = vmul.f32 %v2614_v51, %v7550_v9 }
 0x120   : > { %v944_v28 = vadd.f32 %v943_v6, %v942_v40  ;;  %v2621_v31 = vmul.f32 %v2615_v34, %v7552_v56  ;;  %2646 = vrot.lane.b32.xlu0 %v2637_v12, %s6876_s28 }
 0x121   : > { %v939_v25 = vadd.f32 %v938_v26, %v937_v54  ;;  %v954_v61 = vrot.slane %v953_v22, 1  ;;  %v2638_v47 = vrot.slane %v2620_v37, 6 }
 0x122   : > { %v945_v45 = vrot.slane %v944_v28, 1  ;;  %v2639_v32 = vrot.slane %v2621_v31, 6  ;;  %v7580_v31 = vld [vmem:[#allocation2] sm:$0xff] }
 0x123   : > { %vm987_vm15 = vcmp.ge.f32.partialorder %v939_v25, 0.0  ;;  %v993_v14 = vmul.f32 0.01, %v939_v25  ;;  %v955_v19 = vadd.f32 %v954_v61, %v953_v22  ;;  %2648 = vrot.lane.b32.xlu1 %v2638_v47, %s6876_s28 }
 0x124   : > { %v946_v35 = vadd.f32 %v945_v45, %v944_v28  ;;  %2650 = vrot.lane.b32.xlu0 %v2639_v32, %s6876_s28  ;;  %v2625_v45 = vld [vmem:[%s7578_s14] sm:$0xff] }
 0x125   : > { %v7559_v5 = vsel %vm987_vm15, %v939_v25, %v993_v14  ;;  %vm989_vm0 = vcmp.ge.f32.partialorder %v955_v19, 0.0  ;;  %v995_v50 = vmul.f32 0.01, %v955_v19  ;;  %vm2580_vm15 = vcmask 867328  }
 0x126   : > { %v2622_v38 = vmul.f32 %v2609_v44, %v7559_v5  ;;  %vm988_vm8 = vcmp.ge.f32.partialorder %v946_v35, 0.0  ;;  %v994_v48 = vmul.f32 0.01, %v946_v35  ;;  %2581 = vst.msk [vmem:[#allocation2 + $0x10] sm:$0xff] %vm2580_vm15, %v7580_v31  ;;  %2584 = vst.msk [vmem:[#allocation2 + $0x28] sm:$0xff] %vm2580_vm15, %v7580_v31  ;;  %vm2740_vm15 = vcmask 709632  }
 0x127   : > { %v7564_v21 = vsel %vm989_vm0, %v955_v19, %v995_v50  ;;  %v2674_v19 = vrot.slane %v2625_v45, 5  ;;  %vm2737_vm0 = vcmask 1045656  }
 0x128   : > { %v2640_v43 = vrot.slane %v2622_v38, 6  ;;  %v7562_v2 = vsel %vm988_vm8, %v946_v35, %v994_v48  ;;  %v2624_v52 = vmul.f32 %v2615_v34, %v7564_v21  ;;  %vm2587_vm8 = vcmask 865280  }
 0x129   : > { %v2623_v17 = vmul.f32 %v2614_v51, %v7562_v2  ;;  %2588 = vst.msk [vmem:[#allocation2 + $0x40] sm:$0x3f] %vm2587_vm8, %v7580_v31 }
 0x12a   : > { %v2641_v13 = vsel %vm960_vm13, %v2637_v12, %v2640_v43  ;;  %v2644_v18 = vrot.slane %v2624_v52, 6  ;;  %v2570_v4 = vpop.permute.xlu1 %2569 }
 0x12b   : > { %v2642_v42 = vrot.slane %v2623_v17, 6  ;;  %2652 = vrot.lane.b32.xlu1 %v2641_v13, %s6876_s28 }
 0x12c   : > { %v2645_v55 = vsel %vm960_vm13, %v2639_v32, %v2644_v18  ;;  %v2626_v32 = vld [vmem:[%s7578_s14 + $0x8] sm:$0xff] }
 0x12d   : > { %v2643_v53 = vsel %vm960_vm13, %v2638_v47, %v2642_v42  ;;  %v2675_v50 = vrot.slane %v2626_v32, 5 }
 0x12e   : > { %2654 = vrot.lane.b32.xlu0 %v2643_v53, %s6876_s28 }
 0x12f   : > { %2656 = vrot.lane.b32.xlu1 %v2645_v55, %s6876_s28 }
 0x172   : > { %v1145_v44 = vpop.f32.mrb[0].mxu1 }
 0x173   : > { %v1147_v3 = vpop.f32.mrb[1].mxu1 }
 0x176   : > { %v1216_v59 = vpop.f32.mrb[2].mxu1 }
 0x177   : > { %v6018_v60 = vpop.f32.mrb[3].mxu1 }
 0x178   : > { %v2629_v60 = vld [vmem:[%s7578_s14 + $0x20] sm:$0x7] }
 0x17a   : > { %v1360_v58 = vpop.f32.mrb[4].mxu1 }
 0x17b   : > { %v1361_v16 = vadd.f32 %v1360_v58, %v1216_v59  ;;  %v6025_v62 = vpop.f32.mrb[5].mxu1 }
 0x17e   : > { %v1529_v63 = vpop.f32.mrb[6].mxu1 }
 0x17f   : > { %v1535_v10 = vadd.f32 %v1529_v63, %v1361_v16  ;;  %v6032_v15 = vpop.f32.mrb[7].mxu1  ;;  %v2628_v16 = vld [vmem:[%s7578_s14 + $0x18] sm:$0x7]  ;;  %v2679_v63 = vrot.slane %v2629_v60, 5 }
 0x182   : > { %v1700_v0 = vpop.f32.mrb[8].mxu1 }
 0x183   : > { %v1706_v7 = vadd.f32 %v1700_v0, %v1535_v10  ;;  %v6039_v30 = vpop.f32.mrb[9].mxu1  ;;  %v2677_v10 = vrot.slane %v2628_v16, 5 }
 0x186   : > { %v1871_v29 = vpop.f32.mrb[10].mxu1 }
 0x187   : > { %v1877_v57 = vadd.f32 %v1871_v29, %v1706_v7  ;;  %v6046_v27 = vpop.f32.mrb[11].mxu1  ;;  %v2630_v7 = vld [vmem:[%s7578_s14 + $0x28] sm:$0x7]  ;;  %v2678_v29 = vsel %vm964_vm14, %v2674_v19, %v2677_v10 }
 0x18a   : > { %v2043_v33 = vpop.f32.mrb[12].mxu1 }
 0x18b   : > { %v2049_v23 = vadd.f32 %v2043_v33, %v1877_v57  ;;  %v6053_v51 = vpop.f32.mrb[13].mxu1  ;;  %v2681_v57 = vrot.slane %v2630_v7, 5 }
 0x18e   : > { %v2215_v49 = vpop.f32.mrb[14].mxu1 }
 0x18f   : > { %v2221_v1 = vadd.f32 %v2215_v49, %v2049_v23  ;;  %v6060_v40 = vpop.f32.mrb[15].mxu1 }
 0x192   : > { %v2387_v24 = vpop.f32.mrb[16].mxu1  ;;  %v2647_v46 = vpop.permute.xlu0 %2646 }
 0x193   : > { %v2393_v54 = vadd.f32 %v2387_v24, %v2221_v1  ;;  %v6067_v8 = vpop.f32.mrb[17].mxu1 }
 0x195   : > { %v2649_v26 = vpop.permute.xlu1 %2648 }
 0x196   : > { %v2559_v34 = vpop.f32.mrb[18].mxu1  ;;  %v2651_v61 = vpop.permute.xlu0 %2650  ;;  %v2658_v15 = vsel %vm914_vm4, %v2647_v46, %v2649_v26 }
 0x197   : > { %v2565_v6 = vadd.f32 %v2559_v34, %v2393_v54  ;;  %v6074_v12 = vpop.f32.mrb[19].mxu1  ;;  %v2659_v59 = vsel %vm914_vm4, %v2649_v26, %v2651_v61 }
 0x198   : > { %v2488_v36 = vpop.f32.mrb[0].mxu0 }
 0x199   : > { %v6345_v28 = vadd.f32 %v2488_v36, %v1145_v44  ;;  %v2490_v22 = vpop.f32.mrb[1].mxu0  ;;  %v2574_v25 = vadd.f32 %v2570_v4, %v2565_v6 }
 0x19a   : > { %v6346_v37 = vadd.f32 %v2490_v22, %v1147_v3  ;;  %v2627_v3 = vld [vmem:[%s7578_s14 + $0x10] sm:$0xff] }
 0x19b   : > { %v2577_v38 = vmax.f32 %v2574_v25, 0.0  ;;  %v2572_v48 = vadd.f32 %v6345_v28, %v2570_v4  ;;  %v2676_v58 = vrot.slane %v2627_v3, 5 }
 0x19c   : > { %v2573_v47 = vadd.f32 %v6346_v37, %v2570_v4 }
 0x19d   : > { %v2653_v14 = vpop.permute.xlu1 %2652  ;;  %v2607_v53 = vmul.f32 %v7233_v20, %v2577_v38  ;;  %v2575_v55 = vmax.f32 %v2572_v48, 0.0  ;;  %v2682_v27 = vsel %vm964_vm14, %v2676_v58, %v2681_v57  ;;  %v5169_v48 = vld [vmem:[%s8582_s4] sm:$0xff] }
 0x19e   : > { %v2576_v35 = vmax.f32 %v2573_v47, 0.0 }
 0x19f   : > { %v2605_v20 = vmul.f32 %v7179_v39, %v2575_v55  ;;  %v2688_v62 = vsel %vm960_vm13, %v2607_v53, %v2651_v61  ;;  %v2680_v39 = vsel %vm964_vm14, %v2675_v50, %v2679_v63 }
 0x1a0   : > { %v2655_v43 = vpop.permute.xlu0 %2654  ;;  %v2606_v13 = vmul.f32 %v7229_v11, %v2576_v35 }
 0x1a1   : > { %v2660_v17 = vsel %vm914_vm4, %v2653_v14, %v2655_v43  ;;  %v2657_v52 = vpop.permute.xlu1 %2656  ;;  %v2686_v30 = vsel %vm960_vm13, %v2605_v20, %v2658_v15 }
 0x1a2   : > { %v2661_v42 = vsel %vm914_vm4, %v2655_v43, %v2657_v52  ;;  %v2689_v18 = vsel %vm964_vm14, %v2660_v17, %v2674_v19  ;;  %v2687_v11 = vsel %vm960_vm13, %v2606_v13, %v2659_v59  ;;  %v2691_v0 = vsel %vm964_vm14, %v2657_v52, %v2676_v58  ;;  %v5171_v43 = vld [vmem:[%s8582_s4 + $0x10] sm:$0xff]  ;;  %v5174_v17 = vld [vmem:[%s8582_s4 + $0x28] sm:$0xf]  ;;  %v5173_v52 = vld [vmem:[%s8582_s4 + $0x20] sm:$0xff] }
 0x1a3   : > { %2704 = vrot.lane.b32.xlu1 %v2689_v18, %s6881_s18  ;;  %v2690_v44 = vsel %vm964_vm14, %v2661_v42, %v2675_v50  ;;  %v5170_v50 = vld [vmem:[%s8582_s4 + $0x8] sm:$0xff]  ;;  %v5172_v13 = vld [vmem:[%s8582_s4 + $0x18] sm:$0xff] }
 0x1a4   : > { %2706 = vrot.lane.b32.xlu0 %v2690_v44, %s6881_s18 }
 0x1a7   : > { %2700 = vrot.lane.b32.xlu1 %v2687_v11, %s6881_s18 }
 0x1a8   : > { %2702 = vrot.lane.b32.xlu0 %v2688_v62, %s6881_s18 }
 0x1ab   : > { %2708 = vrot.lane.b32.xlu1 %v2691_v0, %s6881_s18 }
 0x1ac   : > { %2698 = vrot.lane.b32.xlu0 %v2686_v30, %s6881_s18 }
 0x1af   : > { %2712 = vrot.lane.b32.xlu1 %v2680_v39, %s6881_s18  ;;  %v7776_v39 = vld [vmem:[%s8581_s3 + $0x60] sm:$0xff] }
 0x1b0   : > { %2710 = vrot.lane.b32.xlu0 %v2678_v29, %s6881_s18 }
 0x1b4   : > { %2714 = vrot.lane.b32.xlu0 %v2682_v27, %s6881_s18  ;;  %s456_s18 = scalar_lea.vmem %s8586_s8, %s6963_s19 }
 0x215   : > { %v2705_v33 = vpop.permute.xlu1 %2704 }
 0x216   : > { %2734 = vst.msk [vmem:[#allocation2 + $0x18] sm:$0xff] %vm520_vm11, %v2705_v33  ;;  %v2707_v23 = vpop.permute.xlu0 %2706 }
 0x217   : > { %v7618_v51 = vsel %vm503_vm12, %v2705_v33, %v2707_v23 }
 0x219   : > { %v2701_v49 = vpop.permute.xlu1 %2700 }
 0x21a   : > { %v2703_v1 = vpop.permute.xlu0 %2702 }
 0x21b   : > { %v2717_v40 = vsel %vm503_vm12, %v2701_v49, %v2703_v1 }
 0x21c   : > { %2733 = vst.msk [vmem:[#allocation2 + $0x10] sm:$0xff] %vm537_vm10, %v2717_v40 }
 0x21d   : > { %v2709_v24 = vpop.permute.xlu1 %2708  ;;  %v7633_v28 = vld [vmem:[#allocation2 + $0x18] sm:$0xff] }
 0x21e   : > { %v2719_v4 = vsel %vm503_vm12, %v2707_v23, %v2709_v24  ;;  %v2699_v54 = vpop.permute.xlu0 %2698  ;;  %v7788_v24 = vld [vmem:[%s8581_s3 + $0x68] sm:$0xff] }
 0x21f   : > { %2736 = vst.msk [vmem:[#allocation2 + $0x28] sm:$0xff] %vm537_vm10, %v2719_v4  ;;  %v7625_v8 = vsel %vm503_vm12, %v2699_v54, %v2701_v49  ;;  %vm2803_vm10 = vcmask 179200  }
 0x220   : > { %2731 = vst.msk [vmem:[#allocation2] sm:$0xff] %vm520_vm11, %v2699_v54  ;;  %v6281_v46 = vpack.c.bf16 %v7618_v51, %v7625_v8  ;;  %vm8598_vm11 = vcmask 736256  }
 0x221   : > { %v2713_v34 = vpop.permute.xlu1 %2712 }
 0x222   : > { %v2711_v6 = vpop.permute.xlu0 %2710 }
 0x223   : > { %2738 = vst.msk [vmem:[#allocation2 + $0x30] sm:$0x3f] %vm2737_vm0, %v2711_v6  ;;  %v2720_v36 = vsel %vm503_vm12, %v2711_v6, %v2713_v34  ;;  %v2744_v61 = vld [vmem:[#allocation2 + $0x10] sm:$0xff]  ;;  %vm1032_vm0 = vcmask 556032  }
 0x224   : > { %2739 = vst [vmem:[#allocation2 + $0x38] sm:$0x3f] %v2720_v36  ;;  %v6662_v14 = vpack.i.bf16 %v2744_v61, %v7625_v8 }
 0x226   : > { %v2715_v12 = vpop.permute.xlu0 %2714  ;;  %v2747_v22 = vld [vmem:[#allocation2 + $0x28] sm:$0xff] }
 0x227   : > { %v7631_v26 = vld [vmem:[#allocation2] sm:$0xff]  ;;  %v2721_v37 = vsel %vm503_vm12, %v2713_v34, %v2715_v12  ;;  %v6652_v45 = vpack.i.bf16 %v2747_v22, %v7618_v51  ;;  %v7643_v32 = vpack.c.bf16 %v2747_v22, %v2744_v61  ;;  %v7799_v22 = vld [vmem:[%s8581_s3 + $0x70] sm:$0xff]  ;;  %vm8599_vm12 = vmmov %vm8598_vm11 }
 0x228   : > { %v6657_v25 = vpack.i.bf16 %v7633_v28, %v7631_v26  ;;  %2741 = vst.msk [vmem:[#allocation2 + $0x40] sm:$0x3f] %vm2740_vm15, %v2721_v37  ;;  %v6283_v47 = vpack.c.bf16 %v7633_v28, %v7631_v26  ;;  %vm1036_vm15 = vcmask 548864  }
 0x229   : > { %6653 = vrot.lane.b32.xlu0 %v6652_v45, %s6873_s23 }
 0x22a   : > { %6658 = vrot.lane.b32.xlu1 %v6657_v25, %s6873_s23  ;;  %v7653_v38 = vld [vmem:[#allocation2 + $0x30] sm:$0x3f] }
 0x22b   : > { %v7646_v35 = vld [vmem:[#allocation2 + $0x38] sm:$0x3f] }
 0x22d   : > { %3265 = vrot.lane.b32.xlu0 %v7646_v35, %s6873_s23 }
 0x22e   : > { %6663 = vrot.lane.b32.xlu1 %v6662_v14, %s6873_s23 }
 0x22f   : > { %v7651_v19 = vld [vmem:[#allocation2 + $0x40] sm:$0x3f] }
 0x231   : > { %3263 = vrot.lane.b32.xlu0 %v7653_v38, %s6873_s23 }
 0x232   : > { %3267 = vrot.lane.b32.xlu1 %v7651_v19, %s6873_s23 }
 0x235   : > { %6668 = vrot.lane.b32.xlu0 %v6652_v45, %s6875_s27 }
 0x236   : > { %6673 = vrot.lane.b32.xlu1 %v6662_v14, %s6875_s27 }
 0x239   : > { %2787 = vrot.lane.b32.xlu0 %v7646_v35, %s6875_s27 }
 0x23a   : > { %6678 = vrot.lane.b32.xlu1 %v6657_v25, %s6875_s27 }
 0x23d   : > { %2785 = vrot.lane.b32.xlu0 %v7653_v38, %s6875_s27 }
 0x23e   : > { %2789 = vrot.lane.b32.xlu1 %v7651_v19, %s6875_s27 }
 0x241   : > { %6683 = vrot.lane.b32.xlu0 %v6652_v45, %s6874_s26 }
 0x242   : > { %6688 = vrot.lane.b32.xlu1 %v6662_v14, %s6874_s26 }
 0x245   : > { %3540 = vrot.lane.b32.xlu0 %v7646_v35, %s6874_s26 }
 0x246   : > { %6693 = vrot.lane.b32.xlu1 %v6657_v25, %s6874_s26 }
 0x249   : > { %3538 = vrot.lane.b32.xlu0 %v7653_v38, %s6874_s26 }
 0x24a   : > { %3542 = vrot.lane.b32.xlu1 %v7651_v19, %s6874_s26 }
 0x24d   : > { %6698 = vrot.lane.b32.xlu0 %v6652_v45, %s6876_s28 }
 0x24e   : > { %6703 = vrot.lane.b32.xlu1 %v6662_v14, %s6876_s28 }
 0x251   : > { %3815 = vrot.lane.b32.xlu0 %v7646_v35, %s6876_s28 }
 0x252   : > { %6708 = vrot.lane.b32.xlu1 %v6657_v25, %s6876_s28 }
 0x255   : > { %3813 = vrot.lane.b32.xlu0 %v7653_v38, %s6876_s28 }
 0x256   : > { %3817 = vrot.lane.b32.xlu1 %v7651_v19, %s6876_s28 }
 0x259   : > { %6713 = vrot.lane.b32.xlu0 %v6652_v45, %s6877_s29 }
 0x25a   : > { %6718 = vrot.lane.b32.xlu1 %v6662_v14, %s6877_s29 }
 0x25d   : > { %4090 = vrot.lane.b32.xlu0 %v7646_v35, %s6877_s29 }
 0x25e   : > { %6723 = vrot.lane.b32.xlu1 %v6657_v25, %s6877_s29 }
 0x261   : > { %4088 = vrot.lane.b32.xlu0 %v7653_v38, %s6877_s29 }
 0x262   : > { %4092 = vrot.lane.b32.xlu1 %v7651_v19, %s6877_s29 }
 0x265   : > { %6728 = vrot.lane.b32.xlu0 %v6652_v45, %s6878_s30 }
 0x266   : > { %6733 = vrot.lane.b32.xlu1 %v6662_v14, %s6878_s30 }
 0x269   : > { %4365 = vrot.lane.b32.xlu0 %v7646_v35, %s6878_s30 }
 0x26a   : > { %6738 = vrot.lane.b32.xlu1 %v6657_v25, %s6878_s30 }
 0x26d   : > { %4363 = vrot.lane.b32.xlu0 %v7653_v38, %s6878_s30 }
 0x26e   : > { %4367 = vrot.lane.b32.xlu1 %v7651_v19, %s6878_s30 }
 0x271   : > { %6743 = vrot.lane.b32.xlu0 %v6652_v45, %s6879_s12 }
 0x272   : > { %6748 = vrot.lane.b32.xlu1 %v6662_v14, %s6879_s12 }
 0x275   : > { %4640 = vrot.lane.b32.xlu0 %v7646_v35, %s6879_s12 }
 0x276   : > { %6753 = vrot.lane.b32.xlu1 %v6657_v25, %s6879_s12 }
 0x279   : > { %4638 = vrot.lane.b32.xlu0 %v7653_v38, %s6879_s12 }
 0x27a   : > { %4642 = vrot.lane.b32.xlu1 %v7651_v19, %s6879_s12 }
 0x27d   : > { %6758 = vrot.lane.b32.xlu0 %v6652_v45, %s6880_s13 }
 0x27e   : > { %6763 = vrot.lane.b32.xlu1 %v6662_v14, %s6880_s13  ;;  %v7808_v14 = vld [vmem:[%s8581_s3 + $0x30] sm:$0xff] }
 0x281   : > { %4915 = vrot.lane.b32.xlu0 %v7646_v35, %s6880_s13 }
 0x282   : > { %6768 = vrot.lane.b32.xlu1 %v6657_v25, %s6880_s13 }
 0x285   : > { %4913 = vrot.lane.b32.xlu0 %v7653_v38, %s6880_s13 }
 0x286   : > { %4917 = vrot.lane.b32.xlu1 %v7651_v19, %s6880_s13 }
 0x289   : > { %5182 = vperm.xlu0 %6772, %v5170_v50  }
 0x28a   : > { %5177 = vperm.xlu1 %6651, %v5169_v48  }
 0x28d   : > { %5202 = vperm.xlu0 %6772, %v5174_v17  }
 0x28e   : > { %5187 = vperm.xlu1 %6651, %v5171_v43  }
 0x291   : > { %1008 = vrot.lane.b32.xlu0 %v7545_v41, %s6876_s28 }
 0x292   : > { %5197 = vperm.xlu1 %6651, %v5173_v52   ;;  %v7814_v52 = vld [vmem:[%s8581_s3 + $0x78] sm:$0xff] }
 0x295   : > { %1012 = vrot.lane.b32.xlu0 %v7552_v56, %s6876_s28 }
 0x296   : > { %5192 = vperm.xlu1 %6651, %v5172_v13  }
 0x299   : > { %1016 = vrot.lane.b32.xlu0 %v7562_v2, %s6876_s28 }
 0x29a   : > { %1010 = vrot.lane.b32.xlu1 %v7550_v9, %s6876_s28 }
 0x29b   : > { %v7748_v42 = vpop.permute.xlu0 %6653 }
 0x29c   : > { %v6659_v18 = vpop.permute.xlu1 %6658  ;;  %v6656_v41 = vunpack.i.h.bf16 %v7748_v42  ;;  %v6655_v53 = vunpack.i.l.bf16 %v7748_v42 }
 0x29d   : > { %v6661_v55 = vunpack.i.h.bf16 %v6659_v18  ;;  %v6660_v56 = vunpack.i.l.bf16 %v6659_v18 }
 0x29e   : > { %1014 = vrot.lane.b32.xlu1 %v7559_v5, %s6876_s28  ;;  %v3272_v11 = vsel %vm1378_vm1, %v6655_v53, %v6656_v41 }
 0x29f   : > { %v3266_v44 = vpop.permute.xlu0 %3265  ;;  %v3271_v2 = vsel %vm1378_vm1, %v6661_v55, %v6655_v53 }
 0x2a0   : > { %v7754_v3 = vpop.permute.xlu1 %6663 }
 0x2a1   : > { %v6666_v9 = vunpack.i.h.bf16 %v7754_v3  ;;  %v6665_v59 = vunpack.i.l.bf16 %v7754_v3  ;;  %v2753_v3 = vld [vmem:[%s8581_s3 + $0x10] sm:$0xff] }
 0x2a2   : > { %1018 = vrot.lane.b32.xlu1 %v7564_v21, %s6876_s28  ;;  %s466_s28 = scalar_lea.vmem %s8588_s10, %s6963_s19 }
 0x2a3   : > { %v3269_v5 = vsel %vm1378_vm1, %v6660_v56, %v6665_v59  ;;  %v3270_v60 = vsel %vm1378_vm1, %v6665_v59, %v6666_v9  ;;  %v3264_v16 = vpop.permute.xlu0 %3263  ;;  %v7828_v59 = vld [vmem:[%s8581_s3 + $0x38] sm:$0xff] }
 0x2a4   : > { %v6291_v58 = vpack.c.bf16 %v3271_v2, %v3269_v5  ;;  %v7768_v20 = vpop.permute.xlu1 %3267  ;;  %v6289_v62 = vpack.c.bf16 %v3272_v11, %v3270_v60  ;;  %v3273_v29 = vsel %vm1378_vm1, %v3264_v16, %v3266_v44  ;;  %v7835_v60 = vld [vmem:[%s8581_s3 + $0x80] sm:$0xff] }
 0x2a5   : > { %v3274_v21 = vsel %vm1378_vm1, %v3266_v44, %v7768_v20  ;;  %vm8593_vm1 = vcmask 744448  }
 0x2a6   : > { %6290 = vmatprep.subr.bf16.mxu0 %v6289_v62  ;;  %vm8600_vm8 = vmmov %vm8593_vm1 }
 0x2a7   : > { %6292 = vmatpush1.bf16.msra.mxu0 %v6291_v58  ;;  %v6669_v63 = vpop.permute.xlu0 %6668 }
 0x2a8   : > { %v6674_v10 = vpop.permute.xlu1 %6673  ;;  %5746 = vmatprep.subr.msk.mxu0 %vm976_vm6, %v3274_v21  ;;  %v6671_v15 = vunpack.i.h.bf16 %v6669_v63  ;;  %v6670_v0 = vunpack.i.l.bf16 %v6669_v63  ;;  %v7850_v63 = vld [vmem:[%s8581_s3 + $0x40] sm:$0xff] }
 0x2a9   : > { %v6676_v7 = vunpack.i.h.bf16 %v6674_v10  ;;  %v6675_v30 = vunpack.i.l.bf16 %v6674_v10 }
 0x2aa   : > { %v2794_v27 = vsel %vm752_vm3, %v6670_v0, %v6671_v15 }
 0x2ab   : > { %5747 = vmatpush1.msk.msra.mxu0 %vm976_vm6, %v3273_v29  ;;  %v2792_v57 = vsel %vm752_vm3, %v6675_v30, %v6676_v7  ;;  %v2788_v33 = vpop.permute.xlu0 %2787  ;;  %v6277_v37 = vpack.c.bf16 %v6671_v15, %v6676_v7  ;;  %v7861_v15 = vld [vmem:[%s8581_s3 + $0x88] sm:$0xf] }
 0x2ac   : > { %v6679_v23 = vpop.permute.xlu1 %6678  ;;  %5748 = vmatmul.mubr.msk.f32.vlgmr.msra.gmra.mrb[2].mxu0 %vm2803_vm10, %v7776_v39  ;;  %v6273_v49 = vpack.c.bf16 %v2794_v27, %v2792_v57  ;;  %v7880_v27 = vld [vmem:[%s8581_s3 + $0x90] sm:$0xff] }
 0x2ad   : > { %v6681_v1 = vunpack.i.h.bf16 %v6679_v23  ;;  %v6680_v40 = vunpack.i.l.bf16 %v6679_v23  ;;  %3375 = vmatprep.mubr.f32.mxu0 %v7580_v31 }
 0x2ae   : > { %6274 = vmatprep.subr.bf16.mxu1 %v6273_v49 }
 0x2af   : > { %v2793_v4 = vsel %vm752_vm3, %v6681_v1, %v6670_v0  ;;  %v2791_v54 = vsel %vm752_vm3, %v6680_v40, %v6675_v30  ;;  %v2786_v6 = vpop.permute.xlu0 %2785  ;;  %v7874_v0 = vld [vmem:[%s8581_s3 + $0x48] sm:$0xff] }
 0x2b0   : > { %v6275_v34 = vpack.c.bf16 %v2793_v4, %v2791_v54  ;;  %v2790_v36 = vpop.permute.xlu1 %2789  ;;  %5749 = vmatmul.mubr.msk.f32.gmra.mrb[4].mxu0 %vm2803_vm10, %v7788_v24  ;;  %v2795_v25 = vsel %vm752_vm3, %v2786_v6, %v2788_v33  ;;  %v5708_v54 = vld [vmem:[%s8581_s3 + $0x50] sm:$0xff] }
 0x2b1   : > { %v2796_v12 = vsel %vm752_vm3, %v2788_v33, %v2790_v36  ;;  %3381 = vmatprep.mubr.f32.mxu0 %v7580_v31  ;;  %vm8595_vm3 = vmmov %vm8593_vm1 }
 0x2b2   : > { %6276 = vmatpush1.bf16.msra.mxu1 %v6275_v34 }
 0x2b3   : > { %5710 = vmatprep.subr.msk.mxu1 %vm976_vm6, %v2796_v12  ;;  %v6684_v45 = vpop.permute.xlu0 %6683 }
 0x2b4   : > { %v6689_v61 = vpop.permute.xlu1 %6688  ;;  %5750 = vmatmul.mubr.msk.f32.gmra.mrb[6].mxu0 %vm2803_vm10, %v7799_v22  ;;  %v6686_v48 = vunpack.i.h.bf16 %v6684_v45  ;;  %v6685_v50 = vunpack.i.l.bf16 %v6684_v45 }
 0x2b5   : > { %v6691_v43 = vunpack.i.h.bf16 %v6689_v61  ;;  %v6690_v17 = vunpack.i.l.bf16 %v6689_v61  ;;  %3387 = vmatprep.mubr.f32.mxu0 %v7580_v31 }
 0x2b6   : > { %5711 = vmatpush1.msk.msra.mxu1 %vm976_vm6, %v2795_v25  ;;  %v3547_v53 = vsel %vm860_vm2, %v6685_v50, %v6686_v48 }
 0x2b7   : > { %v7817_v13 = vpack.c.bf16 %v6686_v48, %v6691_v43  ;;  %5712 = vmatmul.mubr.msk.f32.vlgmr.msra.gmra.mrb[20].mxu1 %vm2803_vm10, %v7808_v14  ;;  %6278 = vmatprep.subr.bf16.mxu1 %v6277_v37  ;;  %v3545_v18 = vsel %vm860_vm2, %v6690_v17, %v6691_v43  ;;  %v3541_v55 = vpop.permute.xlu0 %3540  ;;  %v5709_v48 = vld [vmem:[%s8581_s3 + $0x58] sm:$0xf]  ;;  %v7918_v43 = vld [vmem:[%s8581_s3 + $0xa0] sm:$0xff] }
 0x2b8   : > { %v6694_v44 = vpop.permute.xlu1 %6693  ;;  %6280 = vmatpush3.bf16.msra.mxu1 %v6277_v37  ;;  %5751 = vmatmul.mubr.msk.f32.gmra.mrb[8].mxu0 %vm2803_vm10, %v7814_v52  ;;  %v6297_v56 = vpack.c.bf16 %v3547_v53, %v3545_v18 }
 0x2b9   : > { %v6696_v2 = vunpack.i.h.bf16 %v6694_v44  ;;  %v6695_v5 = vunpack.i.l.bf16 %v6694_v44  ;;  %6079 = vmatprep.subr.msk.mxu1 %vm976_vm6, %v2790_v36  ;;  %2898 = vmatprep.mubr.f32.mxu1 %v7580_v31 }
 0x2ba   : > { %6298 = vmatprep.subr.bf16.mxu0 %v6297_v56  ;;  %3393 = vmatprep.mubr.f32.mxu0 %v7580_v31 }
 0x2bb   : > { %v3546_v11 = vsel %vm860_vm2, %v6696_v2, %v6685_v50  ;;  %v3544_v58 = vsel %vm860_vm2, %v6695_v5, %v6690_v17  ;;  %5713 = vmatmul.mubr.msk.f32.gmra.mrb[22].mxu1 %vm2803_vm10, %v7828_v59  ;;  %v3539_v62 = vpop.permute.xlu0 %3538  ;;  %v7931_v5 = vld [vmem:[%s8581_s3 + $0xa8] sm:$0xff] }
 0x2bc   : > { %v6299_v16 = vpack.c.bf16 %v3546_v11, %v3544_v58  ;;  %v7842_v21 = vpop.permute.xlu1 %3542  ;;  %6080 = vmatpush3.msk.msra.mxu1 %vm976_vm6, %v2790_v36  ;;  %5752 = vmatmul.mubr.msk.f32.gmra.mrb[10].mxu0 %vm2803_vm10, %v7835_v60  ;;  %v3548_v51 = vsel %vm860_vm2, %v3539_v62, %v3541_v55  ;;  %v7899_v36 = vld [vmem:[%s8581_s3 + $0x98] sm:$0xff] }
 0x2bd   : > { %6282 = vmatprep.subr.bf16.mxu1 %v6281_v46  ;;  %2904 = vmatprep.mubr.f32.mxu1 %v7580_v31  ;;  %v3549_v10 = vsel %vm860_vm2, %v3541_v55, %v7842_v21  ;;  %vm8594_vm2 = vmmov %vm8593_vm1 }
 0x2be   : > { %6300 = vmatpush1.bf16.msra.mxu0 %v6299_v16  ;;  %3399 = vmatprep.mubr.f32.mxu0 %v7580_v31 }
 0x2bf   : > { %5714 = vmatmul.mubr.msk.f32.gmra.mrb[24].mxu1 %vm2803_vm10, %v7850_v63  ;;  %5767 = vmatprep.subr.msk.mxu0 %vm976_vm6, %v3549_v10  ;;  %v6699_v8 = vpop.permute.xlu0 %6698 }
 0x2c0   : > { %v6704_v46 = vpop.permute.xlu1 %6703  ;;  %5753 = vmatmul.mubr.msk.f32.gmra.mrb[12].mxu0 %vm2803_vm10, %v7861_v15  ;;  %2910 = vmatprep.mubr.f32.mxu1 %v7580_v31  ;;  %v6701_v7 = vunpack.i.h.bf16 %v6699_v8  ;;  %v6700_v30 = vunpack.i.l.bf16 %v6699_v8 }
 0x2c1   : > { %v6706_v29 = vunpack.i.h.bf16 %v6704_v46  ;;  %v6705_v57 = vunpack.i.l.bf16 %v6704_v46  ;;  %3644 = vmatprep.mubr.f32.mxu0 %v7580_v31 }
 0x2c2   : > { %5768 = vmatpush1.msk.msra.mxu0 %vm976_vm6, %v3548_v51  ;;  %v3822_v49 = vsel %vm914_vm4, %v6700_v30, %v6701_v7 }
 0x2c3   : > { %v7883_v33 = vpack.c.bf16 %v6701_v7, %v6706_v29  ;;  %5715 = vmatmul.mubr.msk.f32.gmra.mrb[26].mxu1 %vm2803_vm10, %v7874_v0  ;;  %v3820_v23 = vsel %vm914_vm4, %v6705_v57, %v6706_v29  ;;  %v3816_v1 = vpop.permute.xlu0 %3815 }
 0x2c4   : > { %v6709_v40 = vpop.permute.xlu1 %6708  ;;  %5769 = vmatmul.mubr.msk.f32.vlgmr.msra.gmra.mrb[2].mxu0 %vm2803_vm10, %v7880_v27  ;;  %2916 = vmatprep.mubr.f32.mxu1 %v7580_v31  ;;  %v6305_v4 = vpack.c.bf16 %v3822_v49, %v3820_v23  ;;  %v7994_v23 = vld [vmem:[%s8581_s3 + $0xc0] sm:$0xff] }
 0x2c5   : > { %v6711_v34 = vunpack.i.h.bf16 %v6709_v40  ;;  %v6710_v6 = vunpack.i.l.bf16 %v6709_v40  ;;  %3650 = vmatprep.mubr.f32.mxu0 %v7580_v31 }
 0x2c6   : > { %6306 = vmatprep.subr.bf16.mxu0 %v6305_v4  ;;  %v8006_v4 = vld [vmem:[%s8581_s3 + $0x8] sm:$0xff] }
 0x2c7   : > { %v3821_v12 = vsel %vm914_vm4, %v6711_v34, %v6700_v30  ;;  %v3819_v37 = vsel %vm914_vm4, %v6710_v6, %v6705_v57  ;;  %5716 = vmatmul.mubr.msk.f32.gmra.mrb[28].mxu1 %vm2803_vm10, %v5708_v54  ;;  %v3814_v45 = vpop.permute.xlu0 %3813 }
 0x2c8   : > { %v6307_v25 = vpack.c.bf16 %v3821_v12, %v3819_v37  ;;  %v7904_v61 = vpop.permute.xlu1 %3817  ;;  %5770 = vmatmul.mubr.msk.f32.gmra.mrb[4].mxu0 %vm2803_vm10, %v7899_v36  ;;  %2922 = vmatprep.mubr.f32.mxu1 %v7580_v31  ;;  %v3823_v17 = vsel %vm914_vm4, %v3814_v45, %v3816_v1  ;;  %v6293_v12 = vpack.c.bf16 %v6656_v41, %v6666_v9  ;;  %v8046_v9 = vld [vmem:[%s8581_s3 + $0xd0] sm:$0xff]  ;;  %v8061_v45 = vld [vmem:[%s8581_s3 + $0xd8] sm:$0xff] }
 0x2c9   : > { %3656 = vmatprep.mubr.f32.mxu0 %v7580_v31  ;;  %v3824_v50 = vsel %vm914_vm4, %v3816_v1, %v7904_v61 }
 0x2ca   : > { %6308 = vmatpush1.bf16.msra.mxu0 %v6307_v25 }
 0x2cb   : > { %5717 = vmatmul.mubr.msk.f32.gmra.mrb[30].mxu1 %vm2803_vm10, %v5709_v48  ;;  %5788 = vmatprep.subr.msk.mxu0 %vm976_vm6, %v3824_v50  ;;  %v6714_v18 = vpop.permute.xlu0 %6713 }
 0x2cc   : > { %v6719_v53 = vpop.permute.xlu1 %6718  ;;  %5771 = vmatmul.mubr.msk.f32.gmra.mrb[6].mxu0 %vm2803_vm10, %v7918_v43  ;;  %6081 = vmatprep.mubr.msk.f32.mxu1 %vm2803_vm10, %v7808_v14  ;;  %v6716_v55 = vunpack.i.h.bf16 %v6714_v18  ;;  %v6715_v44 = vunpack.i.l.bf16 %v6714_v18  ;;  %v8078_v18 = vld [vmem:[%s8581_s3 + $0xe0] sm:$0xff] }
 0x2cd   : > { %v6721_v56 = vunpack.i.h.bf16 %v6719_v53  ;;  %v6720_v2 = vunpack.i.l.bf16 %v6719_v53  ;;  %3662 = vmatprep.mubr.f32.mxu0 %v7580_v31 }
 0x2ce   : > { %5789 = vmatpush1.msk.msra.mxu0 %vm976_vm6, %v3823_v17  ;;  %v4097_v58 = vsel %vm1892_vm5, %v6715_v44, %v6716_v55  ;;  %v2755_v17 = vld [vmem:[%s8581_s3 + $0x20] sm:$0xff] }
 0x2cf   : > { %v7934_v11 = vpack.c.bf16 %v6716_v55, %v6721_v56  ;;  %6082 = vmatmul.mubr.msk.f32.vlgmr.msra.gmra.mrb[32].mxu1 %vm2803_vm10, %v7828_v59  ;;  %v4095_v14 = vsel %vm1892_vm5, %v6720_v2, %v6721_v56  ;;  %v4091_v16 = vpop.permute.xlu0 %4090  ;;  %v7952_v59 = vld [vmem:[%s8581_s3 + $0xb0] sm:$0xff] }
 0x2d0   : > { %6284 = vmatpush1.bf16.msra.mxu1 %v6283_v47  ;;  %v6724_v62 = vpop.permute.xlu1 %6723  ;;  %5772 = vmatmul.mubr.msk.f32.gmra.mrb[8].mxu0 %vm2803_vm10, %v7931_v5  ;;  %v6313_v10 = vpack.c.bf16 %v4097_v58, %v4095_v14  ;;  %v8095_v14 = vld [vmem:[%s8581_s3 + $0xe8] sm:$0xf] }
 0x2d1   : > { %5725 = vmatprep.subr.msk.mxu1 %vm976_vm6, %v7646_v35  ;;  %6084 = vmatprep.mubr.msk.f32.mxu1 %vm2803_vm10, %v7850_v63  ;;  %v6726_v26 = vunpack.i.h.bf16 %v6724_v62  ;;  %v6725_v28 = vunpack.i.l.bf16 %v6724_v62  ;;  %v7968_v63 = vld [vmem:[%s8581_s3 + $0xb8] sm:$0xf] }
 0x2d2   : > { %6314 = vmatprep.subr.bf16.mxu0 %v6313_v10  ;;  %3668 = vmatprep.mubr.f32.mxu0 %v7580_v31 }
 0x2d3   : > { %6085 = vmatmul.mubr.msk.f32.gmra.mrb[34].mxu1 %vm2803_vm10, %v7874_v0  ;;  %v4089_v47 = vpop.permute.xlu0 %4088  ;;  %v4094_v51 = vsel %vm1892_vm5, %v6725_v28, %v6720_v2  ;;  %v7984_v0 = vld [vmem:[%s8581_s3] sm:$0xff] }
 0x2d4   : > { %5726 = vmatpush1.msk.msra.mxu1 %vm976_vm6, %v7653_v38  ;;  %v7959_v35 = vpop.permute.xlu1 %4092  ;;  %5773 = vmatmul.mubr.msk.f32.gmra.mrb[10].mxu0 %vm2803_vm10, %v7952_v59  ;;  %v4096_v38 = vsel %vm1892_vm5, %v6726_v26, %v6715_v44  ;;  %v4098_v37 = vsel %vm1892_vm5, %v4089_v47, %v4091_v16  ;;  %v2756_v44 = vld [vmem:[%s8581_s3 + $0x28] sm:$0xf]  ;;  %v8112_v47 = vld [vmem:[%s8581_s3 + $0xf0] sm:$0xff] }
 0x2d5   : > { %6286 = vmatprep.subr.bf16.mxu1 %v7643_v32  ;;  %6087 = vmatprep.mubr.msk.f32.mxu1 %vm2803_vm10, %v5708_v54  ;;  %v6315_v49 = vpack.c.bf16 %v4096_v38, %v4094_v51  ;;  %v4099_v54 = vsel %vm1892_vm5, %v4091_v16, %v7959_v35  ;;  %vm8596_vm5 = vmmov %vm8593_vm1 }
 0x2d6   : > { %3674 = vmatprep.mubr.f32.mxu0 %v7580_v31 }
 0x2d7   : > { %6088 = vmatmul.mubr.msk.f32.gmra.mrb[36].mxu1 %vm2803_vm10, %v5709_v48  ;;  %v7974_v8 = vpop.permute.xlu0 %6728 }
 0x2d8   : > { %v7976_v46 = vpop.permute.xlu1 %6733  ;;  %5774 = vmatmul.mubr.msk.f32.gmra.mrb[12].mxu0 %vm2803_vm10, %v7968_v63  ;;  %3112 = vmatprep.mubr.f32.mxu1 %v7580_v31  ;;  %v6731_v7 = vunpack.i.h.bf16 %v7974_v8  ;;  %v6730_v30 = vunpack.i.l.bf16 %v7974_v8 }
 0x2d9   : > { %v6736_v29 = vunpack.i.h.bf16 %v7976_v46  ;;  %v6735_v57 = vunpack.i.l.bf16 %v7976_v46  ;;  %3919 = vmatprep.mubr.f32.mxu0 %v7580_v31 }
 0x2da   : > { %v4372_v6 = vsel %vm2064_vm7, %v6730_v30, %v6731_v7 }
 0x2db   : > { %5727 = vmatmul.mubr.msk.f32.vlgmr.msra.gmra.mrb[20].mxu1 %vm2803_vm10, %v7984_v0  ;;  %v7999_v1 = vpop.permute.xlu0 %4365  ;;  %v4370_v34 = vsel %vm2064_vm7, %v6735_v57, %v6736_v29 }
 0x2dc   : > { %6288 = vmatpush3.bf16.msra.mxu1 %v7643_v32  ;;  %v6739_v40 = vpop.permute.xlu1 %6738  ;;  %5790 = vmatmul.mubr.msk.f32.vlgmr.msra.gmra.mrb[2].mxu0 %vm2803_vm10, %v7994_v23  ;;  %v8015_v32 = vld [vmem:[%s8581_s3 + $0xc8] sm:$0xff]  ;;  %v6321_v25 = vpack.c.bf16 %v4372_v6, %v4370_v34 }
 0x2dd   : > { %6094 = vmatprep.subr.msk.mxu1 %vm976_vm6, %v7651_v19  ;;  %6316 = vmatpush1.bf16.msra.mxu0 %v6315_v49  ;;  %v6741_v53 = vunpack.i.h.bf16 %v6739_v40  ;;  %v6740_v55 = vunpack.i.l.bf16 %v6739_v40 }
 0x2de   : > { %5809 = vmatprep.subr.msk.mxu0 %vm976_vm6, %v4099_v54  ;;  %3118 = vmatprep.mubr.f32.mxu1 %v7580_v31 }
 0x2df   : > { %5728 = vmatmul.mubr.msk.f32.gmra.mrb[22].mxu1 %vm2803_vm10, %v8006_v4  ;;  %3925 = vmatprep.mubr.f32.mxu0 %v7580_v31  ;;  %v4364_v42 = vpop.permute.xlu0 %4363  ;;  %v4371_v58 = vsel %vm2064_vm7, %v6741_v53, %v6730_v30  ;;  %v4369_v16 = vsel %vm2064_vm7, %v6740_v55, %v6735_v57  ;;  %v8130_v57 = vld [vmem:[%s8581_s3 + $0xf8] sm:$0xff]  ;;  %v8232_v55 = vld [vmem:[%s8581_s3 + $0x120] sm:$0xff] }
 0x2e0   : > { %6095 = vmatpush3.msk.msra.mxu1 %vm976_vm6, %v7651_v19  ;;  %5791 = vmatmul.mubr.msk.f32.gmra.mrb[4].mxu0 %vm2803_vm10, %v8015_v32  ;;  %v8040_v41 = vpop.permute.xlu1 %4367  ;;  %v2754_v19 = vld [vmem:[%s8581_s3 + $0x18] sm:$0xff]  ;;  %v6323_v38 = vpack.c.bf16 %v4371_v58, %v4369_v16 }
 0x2e1   : > { %6294 = vmatprep.subr.bf16.mxu1 %v6293_v12  ;;  %5810 = vmatpush1.msk.msra.mxu0 %vm976_vm6, %v4098_v37 }
 0x2e2   : > { %6322 = vmatprep.subr.bf16.mxu0 %v6321_v25  ;;  %3124 = vmatprep.mubr.f32.mxu1 %v7580_v31 }
 0x2e3   : > { %5729 = vmatmul.mubr.msk.f32.gmra.mrb[24].mxu1 %vm2803_vm10, %v2753_v3  ;;  %3931 = vmatprep.mubr.f32.mxu0 %v7580_v31  ;;  %v8063_v48 = vpop.permute.xlu0 %6743 }
 0x2e4   : > { %5792 = vmatmul.mubr.msk.f32.gmra.mrb[6].mxu0 %vm2803_vm10, %v8046_v9  ;;  %3130 = vmatprep.mubr.f32.mxu1 %v7580_v31  ;;  %v8065_v50 = vpop.permute.xlu1 %6748  ;;  %v6746_v62 = vunpack.i.h.bf16 %v8063_v48  ;;  %v6745_v10 = vunpack.i.l.bf16 %v8063_v48  ;;  %v5847_v48 = vld [vmem:[%s8581_s3 + $0x160] sm:$0xff] }
 0x2e5   : > { %3937 = vmatprep.mubr.f32.mxu0 %v7580_v31  ;;  %v6751_v26 = vunpack.i.h.bf16 %v8065_v50  ;;  %v6750_v28 = vunpack.i.l.bf16 %v8065_v50  ;;  %v5849_v50 = vld [vmem:[%s8581_s3 + $0x170] sm:$0xff] }
 0x2e6   : > { %v4647_v40 = vsel %vm8594_vm2, %v6745_v10, %v6746_v62 }
 0x2e7   : > { %5730 = vmatmul.mubr.msk.f32.gmra.mrb[26].mxu1 %vm2803_vm10, %v2754_v19  ;;  %v8087_v56 = vpop.permute.xlu0 %4640  ;;  %v4645_v49 = vsel %vm8593_vm1, %v6750_v28, %v6751_v26 }
 0x2e8   : > { %5793 = vmatmul.mubr.msk.f32.gmra.mrb[8].mxu0 %vm2803_vm10, %v8061_v45  ;;  %3136 = vmatprep.mubr.f32.mxu1 %v7580_v31  ;;  %v8089_v2 = vpop.permute.xlu1 %6753  ;;  %v6329_v54 = vpack.c.bf16 %v4647_v40, %v4645_v49 }
 0x2e9   : > { %3943 = vmatprep.mubr.f32.mxu0 %v7580_v31 }
 0x2eb   : > { %5731 = vmatmul.mubr.msk.f32.gmra.mrb[28].mxu1 %vm2803_vm10, %v2755_v17  ;;  %v8114_v51 = vpop.permute.xlu0 %4638 }
 0x2ec   : > { %5794 = vmatmul.mubr.msk.f32.gmra.mrb[10].mxu0 %vm2803_vm10, %v8078_v18  ;;  %3142 = vmatprep.mubr.f32.mxu1 %v7580_v31  ;;  %v8116_v30 = vpop.permute.xlu1 %4642 }
 0x2ed   : > { %3949 = vmatprep.mubr.f32.mxu0 %v7580_v31 }
 0x2ef   : > { %5732 = vmatmul.mubr.msk.f32.gmra.mrb[30].mxu1 %vm2803_vm10, %v2756_v44  ;;  %v8148_v34 = vpop.permute.xlu0 %6758 }
 0x2f0   : > { %5795 = vmatmul.mubr.msk.f32.gmra.mrb[12].mxu0 %vm2803_vm10, %v8095_v14  ;;  %6096 = vmatprep.mubr.msk.f32.mxu1 %vm2803_vm10, %v7984_v0  ;;  %v4374_v0 = vsel %vm2064_vm7, %v7999_v1, %v8040_v41  ;;  %v8150_v6 = vpop.permute.xlu1 %6763 }
 0x2f1   : > { %4194 = vmatprep.mubr.f32.mxu0 %v7580_v31 }
 0x2f3   : > { %6097 = vmatmul.mubr.msk.f32.vlgmr.msra.gmra.mrb[32].mxu1 %vm2803_vm10, %v8006_v4  ;;  %v4373_v4 = vsel %vm2064_vm7, %v4364_v42, %v7999_v1  ;;  %v8172_v1 = vpop.permute.xlu0 %4915  ;;  %v6760_v42 = vunpack.i.l.bf16 %v8148_v34  ;;  %vm8597_vm7 = vmmov %vm8593_vm1 }
 0x2f4   : > { %6296 = vmatpush3.bf16.msra.mxu1 %v6293_v12  ;;  %5811 = vmatmul.mubr.msk.f32.vlgmr.msra.gmra.mrb[2].mxu0 %vm2803_vm10, %v8112_v47  ;;  %v8157_v12 = vld [vmem:[%s8581_s3 + $0x100] sm:$0xff]  ;;  %v8174_v37 = vpop.permute.xlu1 %6768  ;;  %v4649_v58 = vsel %vm8597_vm7, %v8087_v56, %v8116_v30  ;;  %vm8601_vm1 = vmmov %vm8598_vm11 }
 0x2f5   : > { %6109 = vmatprep.subr.msk.mxu1 %vm976_vm6, %v7768_v20  ;;  %6324 = vmatpush1.bf16.msra.mxu0 %v6323_v38  ;;  %vm8602_vm2 = vmmov %vm8601_vm1 }
 0x2f6   : > { %5830 = vmatprep.subr.msk.mxu0 %vm976_vm6, %v4374_v0  ;;  %6099 = vmatprep.mubr.msk.f32.mxu1 %vm2803_vm10, %v2753_v3  ;;  %v6770_v0 = vunpack.i.l.bf16 %v8174_v37 }
 0x2f7   : > { %6100 = vmatmul.mubr.msk.f32.gmra.mrb[34].mxu1 %vm2803_vm10, %v2754_v19  ;;  %4200 = vmatprep.mubr.f32.mxu0 %v7580_v31  ;;  %v6766_v19 = vunpack.i.h.bf16 %v8150_v6 }
 0x2f8   : > { %6110 = vmatpush3.msk.msra.mxu1 %vm976_vm6, %v7768_v20  ;;  %5812 = vmatmul.mubr.msk.f32.gmra.mrb[4].mxu0 %vm2803_vm10, %v8130_v57  ;;  %v8170_v20 = vld [vmem:[%s8581_s3 + $0x108] sm:$0xff]  ;;  %v8201_v25 = vpop.permute.xlu1 %4917 }
 0x2f9   : > { %6302 = vmatprep.subr.bf16.mxu1 %v7817_v13  ;;  %5831 = vmatpush1.msk.msra.mxu0 %vm976_vm6, %v4373_v4  ;;  %v5846_v4 = vld [vmem:[%s8581_s3 + $0x158] sm:$0xff] }
 0x2fa   : > { %6330 = vmatprep.subr.bf16.mxu0 %v6329_v54  ;;  %6102 = vmatprep.mubr.msk.f32.mxu1 %vm2803_vm10, %v2755_v17  ;;  %v6765_v17 = vunpack.i.l.bf16 %v8150_v6  ;;  %v5868_v6 = vld [vmem:[%s8581_s3 + $0x190] sm:$0xff] }
 0x2fb   : > { %6103 = vmatmul.mubr.msk.f32.gmra.mrb[36].mxu1 %vm2803_vm10, %v2756_v44  ;;  %4206 = vmatprep.mubr.f32.mxu0 %v7580_v31 }
 0x2fc   : > { %5813 = vmatmul.mubr.msk.f32.gmra.mrb[6].mxu0 %vm2803_vm10, %v8157_v12  ;;  %6111 = vmatprep.mubr.msk.f32.mxu1 %vm2803_vm10, %v7776_v39  ;;  %v8188_v39 = vld [vmem:[%s8581_s3 + $0x110] sm:$0xff] }
 0x2fd   : > { %4212 = vmatprep.mubr.f32.mxu0 %v7580_v31 }
 0x2ff   : > { %6112 = vmatmul.mubr.msk.f32.vlgmr.msra.gmra.mrb[32].mxu1 %vm2803_vm10, %v7788_v24  ;;  %v6756_v24 = vunpack.i.h.bf16 %v8089_v2 }
 0x300   : > { %6304 = vmatpush3.bf16.msra.mxu1 %v7817_v13  ;;  %5814 = vmatmul.mubr.msk.f32.gmra.mrb[8].mxu0 %vm2803_vm10, %v8170_v20  ;;  %v6755_v13 = vunpack.i.l.bf16 %v8089_v2 }
 0x301   : > { %6124 = vmatprep.subr.msk.mxu1 %vm976_vm6, %v7842_v21  ;;  %6114 = vmatprep.mubr.msk.f32.mxu1 %vm2803_vm10, %v7799_v22  ;;  %v8199_v22 = vpop.permute.xlu0 %4913 }
 0x302   : > { %4218 = vmatprep.mubr.f32.mxu0 %v7580_v31  ;;  %v4644_v3 = vsel %vm8596_vm5, %v6755_v13, %v6750_v28 }
 0x303   : > { %6115 = vmatmul.mubr.msk.f32.gmra.mrb[34].mxu1 %vm2803_vm10, %v7814_v52  ;;  %v8209_v52 = vld [vmem:[%s8581_s3 + $0x118] sm:$0xf] }
 0x304   : > { %6125 = vmatpush3.msk.msra.mxu1 %vm976_vm6, %v7842_v21  ;;  %5815 = vmatmul.mubr.msk.f32.gmra.mrb[10].mxu0 %vm2803_vm10, %v8188_v39  ;;  %v4646_v21 = vsel %vm8595_vm3, %v6756_v24, %v6745_v10  ;;  %v4648_v10 = vsel %vm8600_vm8, %v8114_v51, %v8087_v56  ;;  %v8322_v56 = vld [vmem:[%s8581_s3 + $0x140] sm:$0xff]  ;;  %vm8603_vm3 = vmmov %vm8601_vm1 }
 0x305   : > { %6310 = vmatprep.subr.bf16.mxu1 %v7883_v33  ;;  %6117 = vmatprep.mubr.msk.f32.mxu1 %vm2803_vm10, %v7835_v60  ;;  %v6761_v60 = vunpack.i.h.bf16 %v8148_v34  ;;  %v5867_v34 = vld [vmem:[%s8581_s3 + $0x188] sm:$0xff] }
 0x306   : > { %4224 = vmatprep.mubr.f32.mxu0 %v7580_v31 }
 0x307   : > { %6118 = vmatmul.mubr.msk.f32.gmra.mrb[36].mxu1 %vm2803_vm10, %v7861_v15  ;;  %v4922_v16 = vsel %vm8599_vm12, %v6760_v42, %v6761_v60 }
 0x308   : > { %5816 = vmatmul.mubr.msk.f32.gmra.mrb[12].mxu0 %vm2803_vm10, %v8209_v52  ;;  %6126 = vmatprep.mubr.msk.f32.mxu1 %vm2803_vm10, %v7880_v27  ;;  %v8224_v53 = vpop.permute.xlu0 %5182  ;;  %v6331_v27 = vpack.c.bf16 %v4646_v21, %v4644_v3 }
 0x309   : > { %v8226_v15 = vpop.permute.xlu1 %5177  ;;  %4469 = vmatprep.mubr.f32.mxu0 %v7580_v31 }
 0x30b   : > { %6127 = vmatmul.mubr.msk.f32.vlgmr.msra.gmra.mrb[32].mxu1 %vm2803_vm10, %v7899_v36  ;;  %v8251_v36 = vld [vmem:[%s8581_s3 + $0x128] sm:$0xff] }
 0x30c   : > { %6312 = vmatpush3.bf16.msra.mxu1 %v7883_v33  ;;  %5832 = vmatmul.mubr.msk.f32.vlgmr.msra.gmra.mrb[2].mxu0 %vm2803_vm10, %v8232_v55  ;;  %v8241_v44 = vpop.permute.xlu0 %5202  ;;  %v4920_v33 = vsel %vm8598_vm11, %v6765_v17, %v6766_v19 }
 0x30d   : > { %6139 = vmatprep.subr.msk.mxu1 %vm976_vm6, %v7904_v61  ;;  %6332 = vmatpush1.bf16.msra.mxu0 %v6331_v27  ;;  %v8243_v2 = vpop.permute.xlu1 %5187  ;;  %v6337_v28 = vpack.c.bf16 %v4922_v16, %v4920_v33 }
 0x30e   : > { %5851 = vmatprep.subr.msk.mxu0 %vm976_vm6, %v4649_v58  ;;  %6129 = vmatprep.mubr.msk.f32.mxu1 %vm2803_vm10, %v7918_v43 }
 0x30f   : > { %6130 = vmatmul.mubr.msk.f32.gmra.mrb[34].mxu1 %vm2803_vm10, %v7931_v5  ;;  %4475 = vmatprep.mubr.f32.mxu0 %v7580_v31  ;;  %v8283_v5 = vld [vmem:[%s8581_s3 + $0x130] sm:$0xff] }
 0x310   : > { %6140 = vmatpush3.msk.msra.mxu1 %vm976_vm6, %v7904_v61  ;;  %5833 = vmatmul.mubr.msk.f32.gmra.mrb[4].mxu0 %vm2803_vm10, %v8251_v36  ;;  %v1009_v43 = vpop.permute.xlu0 %1008 }
 0x311   : > { %6318 = vmatprep.subr.bf16.mxu1 %v7934_v11  ;;  %5852 = vmatpush1.msk.msra.mxu0 %vm976_vm6, %v4648_v10  ;;  %v8278_v38 = vpop.permute.xlu1 %5197 }
 0x312   : > { %6338 = vmatprep.subr.bf16.mxu0 %v6337_v28  ;;  %6132 = vmatprep.mubr.msk.f32.mxu1 %vm2803_vm10, %v7952_v59 }
 0x313   : > { %6133 = vmatmul.mubr.msk.f32.gmra.mrb[36].mxu1 %vm2803_vm10, %v7968_v63  ;;  %4481 = vmatprep.mubr.f32.mxu0 %v7580_v31  ;;  %v8306_v63 = vld [vmem:[%s8581_s3 + $0x138] sm:$0xff] }
 0x314   : > { %5834 = vmatmul.mubr.msk.f32.gmra.mrb[6].mxu0 %vm2803_vm10, %v8283_v5  ;;  %6141 = vmatprep.mubr.msk.f32.mxu1 %vm2803_vm10, %v7994_v23  ;;  %v1013_v61 = vpop.permute.xlu0 %1012 }
 0x315   : > { %v8300_v59 = vpop.permute.xlu1 %5192  ;;  %4487 = vmatprep.mubr.f32.mxu0 %v7580_v31  ;;  %1033 = vst.msk [vmem:[%s8294_s15 + $0x10] sm:$0xff] %vm1032_vm0, %v1013_v61 }
 0x317   : > { %6142 = vmatmul.mubr.msk.f32.vlgmr.msra.gmra.mrb[32].mxu1 %vm2803_vm10, %v8015_v32 }
 0x318   : > { %6320 = vmatpush3.bf16.msra.mxu1 %v7934_v11  ;;  %5835 = vmatmul.mubr.msk.f32.gmra.mrb[8].mxu0 %vm2803_vm10, %v8306_v63  ;;  %v6325_v11 = vpack.c.bf16 %v6731_v7, %v6736_v29  ;;  %v1017_v46 = vpop.permute.xlu0 %1016  ;;  %v5829_v7 = vld [vmem:[%s8581_s3 + $0x148] sm:$0xf] }
 0x319   : > { %6154 = vmatprep.subr.msk.mxu1 %vm976_vm6, %v7959_v35  ;;  %v1011_v23 = vpop.permute.xlu1 %1010  ;;  %6144 = vmatprep.mubr.msk.f32.mxu1 %vm2803_vm10, %v8046_v9  ;;  %v6771_v9 = vunpack.i.h.bf16 %v8174_v37 }
 0x31a   : > { %v1020_v51 = vsel %vm914_vm4, %v1009_v43, %v1011_v23  ;;  %v1021_v32 = vsel %vm914_vm4, %v1011_v23, %v1013_v61  ;;  %4493 = vmatprep.mubr.f32.mxu0 %v7580_v31 }
 0x31b   : > { %1030 = vst [vmem:[%s8294_s15] sm:$0xff] %v1020_v51  ;;  %1031 = vst [vmem:[%s8294_s15 + $0x8] sm:$0xff] %v1021_v32  ;;  %6145 = vmatmul.mubr.msk.f32.gmra.mrb[34].mxu1 %vm2803_vm10, %v8061_v45  ;;  %v4919_v45 = vsel %vm8602_vm2, %v6770_v0, %v6765_v17 }
 0x31c   : > { %6155 = vmatpush3.msk.msra.mxu1 %vm976_vm6, %v7959_v35  ;;  %5836 = vmatmul.mubr.msk.f32.gmra.mrb[10].mxu0 %vm2803_vm10, %v8322_v56  ;;  %v4921_v35 = vsel %vm8601_vm1, %v6771_v9, %v6760_v42 }
 0x31d   : > { %6326 = vmatprep.subr.bf16.mxu1 %v6325_v11  ;;  %v1015_v8 = vpop.permute.xlu1 %1014  ;;  %6147 = vmatprep.mubr.msk.f32.mxu1 %vm2803_vm10, %v8078_v18  ;;  %v6339_v40 = vpack.c.bf16 %v4921_v35, %v4919_v45 }
 0x31e   : > { %v1022_v29 = vsel %vm914_vm4, %v1015_v8, %v1017_v46  ;;  %4499 = vmatprep.mubr.f32.mxu0 %v7580_v31 }
 0x31f   : > { %1034 = vst [vmem:[%s8294_s15 + $0x18] sm:$0x1] %v1022_v29  ;;  %6148 = vmatmul.mubr.msk.f32.gmra.mrb[36].mxu1 %vm2803_vm10, %v8095_v14  ;;  %v5845_v14 = vld [vmem:[%s8581_s3 + $0x150] sm:$0xff] }
 0x320   : > { %5837 = vmatmul.mubr.msk.f32.gmra.mrb[12].mxu0 %vm2803_vm10, %v5829_v7  ;;  %6156 = vmatprep.mubr.msk.f32.mxu1 %vm2803_vm10, %v8112_v47  ;;  %v4924_v47 = vsel %vm8603_vm3, %v8172_v1, %v8201_v25 }
 0x321   : > { %v1019_v18 = vpop.permute.xlu1 %1018  ;;  %4744 = vmatprep.mubr.f32.mxu0 %v7580_v31 }
 0x322   : > { %v1023_v49 = vsel %vm914_vm4, %v1017_v46, %v1019_v18  ;;  %1037 = vst.msk [vmem:[%s8294_s15 + $0x28] sm:$0x1] %vm1036_vm15, %v1019_v18  ;;  %vm8604_vm4 = vmmov %vm8601_vm1 }
 0x323   : > { %1035 = vst [vmem:[%s8294_s15 + $0x20] sm:$0x1] %v1023_v49  ;;  %6157 = vmatmul.mubr.msk.f32.vlgmr.msra.gmra.mrb[32].mxu1 %vm2803_vm10, %v8130_v57  ;;  %v6333_v57 = vpack.c.bf16 %v6746_v62, %v6751_v26  ;;  %v4923_v54 = vsel %vm8604_vm4, %v8199_v22, %v8172_v1  ;;  %v6341_v62 = vpack.c.bf16 %v6761_v60, %v6766_v19  ;;  %v5850_v26 = vld [vmem:[%s8581_s3 + $0x178] sm:$0xf]  ;;  %v5871_v1 = vld [vmem:[%s8581_s3 + $0x1a8] sm:$0xf] }
 0x324   : > { %6328 = vmatpush3.bf16.msra.mxu1 %v6325_v11  ;;  %5853 = vmatmul.mubr.msk.f32.vlgmr.msra.gmra.mrb[2].mxu0 %vm2803_vm10, %v5845_v14 }
 0x325   : > { %6169 = vmatprep.subr.msk.mxu1 %vm976_vm6, %v8040_v41  ;;  %6340 = vmatpush1.bf16.msra.mxu0 %v6339_v40 }
 0x326   : > { %5872 = vmatprep.subr.msk.mxu0 %vm976_vm6, %v4924_v47  ;;  %6159 = vmatprep.mubr.msk.f32.mxu1 %vm2803_vm10, %v8157_v12  ;;  %v5869_v12 = vld [vmem:[%s8581_s3 + $0x198] sm:$0xff] }
 0x327   : > { %6160 = vmatmul.mubr.msk.f32.gmra.mrb[34].mxu1 %vm2803_vm10, %v8170_v20  ;;  %4750 = vmatprep.mubr.f32.mxu0 %v7580_v31  ;;  %v5870_v20 = vld [vmem:[%s8581_s3 + $0x1a0] sm:$0xff] }
 0x328   : > { %6170 = vmatpush3.msk.msra.mxu1 %vm976_vm6, %v8040_v41  ;;  %5854 = vmatmul.mubr.msk.f32.gmra.mrb[4].mxu0 %vm2803_vm10, %v5846_v4  ;;  %v5848_v41 = vld [vmem:[%s8581_s3 + $0x168] sm:$0xff] }
 0x329   : > { %6334 = vmatprep.subr.bf16.mxu1 %v6333_v57  ;;  %5873 = vmatpush1.msk.msra.mxu0 %vm976_vm6, %v4923_v54 }
 0x32a   : > { %6162 = vmatprep.mubr.msk.f32.mxu1 %vm2803_vm10, %v8188_v39  ;;  %4756 = vmatprep.mubr.f32.mxu0 %v7580_v31 }
 0x32b   : > { %6163 = vmatmul.mubr.msk.f32.gmra.mrb[36].mxu1 %vm2803_vm10, %v8209_v52 }
 0x32c   : > { %5855 = vmatmul.mubr.msk.f32.gmra.mrb[6].mxu0 %vm2803_vm10, %v5847_v48  ;;  %6171 = vmatprep.mubr.msk.f32.mxu1 %vm2803_vm10, %v8232_v55 }
 0x32d   : > { %4762 = vmatprep.mubr.f32.mxu0 %v7580_v31 }
 0x32f   : > { %6172 = vmatmul.mubr.msk.f32.vlgmr.msra.gmra.mrb[32].mxu1 %vm2803_vm10, %v8251_v36 }
 0x330   : > { %6336 = vmatpush3.bf16.msra.mxu1 %v6333_v57  ;;  %5856 = vmatmul.mubr.msk.f32.gmra.mrb[8].mxu0 %vm2803_vm10, %v5848_v41 }
 0x331   : > { %6184 = vmatprep.subr.msk.mxu1 %vm976_vm6, %v8116_v30  ;;  %6174 = vmatprep.mubr.msk.f32.mxu1 %vm2803_vm10, %v8283_v5 }
 0x332   : > { %4768 = vmatprep.mubr.f32.mxu0 %v7580_v31 }
 0x333   : > { %6175 = vmatmul.mubr.msk.f32.gmra.mrb[34].mxu1 %vm2803_vm10, %v8306_v63 }
 0x334   : > { %6185 = vmatpush3.msk.msra.mxu1 %vm976_vm6, %v8116_v30  ;;  %5857 = vmatmul.mubr.msk.f32.gmra.mrb[10].mxu0 %vm2803_vm10, %v5849_v50  ;;  %v5866_v30 = vld [vmem:[%s8581_s3 + $0x180] sm:$0xff] }
 0x335   : > { %6342 = vmatprep.subr.bf16.mxu1 %v6341_v62  ;;  %6177 = vmatprep.mubr.msk.f32.mxu1 %vm2803_vm10, %v8322_v56 }
 0x336   : > { %4774 = vmatprep.mubr.f32.mxu0 %v7580_v31 }
 0x337   : > { %6178 = vmatmul.mubr.msk.f32.gmra.mrb[36].mxu1 %vm2803_vm10, %v5829_v7 }
 0x338   : > { %5858 = vmatmul.mubr.msk.f32.gmra.mrb[12].mxu0 %vm2803_vm10, %v5850_v26  ;;  %6186 = vmatprep.mubr.msk.f32.mxu1 %vm2803_vm10, %v5845_v14 }
 0x339   : > { %5019 = vmatprep.mubr.f32.mxu0 %v7580_v31 }
 0x33b   : > { %6187 = vmatmul.mubr.msk.f32.vlgmr.msra.gmra.mrb[32].mxu1 %vm2803_vm10, %v5846_v4 }
 0x33c   : > { %6344 = vmatpush3.bf16.msra.mxu1 %v6341_v62  ;;  %5874 = vmatmul.mubr.msk.f32.vlgmr.msra.gmra.mrb[2].mxu0 %vm2803_vm10, %v5866_v30 }
 0x33d   : > { %6199 = vmatprep.subr.msk.mxu1 %vm976_vm6, %v8201_v25  ;;  %6189 = vmatprep.mubr.msk.f32.mxu1 %vm2803_vm10, %v5847_v48 }
 0x33e   : > { %5025 = vmatprep.mubr.f32.mxu0 %v7580_v31 }
 0x33f   : > { %6190 = vmatmul.mubr.msk.f32.gmra.mrb[34].mxu1 %vm2803_vm10, %v5848_v41 }
 0x340   : > { %6200 = vmatpush3.msk.msra.mxu1 %vm976_vm6, %v8201_v25  ;;  %5875 = vmatmul.mubr.msk.f32.gmra.mrb[4].mxu0 %vm2803_vm10, %v5867_v34  ;;  %vm5432_vm6 = vcmask 550912  }
 0x341   : > { %6192 = vmatprep.mubr.msk.f32.mxu1 %vm2803_vm10, %v5849_v50  ;;  %5031 = vmatprep.mubr.f32.mxu0 %v7580_v31 }
 0x343   : > { %6193 = vmatmul.mubr.msk.f32.gmra.mrb[36].mxu1 %vm2803_vm10, %v5850_v26 }
 0x344   : > { %5876 = vmatmul.mubr.msk.f32.gmra.mrb[6].mxu0 %vm2803_vm10, %v5868_v6  ;;  %6201 = vmatprep.mubr.msk.f32.mxu1 %vm2803_vm10, %v5866_v30 }
 0x345   : > { %5037 = vmatprep.mubr.f32.mxu0 %v7580_v31 }
 0x347   : > { %6202 = vmatmul.mubr.msk.f32.vlgmr.msra.gmra.mrb[32].mxu1 %vm2803_vm10, %v5867_v34 }
 0x348   : > { %5877 = vmatmul.mubr.msk.f32.gmra.mrb[8].mxu0 %vm2803_vm10, %v5869_v12  ;;  %6204 = vmatprep.mubr.msk.f32.mxu1 %vm2803_vm10, %v5868_v6 }
 0x349   : > { %5043 = vmatprep.mubr.f32.mxu0 %v7580_v31 }
 0x34b   : > { %6205 = vmatmul.mubr.msk.f32.gmra.mrb[34].mxu1 %vm2803_vm10, %v5869_v12 }
 0x34c   : > { %5878 = vmatmul.mubr.msk.f32.gmra.mrb[10].mxu0 %vm2803_vm10, %v5870_v20  ;;  %6207 = vmatprep.mubr.msk.f32.mxu1 %vm2803_vm10, %v5870_v20 }
 0x34d   : > { %5049 = vmatprep.mubr.f32.mxu0 %v7580_v31 }
 0x34f   : > { %6208 = vmatmul.mubr.msk.f32.gmra.mrb[36].mxu1 %vm2803_vm10, %v5871_v1 }
 0x350   : > { %5879 = vmatmul.mubr.msk.f32.gmra.mrb[12].mxu0 %vm2803_vm10, %v5871_v1 }
 0x3ae   : > { %v3114_v37 = vpop.f32.mrb[20].mxu1 }
 0x3af   : > { %v3116_v39 = vpop.f32.mrb[21].mxu1 }
 0x3b2   : > { %v3120_v24 = vpop.f32.mrb[22].mxu1 }
 0x3b3   : > { %v3122_v13 = vpop.f32.mrb[23].mxu1 }
 0x3b6   : > { %v3126_v22 = vpop.f32.mrb[24].mxu1 }
 0x3b7   : > { %v3128_v25 = vpop.f32.mrb[25].mxu1 }
 0x3ba   : > { %v3132_v52 = vpop.f32.mrb[26].mxu1 }
 0x3bb   : > { %v3134_v21 = vpop.f32.mrb[27].mxu1 }
 0x3be   : > { %v3138_v3 = vpop.f32.mrb[28].mxu1 }
 0x3bf   : > { %v3140_v60 = vpop.f32.mrb[29].mxu1 }
 0x3c2   : > { %v3144_v42 = vpop.f32.mrb[30].mxu1 }
 0x3c3   : > { %v3146_v19 = vpop.f32.mrb[31].mxu1 }
 0x40f   : > { %v5021_v17 = vpop.f32.mrb[2].mxu0 }
 0x410   : > { %v6347_v55 = vadd.f32 %v5021_v17, %v3114_v37  ;;  %v5023_v27 = vpop.f32.mrb[3].mxu0 }
 0x411   : > { %v6348_v31 = vadd.f32 %v5023_v27, %v3116_v39 }
 0x412   : > { %v5205_v58 = vadd.f32 %v6347_v55, %v8226_v15 }
 0x413   : > { %v5206_v36 = vadd.f32 %v6348_v31, %v8226_v15  ;;  %v5027_v33 = vpop.f32.mrb[4].mxu0 }
 0x414   : > { %v6349_v16 = vadd.f32 %v5027_v33, %v3120_v24  ;;  %v5029_v10 = vpop.f32.mrb[5].mxu0  ;;  %v5887_v43 = vmul.f32 -1.442695, %v5205_v58 }
 0x415   : > { %v6350_v28 = vadd.f32 %v5029_v10, %v3122_v13  ;;  %v5888_v61 = vmul.f32 -1.442695, %v5206_v36 }
 0x416   : > { %v5208_v5 = vadd.f32 %v6349_v16, %v8224_v53  ;;  %6773 = vpow2.f32 %v5887_v43 }
 0x417   : > { %v5209_v63 = vadd.f32 %v6350_v28, %v8224_v53  ;;  %v5033_v23 = vpop.f32.mrb[6].mxu0  ;;  %6775 = vpow2.f32 %v5888_v61 }
 0x418   : > { %v6351_v56 = vadd.f32 %v5033_v23, %v3126_v22  ;;  %v5035_v51 = vpop.f32.mrb[7].mxu0  ;;  %v5890_v32 = vmul.f32 -1.442695, %v5208_v5 }
 0x419   : > { %v6352_v11 = vadd.f32 %v5035_v51, %v3128_v25  ;;  %v5891_v9 = vmul.f32 -1.442695, %v5209_v63 }
 0x41a   : > { %v6203_v0 = vpop.f32.mrb[32].mxu1  ;;  %6777 = vpow2.f32 %v5890_v32  ;;  %v5211_v57 = vadd.f32 %v6351_v56, %v8243_v2 }
 0x41b   : > { %v5210_v46 = vadd.f32 %v6203_v0, %v8224_v53  ;;  %v5039_v8 = vpop.f32.mrb[8].mxu0  ;;  %v5122_v7 = vpop.f32.mrb[33].mxu1  ;;  %6779 = vpow2.f32 %v5891_v9  ;;  %v5212_v53 = vadd.f32 %v6352_v11, %v8243_v2 }
 0x41c   : > { %v6353_v29 = vadd.f32 %v5039_v8, %v3132_v52  ;;  %v5207_v35 = vadd.f32 %v8226_v15, %v5122_v7  ;;  %v5041_v45 = vpop.f32.mrb[9].mxu0  ;;  %v5893_v34 = vmul.f32 -1.442695, %v5211_v57  ;;  %v5324_v8 = vld [vmem:[%s456_s18 + $0x28] sm:$0x7] }
 0x41d   : > { %v8490_v18 = vadd.f32 %v5041_v45, %v3134_v21  ;;  %v5892_v14 = vmul.f32 -1.442695, %v5210_v46  ;;  %v5894_v1 = vmul.f32 -1.442695, %v5212_v53  ;;  %v5322_v7 = vld [vmem:[%s456_s18 + $0x18] sm:$0x7] }
 0x41e   : > { %v6206_v49 = vpop.f32.mrb[34].mxu1  ;;  %v5889_v40 = vmul.f32 -1.442695, %v5207_v35  ;;  %v5214_v41 = vadd.f32 %v6353_v29, %v8300_v59  ;;  %v5321_v45 = vld [vmem:[%s456_s18 + $0x10] sm:$0xff]  ;;  %v5334_v57 = vrot.slane %v5322_v7, 5 }
 0x41f   : > { %v5045_v47 = vpop.f32.mrb[10].mxu0  ;;  %v5132_v4 = vpop.f32.mrb[35].mxu1  ;;  %6781 = vpow2.f32 %v5892_v14  ;;  %v5216_v37 = vadd.f32 %v6206_v49, %v8300_v59  ;;  %v5215_v46 = vadd.f32 %v8490_v18, %v8300_v59  ;;  %v5319_v49 = vld [vmem:[%s456_s18] sm:$0xff] }
 0x420   : > { %v6355_v54 = vadd.f32 %v5045_v47, %v3138_v3  ;;  %v5047_v48 = vpop.f32.mrb[11].mxu0  ;;  %6783 = vpow2.f32 %v5889_v40  ;;  %v6774_v30 = vpop.eup %6773  ;;  %v5896_v24 = vmul.f32 -1.442695, %v5214_v41  ;;  %v5213_v21 = vadd.f32 %v8243_v2, %v5132_v4  ;;  %v5323_v40 = vld [vmem:[%s456_s18 + $0x20] sm:$0x7] }
 0x421   : > { %v6356_v50 = vadd.f32 %v5047_v48, %v3140_v60  ;;  %v6776_v20 = vpop.eup %6775  ;;  %v5241_v22 = vadd.f32 1.0, %v6774_v30  ;;  %6785 = vpow2.f32 %v5893_v34  ;;  %v5898_v3 = vmul.f32 -1.442695, %v5216_v37 }
 0x422   : > { %v6209_v15 = vpop.f32.mrb[36].mxu1  ;;  %v5242_v52 = vadd.f32 1.0, %v6776_v20  ;;  %6787 = vpow2.f32 %v5894_v1  ;;  %v5217_v60 = vadd.f32 %v6355_v54, %v8278_v38  ;;  %v5895_v27 = vmul.f32 -1.442695, %v5213_v21  ;;  %v5320_v54 = vld [vmem:[%s456_s18 + $0x8] sm:$0xff] }
 0x423   : > { %v5051_v62 = vpop.f32.mrb[12].mxu0  ;;  %v5142_v26 = vpop.f32.mrb[37].mxu1  ;;  %6789 = vpow2.f32 %v5896_v24  ;;  %v5222_v33 = vadd.f32 %v6209_v15, %v8241_v44  ;;  %v5218_v10 = vadd.f32 %v6356_v50, %v8278_v38  ;;  %v5338_v4 = vrot.slane %v5324_v8, 5 }
 0x424   : > { %v6357_v6 = vadd.f32 %v5051_v62, %v3144_v42  ;;  %v5053_v12 = vpop.f32.mrb[13].mxu0  ;;  %v6778_v13 = vpop.eup %6777  ;;  %6791 = vrcp.f32 %v5241_v22  ;;  %v5899_v31 = vmul.f32 -1.442695, %v5217_v60  ;;  %v5219_v2 = vadd.f32 %v8278_v38, %v5142_v26 }
 0x425   : > { %v6358_v39 = vadd.f32 %v5053_v12, %v3146_v19  ;;  %v6780_v25 = vpop.eup %6779  ;;  %v5244_v17 = vadd.f32 1.0, %v6778_v13  ;;  %6793 = vrcp.f32 %v5242_v52  ;;  %v5900_v14 = vmul.f32 -1.442695, %v5218_v10 }
 0x426   : > { %v5245_v42 = vadd.f32 1.0, %v6780_v25  ;;  %6795 = vpow2.f32 %v5898_v3  ;;  %v5220_v43 = vadd.f32 %v6357_v6, %v8241_v44  ;;  %v5901_v61 = vmul.f32 -1.442695, %v5219_v2 }
 0x427   : > { %6797 = vrcp.f32 %v5244_v17  ;;  %v5221_v56 = vadd.f32 %v6358_v39, %v8241_v44  ;;  %v5897_v53 = vmul.f32 -1.442695, %v5215_v46  ;;  %v5333_v41 = vrot.slane %v5321_v45, 5 }
 0x428   : > { %6799 = vrcp.f32 %v5245_v42  ;;  %v5331_v15 = vrot.slane %v5319_v49, 5  ;;  %v5336_v50 = vrot.slane %v5323_v40, 5  ;;  %v5332_v30 = vrot.slane %v5320_v54, 5 }
 0x429   : > { %v6782_v55 = vpop.eup %6781  ;;  %6801 = vpow2.f32 %v5895_v27  ;;  %v5339_v12 = vsel %vm964_vm14, %v5333_v41, %v5338_v4 }
 0x42a   : > { %v6784_v19 = vpop.eup %6783  ;;  %v5246_v58 = vadd.f32 1.0, %v6782_v55  ;;  %6803 = vpow2.f32 %v5899_v31  ;;  %v5335_v20 = vsel %vm964_vm14, %v5331_v15, %v5334_v57  ;;  %v5337_v52 = vsel %vm964_vm14, %v5332_v30, %v5336_v50 }
 0x42b   : > { %v5243_v36 = vadd.f32 1.0, %v6784_v19  ;;  %v6786_v16 = vpop.eup %6785  ;;  %6805 = vtanh.f32 %v5217_v60 }
 0x42c   : > { %v6788_v28 = vpop.eup %6787  ;;  %6807 = vrcp.f32 %v5246_v58  ;;  %v5268_v32 = vadd.f32 1.0, %v6786_v16 }
 0x42d   : > { %v6790_v5 = vpop.eup %6789  ;;  %6809 = vrcp.f32 %v5243_v36  ;;  %v5269_v11 = vadd.f32 1.0, %v6788_v28 }
 0x42e   : > { %v8502_v63 = vpop.eup %6791  ;;  %6811 = vtanh.f32 %v5222_v33  ;;  %v5295_v18 = vadd.f32 1.0, %v6790_v5 }
 0x42f   : > { %v8504_v23 = vpop.eup %6793  ;;  %6813 = vtanh.f32 %v5218_v10 }
 0x430   : > { %v6796_v51 = vpop.eup %6795  ;;  %6815 = vtanh.f32 %v5220_v43 }
 0x431   : > { %v6798_v38 = vpop.eup %6797  ;;  %6817 = vpow2.f32 %v5901_v61  ;;  %v8517_v22 = vadd.f32 1.0, %v6796_v51 }
 0x432   : > { %v8507_v9 = vpop.eup %6799  ;;  %6819 = vtanh.f32 %v5219_v2  ;;  %v5346_v25 = vmul.f32 %v6798_v38, %v5331_v15 }
 0x433   : > { %v6802_v0 = vpop.eup %6801  ;;  %6821 = vtanh.f32 %v5221_v56  ;;  %v5347_v42 = vmul.f32 %v8507_v9, %v5332_v30 }
 0x434   : > { %v6804_v44 = vpop.eup %6803  ;;  %6823 = vrcp.f32 %v5268_v32  ;;  %v5270_v29 = vadd.f32 1.0, %v6802_v0 }
 0x435   : > { %v6806_v35 = vpop.eup %6805  ;;  %6825 = vrcp.f32 %v5269_v11  ;;  %v5298_v6 = vadd.f32 1.0, %v6804_v44 }
 0x436   : > { %v6808_v47 = vpop.eup %6807  ;;  %6827 = vrcp.f32 %v5270_v29  ;;  %v5358_v37 = vrot.slane %v6806_v35, 1 }
 0x437   : > { %v6810_v48 = vpop.eup %6809  ;;  %6829 = vpow2.f32 %v5900_v14  ;;  %v5348_v51 = vmul.f32 %v6808_v47, %v5333_v41 }
 0x438   : > { %v6812_v59 = vpop.eup %6811  ;;  %6831 = vpow2.f32 %v5897_v53 }
 0x439   : > { %v6814_v62 = vpop.eup %6813  ;;  %v5365_v26 = vrot.slane %v6812_v59, 1  ;;  %6833 = vrcp.f32 %v5295_v18 }
 0x43a   : > { %v6816_v34 = vpop.eup %6815  ;;  %6835 = vrcp.f32 %v5298_v6  ;;  %v5361_v27 = vrot.slane %v6814_v62, 1 }
 0x43b   : > { %v6818_v1 = vpop.eup %6817  ;;  %v5378_v39 = vmul.f32 %v6808_v47, %v5365_v26  ;;  %v5359_v24 = vrot.slane %v6816_v34, 1 }
 0x43c   : > { %v6820_v13 = vpop.eup %6819  ;;  %v5300_v33 = vadd.f32 1.0, %v6818_v1 }
 0x43d   : > { %v6822_v21 = vpop.eup %6821  ;;  %v5360_v3 = vsel %vm980_vm9, %v5358_v37, %v5359_v24  ;;  %v5376_v60 = vmul.f32 %v6798_v38, %v5359_v24  ;;  %v5364_v17 = vrot.slane %v6820_v13, 1  ;;  %v5392_v36 = vrot.slane %v5378_v39, 5 }
 0x43e   : > { %v8522_v55 = vpop.eup %6823  ;;  %v5373_v19 = vmul.f32 %v8502_v63, %v5360_v3  ;;  %v5362_v31 = vrot.slane %v6822_v21, 1  ;;  %6837 = vrcp.f32 %v5300_v33 }
 0x43f   : > { %v8525_v58 = vpop.eup %6825  ;;  %v5388_v2 = vrot.slane %v5376_v60, 5  ;;  %v5366_v16 = vsel %vm980_vm9, %v5364_v17, %v5365_v26  ;;  %v5349_v56 = vmul.f32 %v8522_v55, %v5335_v20 }
 0x440   : > { %v8528_v10 = vpop.eup %6827  ;;  %v5385_v28 = vrot.slane %v5373_v19, 5  ;;  %v5375_v43 = vmul.f32 %v6810_v48, %v5366_v16  ;;  %v5363_v5 = vsel %vm980_vm9, %v5361_v27, %v5362_v31  ;;  %v5377_v61 = vmul.f32 %v8507_v9, %v5362_v31 }
 0x441   : > { %v5351_v63 = vmul.f32 %v8528_v10, %v5339_v12  ;;  %v5374_v32 = vmul.f32 %v8504_v23, %v5363_v5  ;;  %v6830_v8 = vpop.eup %6829  ;;  %v5350_v44 = vmul.f32 %v8525_v58, %v5337_v52  ;;  %vm8605_vm9 = vcmask 1044480  }
 0x442   : > { %v5389_v38 = vsel %vm964_vm14, %v5385_v28, %v5388_v2  ;;  %v5400_v11 = vadd.f32 %v5385_v28, %v5346_v25  ;;  %v5387_v0 = vrot.slane %v5375_v43, 5  ;;  %v5390_v46 = vrot.slane %v5377_v61, 5  ;;  %v6832_v45 = vpop.eup %6831  ;;  %vm8606_vm10 = vmmov %vm8605_vm9 }
 0x443   : > { %v5403_v7 = vadd.f32 %v5389_v38, %v5349_v56  ;;  %v5386_v29 = vrot.slane %v5374_v32, 5  ;;  %v6834_v47 = vpop.eup %6833  ;;  %v5299_v4 = vadd.f32 1.0, %v6830_v8  ;;  %v5296_v41 = vadd.f32 1.0, %v6832_v45  ;;  %vm8607_vm5 = vmmov %vm8605_vm9 }
 0x444   : > { %v5412_v9 = vrot.slane %v5400_v11, 3  ;;  %6839 = vtanh.f32 %v5400_v11  ;;  %v5393_v23 = vsel %vm964_vm14, %v5387_v0, %v5392_v36  ;;  %v5402_v35 = vadd.f32 %v5387_v0, %v5348_v51  ;;  %v6836_v18 = vpop.eup %6835 }
 0x445   : > { %v5413_v14 = vrot.slane %v5403_v7, 3  ;;  %6841 = vtanh.f32 %v5403_v7  ;;  %v5405_v49 = vadd.f32 %v5393_v23, %v5351_v63  ;;  %v5391_v40 = vsel %vm964_vm14, %v5386_v29, %v5390_v46 }
 0x446   : > { %6843 = vtanh.f32 %v5402_v35  ;;  %v5401_v57 = vadd.f32 %v5386_v29, %v5347_v42  ;;  %v5404_v54 = vadd.f32 %v5391_v40, %v5350_v44  ;;  %v5418_v53 = vrot.slane %v5402_v35, 3 }
 0x447   : > { %v5414_v48 = vsel %vm8605_vm9, %v5412_v9, %v5413_v14  ;;  %5430 = vst [vmem:[%s8541_s16 + $0x18] sm:$0x7] %v5413_v14  ;;  %v5419_v59 = vrot.slane %v5405_v49, 3  ;;  %6845 = vtanh.f32 %v5405_v49 }
 0x448   : > { %5427 = vst [vmem:[%s8541_s16] sm:$0xff] %v5414_v48  ;;  %v5415_v15 = vrot.slane %v5401_v57, 3  ;;  %v5416_v50 = vrot.slane %v5404_v54, 3  ;;  %6847 = vtanh.f32 %v5401_v57  ;;  %v6838_v30 = vpop.eup %6837 }
 0x449   : > { %v5420_v62 = vsel %vm8606_vm10, %v5418_v53, %v5419_v59  ;;  %5433 = vst.msk [vmem:[%s8541_s16 + $0x28] sm:$0x7] %vm5432_vm6, %v5419_v59  ;;  %6849 = vtanh.f32 %v5404_v54 }
 0x44a   : > { %6851 = vrcp.f32 %v8517_v22  ;;  %5429 = vst.msk [vmem:[%s8541_s16 + $0x10] sm:$0xff] %vm1032_vm0, %v5420_v62  ;;  %v5417_v26 = vsel %vm8607_vm5, %v5415_v15, %v5416_v50  ;;  %5431 = vst [vmem:[%s8541_s16 + $0x20] sm:$0x7] %v5416_v50 }
 0x44b   : > { %6853 = vrcp.f32 %v5299_v4  ;;  %5428 = vst [vmem:[%s8541_s16 + $0x8] sm:$0xff] %v5417_v26 }
 0x44c   : > { %6855 = vrcp.f32 %v5296_v41 }
 0x44e   : > { %v6840_v34 = vpop.eup %6839 }
 0x44f   : > { %v6842_v6 = vpop.eup %6841  ;;  %v5446_v12 = vrot.slane %v6840_v34, 5 }
 0x450   : > { %v6844_v20 = vpop.eup %6843  ;;  %v5449_v1 = vrot.slane %v6842_v6, 5 }
 0x451   : > { %v6846_v37 = vpop.eup %6845  ;;  %v5464_v39 = vmul.f32 %v8522_v55, %v5446_v12  ;;  %v5448_v24 = vrot.slane %v6844_v20, 5 }
 0x452   : > { %v6848_v13 = vpop.eup %6847  ;;  %v5450_v22 = vsel %vm964_vm14, %v5446_v12, %v5449_v1  ;;  %v5470_v25 = vmul.f32 %v6836_v18, %v5449_v1  ;;  %v5453_v52 = vrot.slane %v6846_v37, 5 }
 0x453   : > { %v6850_v21 = vpop.eup %6849  ;;  %v5467_v3 = vmul.f32 %v6834_v47, %v5450_v22  ;;  %v5466_v60 = vmul.f32 %v8528_v10, %v5448_v24  ;;  %v5447_v17 = vrot.slane %v6848_v13, 5  ;;  %v5482_v55 = vrot.slane %v5464_v39, 6 }
 0x454   : > { %v6852_v42 = vpop.eup %6851  ;;  %v5491_v27 = vrot.slane %v5470_v25, 6  ;;  %v5454_v19 = vsel %vm964_vm14, %v5448_v24, %v5453_v52  ;;  %v5472_v31 = vmul.f32 %v6838_v30, %v5453_v52  ;;  %v5451_v36 = vrot.slane %v6850_v21, 5 }
 0x455   : > { %v6854_v2 = vpop.eup %6853  ;;  %v5483_v33 = vrot.slane %v5467_v3, 6  ;;  %v5469_v16 = vmul.f32 %v6852_v42, %v5454_v19  ;;  %v5465_v28 = vmul.f32 %v8525_v58, %v5447_v17  ;;  %v5488_v5 = vrot.slane %v5466_v60, 6 }
 0x456   : > { %v6856_v43 = vpop.eup %6855  ;;  %v5495_v10 = vrot.slane %v5472_v31, 6  ;;  %v5452_v61 = vsel %vm964_vm14, %v5447_v17, %v5451_v36  ;;  %v5471_v63 = vmul.f32 %v6854_v2, %v5451_v36 }
 0x457   : > { %v5484_v56 = vsel %vm960_vm13, %v5482_v55, %v5483_v33  ;;  %v5492_v51 = vsel %vm960_vm13, %v5483_v33, %v5491_v27  ;;  %v5489_v32 = vrot.slane %v5469_v16, 6  ;;  %v5468_v38 = vmul.f32 %v6856_v43, %v5452_v61 }
 0x458   : > { %5503 = vst [vmem:[%s466_s28] sm:$0xff] %v5484_v56  ;;  %5506 = vst [vmem:[%s466_s28 + $0x18] sm:$0x7] %v5492_v51  ;;  %v5493_v11 = vrot.slane %v5471_v63, 6  ;;  %v5485_v58 = vrot.slane %v5465_v28, 6 }
 0x459   : > { %v5490_v0 = vsel %vm960_vm13, %v5488_v5, %v5489_v32  ;;  %v5496_v46 = vsel %vm960_vm13, %v5489_v32, %v5495_v10  ;;  %v5486_v8 = vrot.slane %v5468_v38, 6 }
 0x45a   : > { %5505 = vst.msk [vmem:[%s466_s28 + $0x10] sm:$0xff] %vm1032_vm0, %v5490_v0 }
 0x45b   : > { %5508 = vst.msk [vmem:[%s466_s28 + $0x28] sm:$0x7] %vm5432_vm6, %v5496_v46  ;;  %v5487_v7 = vsel %vm960_vm13, %v5485_v58, %v5486_v8  ;;  %v5494_v44 = vsel %vm960_vm13, %v5486_v8, %v5493_v11 }
 0x45c   : > { %5504 = vst [vmem:[%s466_s28 + $0x8] sm:$0xff] %v5487_v7  ;;  %5507 = vst [vmem:[%s466_s28 + $0x20] sm:$0x7] %v5494_v44 }
 0x45d PF: > { %s22_s17 = sadd.s32 1, %s6870_s17  }
 0x45e   : > { %p19_p4 = scmp.ge.s32.totalorder %s22_s17, 4  }
 0x460   :  { %21 = sbr.rel (!%p19_p4) target bundleno = 1 (0x1), region = 135 }

</bundles_post_ra>
